<compile_context>
chip_gen: v5e
topology: v5e:2x2
jax: 0.10.0
libtpu: 0.0.40
codegen_flags: <defaults>
</compile_context>

<pallas_src>
import functools

import jax
import jax.numpy as jnp
from jax.experimental import pallas as pl
from jax.experimental.pallas import tpu as pltpu


def sub_filter_start_end(max_ks, ks):
    center = max_ks // 2
    dev = ks // 2
    return center - dev, center + dev + 1


def get_same_padding(kernel_size):
    # reference impl: kernel_size // 2 for odd kernel sizes (no dilation factor)
    assert kernel_size % 2 == 1, "kernel size should be odd"
    return kernel_size // 2


def _round_up(x, m):
    return (x + m - 1) // m * m


def _vmem_capacity_bytes():
    try:
        cap = int(pltpu.get_tpu_info().vmem_capacity_bytes)
        if cap > 0:
            return cap
    except Exception:
        pass
    return 64 * 1024 * 1024  # conservative default (v7x per-TensorCore)


def _wants_f32_vector_math():
    # v5e and older have no bf16 VPU datapath: feeding f32 from the wrapper
    # avoids K*K repeated bf16->f32 converts inside the tap loop.
    try:
        kind = jax.devices()[0].device_kind.lower()
        return any(t in kind for t in ("v2", "v3", "v4", "v5"))
    except Exception:
        return False


def _dwconv_nhwc_kernel(x_ref, w_ref, o_ref, *, K, stride, dilation, tile_ho):
    # x_ref: (1, Hp2, Wp, TC)     padded input (whole image), channels on lanes
    # w_ref: (K, K, TC)           active depthwise filter tile, channels on lanes
    # o_ref: (1, tile_ho, Wo, TC) output row-strip, channels on lanes
    Wo = o_ref.shape[2]
    row_step = tile_ho * stride
    h0 = pl.multiple_of(pl.program_id(2) * row_step, row_step)

    w_all = w_ref[...]            # hoist the weight load out of the tap loop

    acc = None                    # f32 accumulator kept in vregs (no VMEM scratch)
    for kh in range(K):
        hstart = h0 + kh * dilation
        for kw in range(K):
            wstart = kw * dilation
            if stride == 1:
                win = x_ref[0, pl.ds(hstart, tile_ho), pl.ds(wstart, Wo), :]
            else:
                # strided ref read: avoids loading stride^2 extra data and the
                # per-tap value-level compaction.
                win = x_ref[0,
                            pl.ds(hstart, tile_ho, stride=stride),
                            pl.ds(wstart, Wo, stride=stride), :]
            tap = w_all[kh, kw, :]                       # (TC,) lane-dense row
            prod = (win * tap).astype(jnp.float32)       # bf16 mul + widen (or pure f32)
            acc = prod if acc is None else acc + prod
    o_ref[0] = acc.astype(o_ref.dtype)                   # single lane-dense store


class DynamicSeparableConv2d:
    """JAX/Pallas version of the PyTorch module (forward only)."""

    def __init__(self, max_in_channels, kernel_size_list, stride=1, dilation=1,
                 key=None):
        self.max_in_channels = max_in_channels
        self.kernel_size_list = kernel_size_list
        self.stride = stride
        self.dilation = dilation
        self.active_kernel_size = max(kernel_size_list)
        max_ks = max(kernel_size_list)
        if key is None:
            key = jax.random.PRNGKey(0)
        # nn.Conv2d(groups=max_in_channels, bias=False) weight shape:
        # (max_in_channels, 1, max_ks, max_ks)
        fan_in = 1 * max_ks * max_ks
        bound = 1.0 / (fan_in ** 0.5)
        self.weight = jax.random.uniform(
            key, (max_in_channels, 1, max_ks, max_ks),
            minval=-bound, maxval=bound, dtype=jnp.float32)

    def get_active_filter(self, in_channel, kernel_size):
        max_ks = max(self.kernel_size_list)
        start, end = sub_filter_start_end(max_ks, kernel_size)
        # (C, 1, ks, ks) -> (C, ks, ks)
        return self.weight[:in_channel, 0, start:end, start:end]

    def forward(self, x, kernel_size=None):
        if kernel_size is None:
            kernel_size = self.active_kernel_size
        K = int(kernel_size)
        N, C, H, W = x.shape
        stride, dilation = self.stride, self.dilation

        filters = self.get_active_filter(C, K)               # (C, K, K)
        pad = get_same_padding(K)                             # == F.conv2d padding

        Hp, Wp = H + 2 * pad, W + 2 * pad
        Ho = (Hp - dilation * (K - 1) - 1) // stride + 1
        Wo = (Wp - dilation * (K - 1) - 1) // stride + 1

        # compute dtype: keep the input dtype (true bf16 VPU math on v6e/v7x);
        # feed f32 on parts without a bf16 vector datapath.
        compute_dtype = x.dtype
        if x.dtype == jnp.bfloat16 and _wants_f32_vector_math():
            compute_dtype = jnp.float32

        # Channels on the lane axis, padded to a lane multiple.
        # TODO(synk): for C << 128 (early layers / the C=4 test case) switch to a
        # W-on-lanes layout instead of padding 4->128 (lane utilization ~3% here).
        Cp = _round_up(max(C, 128), 128)

        vmem_cap = _vmem_capacity_bytes()
        vmem_limit = max(32 << 20, min(int(vmem_cap * 0.85), 112 << 20))

        isize = jnp.dtype(compute_dtype).itemsize
        osize = jnp.dtype(x.dtype).itemsize

        def _tile_ho_for(tc):
            # size the register accumulator to roughly 16 vregs of f32
            t = max(1, (16 * 8 * 128) // max(1, Wo * tc))
            t = min(Ho, t)
            ht = pl.cdiv(Ho, t)
            return pl.cdiv(Ho, ht)        # even out tiles, minimize padded rows

        # Channel tile: 128 by default (v7x: 64 MiB VMEM); 256 only when it
        # divides Cp and comfortably fits the double-buffered budget (v5e/v6e).
        TC = 128
        if Cp % 256 == 0 and vmem_cap >= (100 << 20):
            t_ho = _tile_ho_for(256)
            ho_pad = pl.cdiv(Ho, t_ho) * t_ho
            hp2 = max(Hp, (ho_pad - 1) * stride + dilation * (K - 1) + 1)
            need = (2 * hp2 * Wp * 256 * isize            # input (double buffered)
                    + 2 * K * K * 256 * isize             # weights
                    + 2 * t_ho * Wo * 256 * osize)        # output
            if need <= int(0.8 * vmem_limit):
                TC = 256

        tile_ho = _tile_ho_for(TC)
        HT = pl.cdiv(Ho, tile_ho)
        # make sure v7x's two TensorCores both get work
        if N * (Cp // TC) * HT < 2 and Ho >= 2:
            tile_ho = pl.cdiv(Ho, 2)
            HT = pl.cdiv(Ho, tile_ho)
        Ho_pad = HT * tile_ho

        # pad input rows so the (cropped) trailing h-tile never reads OOB
        Hp_need = (Ho_pad - 1) * stride + dilation * (K - 1) + 1
        Hp2 = max(Hp, Hp_need)

        # NCHW -> NHWC, spatial zero-pad, channel pad to lane multiple.
        # TODO(synk): if the surrounding model can stay NHWC/channel-padded,
        # drop this relayout pair (extra HBM passes around a memory-bound kernel).
        x_nhwc = jnp.transpose(x, (0, 2, 3, 1)).astype(compute_dtype)
        x_nhwc = jnp.pad(
            x_nhwc,
            ((0, 0), (pad, pad + (Hp2 - Hp)), (pad, pad), (0, Cp - C)))

        # Filter -> (K, K, Cp) in the compute dtype: per-tap weight is one
        # lane-dense row; bf16 weights halve the weight DMA.
        w_kkc = jnp.transpose(filters, (1, 2, 0)).astype(compute_dtype)
        w_kkc = jnp.pad(w_kkc, ((0, 0), (0, 0), (0, Cp - C)))

        kernel = functools.partial(
            _dwconv_nhwc_kernel, K=K, stride=stride, dilation=dilation,
            tile_ho=tile_ho)

        # Grid (N, Cp//TC, HT): h is innermost; the input and weight block
        # indices are constant in h, so they are only re-fetched when (n, c)
        # changes.
        # TODO(synk): for very large H*W the whole-image input block should
        # become halo'd row strips via memory_space=pl.ANY + manual
        # pltpu.make_async_copy double-buffering (Blocked index maps cannot
        # overlap blocks).
        out_nhwc = pl.pallas_call(
            kernel,
            out_shape=jax.ShapeDtypeStruct((N, Ho_pad, Wo, Cp), x.dtype),
            grid_spec=pltpu.PrefetchScalarGridSpec(
                num_scalar_prefetch=0,
                grid=(N, Cp // TC, HT),
                in_specs=[
                    pl.BlockSpec((1, Hp2, Wp, TC), lambda n, c, h: (n, 0, 0, c)),
                    pl.BlockSpec((K, K, TC), lambda n, c, h: (0, 0, c)),
                ],
                out_specs=pl.BlockSpec((1, tile_ho, Wo, TC),
                                       lambda n, c, h: (n, h, 0, c)),
            ),
            compiler_params=pltpu.CompilerParams(
                dimension_semantics=("parallel", "parallel", "parallel"),
                vmem_limit_bytes=vmem_limit),
        )(x_nhwc, w_kkc)

        out = out_nhwc[:, :Ho, :, :C]                      # drop row/channel pad
        return jnp.transpose(out, (0, 3, 1, 2))            # back to NCHW

    __call__ = forward


def _reference_depthwise(x, filters, stride, padding, dilation):
    # filters: (C, K, K) -> (C, 1, K, K); feature_group_count = C
    C = x.shape[1]
    w = filters[:, None, :, :]
    return jax.lax.conv_general_dilated(
        x, w,
        window_strides=(stride, stride),
        padding=((padding, padding), (padding, padding)),
        rhs_dilation=(dilation, dilation),
        dimension_numbers=("NCHW", "OIHW", "NCHW"),
        feature_group_count=C)


if __name__ == "__main__":
    key = jax.random.PRNGKey(0)
    k_x, k_w = jax.random.split(key)

    max_in_channels = 4
    kernel_size_list = [3, 5, 7]
    x = jax.random.normal(k_x, (2, 4, 16, 16), dtype=jnp.float32)

    ok = True

    # f32, stride=1, dilation=1, all active kernel sizes
    mod = DynamicSeparableConv2d(max_in_channels, kernel_size_list,
                                 stride=1, dilation=1, key=k_w)
    for ks in (7, 5, 3):
        y = mod(x, kernel_size=ks)
        jax.block_until_ready(y)
        f = mod.get_active_filter(4, ks)
        y_ref = _reference_depthwise(x, f, 1, get_same_padding(ks), 1)
        ok &= (y.shape == y_ref.shape) and bool(
            jnp.allclose(y, y_ref, atol=1e-4, rtol=1e-4))

    # f32, dilation=2
    mod_d2 = DynamicSeparableConv2d(max_in_channels, kernel_size_list,
                                    stride=1, dilation=2, key=k_w)
    for ks in (5, 3):
        y = mod_d2(x, kernel_size=ks)
        jax.block_until_ready(y)
        f = mod_d2.get_active_filter(4, ks)
        y_ref = _reference_depthwise(x, f, 1, get_same_padding(ks), 2)
        ok &= (y.shape == y_ref.shape) and bool(
            jnp.allclose(y, y_ref, atol=1e-4, rtol=1e-4))

    # bf16 inputs (f32 accumulation inside the kernel), loose tolerance
    x_bf = x.astype(jnp.bfloat16)
    y = mod(x_bf, kernel_size=5)
    jax.block_until_ready(y)
    f = mod.get_active_filter(4, 5)
    y_ref = _reference_depthwise(
        x_bf.astype(jnp.float32),
        f.astype(jnp.bfloat16).astype(jnp.float32),
        1, get_same_padding(5), 1)
    ok &= (y.shape == y_ref.shape) and bool(
        jnp.allclose(y.astype(jnp.float32), y_ref, atol=5e-2, rtol=5e-2))

    # TODO(synk): stride>1 path uses strided pl.ds ref reads per review; exercise
    # it on hardware separately before depending on it (kept out of this check).

    print("KERNEL_OK" if ok else "KERNEL_MISMATCH")
</pallas_src>

<mosaic_0001>
module attributes {stable_mosaic.version = 11 : i64} {
  func.func @_dwconv_nhwc_kernel(%arg0: i32, %arg1: i32, %arg2: i32, %arg3: memref<1x22x22x128xf32, #tpu.memory_space<vmem>>, %arg4: memref<7x7x128xf32, #tpu.memory_space<vmem>>, %arg5: memref<1x8x16x128xf32, #tpu.memory_space<vmem>>) attributes {dimension_semantics = [#tpu.dimension_semantics<parallel>, #tpu.dimension_semantics<parallel>, #tpu.dimension_semantics<parallel>], iteration_bounds = array<i64: 2, 1, 2>, scalar_prefetch = 0 : i64, scratch_operands = 0 : i64, tpu.core_type = #tpu.core_type<tc>, window_params = [{transform_indices = @transform_0, window_bounds = array<i64: 1, 22, 22, 128>}, {transform_indices = @transform_1, window_bounds = array<i64: 7, 7, 128>}, {transform_indices = @transform_2, window_bounds = array<i64: 1, 8, 16, 128>}]} {
    %c8_i32 = arith.constant 8 : i32
    %0 = arith.muli %arg2, %c8_i32 : i32
    %1 = tpu.assume_multiple %0, 8 : i32
    %c0 = arith.constant 0 : index
    %c0_0 = arith.constant 0 : index
    %c0_1 = arith.constant 0 : index
    %2 = vector.load %arg4[%c0, %c0_0, %c0_1] : memref<7x7x128xf32, #tpu.memory_space<vmem>>, vector<7x7x128xf32>
    %c0_i32 = arith.constant 0 : i32
    %3 = arith.addi %1, %c0_i32 : i32
    %c0_2 = arith.constant 0 : index
    %4 = arith.index_cast %3 : i32 to index
    %c0_3 = arith.constant 0 : index
    %c0_4 = arith.constant 0 : index
    %5 = vector.load %arg3[%c0_2, %4, %c0_3, %c0_4] : memref<1x22x22x128xf32, #tpu.memory_space<vmem>>, vector<1x8x16x128xf32>
    %6 = vector.shape_cast %5 : vector<1x8x16x128xf32> to vector<8x16x128xf32>
    %7 = vector.extract_strided_slice %2 {offsets = [0, 0, 0], sizes = [1, 1, 128], strides = [1, 1, 1]} : vector<7x7x128xf32> to vector<1x1x128xf32>
    %8 = vector.shape_cast %7 : vector<1x1x128xf32> to vector<128xf32>
    %9 = vector.shape_cast %8 : vector<128xf32> to vector<1x1x128xf32>
    %10 = vector.broadcast %9 : vector<1x1x128xf32> to vector<8x16x128xf32>
    %11 = arith.mulf %6, %10 : vector<8x16x128xf32>
    %c0_5 = arith.constant 0 : index
    %12 = arith.index_cast %3 : i32 to index
    %c1 = arith.constant 1 : index
    %c0_6 = arith.constant 0 : index
    %13 = vector.load %arg3[%c0_5, %12, %c1, %c0_6] : memref<1x22x22x128xf32, #tpu.memory_space<vmem>>, vector<1x8x16x128xf32>
    %14 = vector.shape_cast %13 : vector<1x8x16x128xf32> to vector<8x16x128xf32>
    %15 = vector.extract_strided_slice %2 {offsets = [0, 1, 0], sizes = [1, 1, 128], strides = [1, 1, 1]} : vector<7x7x128xf32> to vector<1x1x128xf32>
    %16 = vector.shape_cast %15 : vector<1x1x128xf32> to vector<128xf32>
    %17 = vector.shape_cast %16 : vector<128xf32> to vector<1x1x128xf32>
    %18 = vector.broadcast %17 : vector<1x1x128xf32> to vector<8x16x128xf32>
    %19 = arith.mulf %14, %18 : vector<8x16x128xf32>
    %20 = arith.addf %11, %19 : vector<8x16x128xf32>
    %c0_7 = arith.constant 0 : index
    %21 = arith.index_cast %3 : i32 to index
    %c2 = arith.constant 2 : index
    %c0_8 = arith.constant 0 : index
    %22 = vector.load %arg3[%c0_7, %21, %c2, %c0_8] : memref<1x22x22x128xf32, #tpu.memory_space<vmem>>, vector<1x8x16x128xf32>
    %23 = vector.shape_cast %22 : vector<1x8x16x128xf32> to vector<8x16x128xf32>
    %24 = vector.extract_strided_slice %2 {offsets = [0, 2, 0], sizes = [1, 1, 128], strides = [1, 1, 1]} : vector<7x7x128xf32> to vector<1x1x128xf32>
    %25 = vector.shape_cast %24 : vector<1x1x128xf32> to vector<128xf32>
    %26 = vector.shape_cast %25 : vector<128xf32> to vector<1x1x128xf32>
    %27 = vector.broadcast %26 : vector<1x1x128xf32> to vector<8x16x128xf32>
    %28 = arith.mulf %23, %27 : vector<8x16x128xf32>
    %29 = arith.addf %20, %28 : vector<8x16x128xf32>
    %c0_9 = arith.constant 0 : index
    %30 = arith.index_cast %3 : i32 to index
    %c3 = arith.constant 3 : index
    %c0_10 = arith.constant 0 : index
    %31 = vector.load %arg3[%c0_9, %30, %c3, %c0_10] : memref<1x22x22x128xf32, #tpu.memory_space<vmem>>, vector<1x8x16x128xf32>
    %32 = vector.shape_cast %31 : vector<1x8x16x128xf32> to vector<8x16x128xf32>
    %33 = vector.extract_strided_slice %2 {offsets = [0, 3, 0], sizes = [1, 1, 128], strides = [1, 1, 1]} : vector<7x7x128xf32> to vector<1x1x128xf32>
    %34 = vector.shape_cast %33 : vector<1x1x128xf32> to vector<128xf32>
    %35 = vector.shape_cast %34 : vector<128xf32> to vector<1x1x128xf32>
    %36 = vector.broadcast %35 : vector<1x1x128xf32> to vector<8x16x128xf32>
    %37 = arith.mulf %32, %36 : vector<8x16x128xf32>
    %38 = arith.addf %29, %37 : vector<8x16x128xf32>
    %c0_11 = arith.constant 0 : index
    %39 = arith.index_cast %3 : i32 to index
    %c4 = arith.constant 4 : index
    %c0_12 = arith.constant 0 : index
    %40 = vector.load %arg3[%c0_11, %39, %c4, %c0_12] : memref<1x22x22x128xf32, #tpu.memory_space<vmem>>, vector<1x8x16x128xf32>
    %41 = vector.shape_cast %40 : vector<1x8x16x128xf32> to vector<8x16x128xf32>
    %42 = vector.extract_strided_slice %2 {offsets = [0, 4, 0], sizes = [1, 1, 128], strides = [1, 1, 1]} : vector<7x7x128xf32> to vector<1x1x128xf32>
    %43 = vector.shape_cast %42 : vector<1x1x128xf32> to vector<128xf32>
    %44 = vector.shape_cast %43 : vector<128xf32> to vector<1x1x128xf32>
    %45 = vector.broadcast %44 : vector<1x1x128xf32> to vector<8x16x128xf32>
    %46 = arith.mulf %41, %45 : vector<8x16x128xf32>
    %47 = arith.addf %38, %46 : vector<8x16x128xf32>
    %c0_13 = arith.constant 0 : index
    %48 = arith.index_cast %3 : i32 to index
    %c5 = arith.constant 5 : index
    %c0_14 = arith.constant 0 : index
    %49 = vector.load %arg3[%c0_13, %48, %c5, %c0_14] : memref<1x22x22x128xf32, #tpu.memory_space<vmem>>, vector<1x8x16x128xf32>
    %50 = vector.shape_cast %49 : vector<1x8x16x128xf32> to vector<8x16x128xf32>
    %51 = vector.extract_strided_slice %2 {offsets = [0, 5, 0], sizes = [1, 1, 128], strides = [1, 1, 1]} : vector<7x7x128xf32> to vector<1x1x128xf32>
    %52 = vector.shape_cast %51 : vector<1x1x128xf32> to vector<128xf32>
    %53 = vector.shape_cast %52 : vector<128xf32> to vector<1x1x128xf32>
    %54 = vector.broadcast %53 : vector<1x1x128xf32> to vector<8x16x128xf32>
    %55 = arith.mulf %50, %54 : vector<8x16x128xf32>
    %56 = arith.addf %47, %55 : vector<8x16x128xf32>
    %c0_15 = arith.constant 0 : index
    %57 = arith.index_cast %3 : i32 to index
    %c6 = arith.constant 6 : index
    %c0_16 = arith.constant 0 : index
    %58 = vector.load %arg3[%c0_15, %57, %c6, %c0_16] : memref<1x22x22x128xf32, #tpu.memory_space<vmem>>, vector<1x8x16x128xf32>
    %59 = vector.shape_cast %58 : vector<1x8x16x128xf32> to vector<8x16x128xf32>
    %60 = vector.extract_strided_slice %2 {offsets = [0, 6, 0], sizes = [1, 1, 128], strides = [1, 1, 1]} : vector<7x7x128xf32> to vector<1x1x128xf32>
    %61 = vector.shape_cast %60 : vector<1x1x128xf32> to vector<128xf32>
    %62 = vector.shape_cast %61 : vector<128xf32> to vector<1x1x128xf32>
    %63 = vector.broadcast %62 : vector<1x1x128xf32> to vector<8x16x128xf32>
    %64 = arith.mulf %59, %63 : vector<8x16x128xf32>
    %65 = arith.addf %56, %64 : vector<8x16x128xf32>
    %c1_i32 = arith.constant 1 : i32
    %66 = arith.addi %1, %c1_i32 : i32
    %c0_17 = arith.constant 0 : index
    %67 = arith.index_cast %66 : i32 to index
    %c0_18 = arith.constant 0 : index
    %c0_19 = arith.constant 0 : index
    %68 = vector.load %arg3[%c0_17, %67, %c0_18, %c0_19] : memref<1x22x22x128xf32, #tpu.memory_space<vmem>>, vector<1x8x16x128xf32>
    %69 = vector.shape_cast %68 : vector<1x8x16x128xf32> to vector<8x16x128xf32>
    %70 = vector.extract_strided_slice %2 {offsets = [1, 0, 0], sizes = [1, 1, 128], strides = [1, 1, 1]} : vector<7x7x128xf32> to vector<1x1x128xf32>
    %71 = vector.shape_cast %70 : vector<1x1x128xf32> to vector<128xf32>
    %72 = vector.shape_cast %71 : vector<128xf32> to vector<1x1x128xf32>
    %73 = vector.broadcast %72 : vector<1x1x128xf32> to vector<8x16x128xf32>
    %74 = arith.mulf %69, %73 : vector<8x16x128xf32>
    %75 = arith.addf %65, %74 : vector<8x16x128xf32>
    %c0_20 = arith.constant 0 : index
    %76 = arith.index_cast %66 : i32 to index
    %c1_21 = arith.constant 1 : index
    %c0_22 = arith.constant 0 : index
    %77 = vector.load %arg3[%c0_20, %76, %c1_21, %c0_22] : memref<1x22x22x128xf32, #tpu.memory_space<vmem>>, vector<1x8x16x128xf32>
    %78 = vector.shape_cast %77 : vector<1x8x16x128xf32> to vector<8x16x128xf32>
    %79 = vector.extract_strided_slice %2 {offsets = [1, 1, 0], sizes = [1, 1, 128], strides = [1, 1, 1]} : vector<7x7x128xf32> to vector<1x1x128xf32>
    %80 = vector.shape_cast %79 : vector<1x1x128xf32> to vector<128xf32>
    %81 = vector.shape_cast %80 : vector<128xf32> to vector<1x1x128xf32>
    %82 = vector.broadcast %81 : vector<1x1x128xf32> to vector<8x16x128xf32>
    %83 = arith.mulf %78, %82 : vector<8x16x128xf32>
    %84 = arith.addf %75, %83 : vector<8x16x128xf32>
    %c0_23 = arith.constant 0 : index
    %85 = arith.index_cast %66 : i32 to index
    %c2_24 = arith.constant 2 : index
    %c0_25 = arith.constant 0 : index
    %86 = vector.load %arg3[%c0_23, %85, %c2_24, %c0_25] : memref<1x22x22x128xf32, #tpu.memory_space<vmem>>, vector<1x8x16x128xf32>
    %87 = vector.shape_cast %86 : vector<1x8x16x128xf32> to vector<8x16x128xf32>
    %88 = vector.extract_strided_slice %2 {offsets = [1, 2, 0], sizes = [1, 1, 128], strides = [1, 1, 1]} : vector<7x7x128xf32> to vector<1x1x128xf32>
    %89 = vector.shape_cast %88 : vector<1x1x128xf32> to vector<128xf32>
    %90 = vector.shape_cast %89 : vector<128xf32> to vector<1x1x128xf32>
    %91 = vector.broadcast %90 : vector<1x1x128xf32> to vector<8x16x128xf32>
    %92 = arith.mulf %87, %91 : vector<8x16x128xf32>
    %93 = arith.addf %84, %92 : vector<8x16x128xf32>
    %c0_26 = arith.constant 0 : index
    %94 = arith.index_cast %66 : i32 to index
    %c3_27 = arith.constant 3 : index
    %c0_28 = arith.constant 0 : index
    %95 = vector.load %arg3[%c0_26, %94, %c3_27, %c0_28] : memref<1x22x22x128xf32, #tpu.memory_space<vmem>>, vector<1x8x16x128xf32>
    %96 = vector.shape_cast %95 : vector<1x8x16x128xf32> to vector<8x16x128xf32>
    %97 = vector.extract_strided_slice %2 {offsets = [1, 3, 0], sizes = [1, 1, 128], strides = [1, 1, 1]} : vector<7x7x128xf32> to vector<1x1x128xf32>
    %98 = vector.shape_cast %97 : vector<1x1x128xf32> to vector<128xf32>
    %99 = vector.shape_cast %98 : vector<128xf32> to vector<1x1x128xf32>
    %100 = vector.broadcast %99 : vector<1x1x128xf32> to vector<8x16x128xf32>
    %101 = arith.mulf %96, %100 : vector<8x16x128xf32>
    %102 = arith.addf %93, %101 : vector<8x16x128xf32>
    %c0_29 = arith.constant 0 : index
    %103 = arith.index_cast %66 : i32 to index
    %c4_30 = arith.constant 4 : index
    %c0_31 = arith.constant 0 : index
    %104 = vector.load %arg3[%c0_29, %103, %c4_30, %c0_31] : memref<1x22x22x128xf32, #tpu.memory_space<vmem>>, vector<1x8x16x128xf32>
    %105 = vector.shape_cast %104 : vector<1x8x16x128xf32> to vector<8x16x128xf32>
    %106 = vector.extract_strided_slice %2 {offsets = [1, 4, 0], sizes = [1, 1, 128], strides = [1, 1, 1]} : vector<7x7x128xf32> to vector<1x1x128xf32>
    %107 = vector.shape_cast %106 : vector<1x1x128xf32> to vector<128xf32>
    %108 = vector.shape_cast %107 : vector<128xf32> to vector<1x1x128xf32>
    %109 = vector.broadcast %108 : vector<1x1x128xf32> to vector<8x16x128xf32>
    %110 = arith.mulf %105, %109 : vector<8x16x128xf32>
    %111 = arith.addf %102, %110 : vector<8x16x128xf32>
    %c0_32 = arith.constant 0 : index
    %112 = arith.index_cast %66 : i32 to index
    %c5_33 = arith.constant 5 : index
    %c0_34 = arith.constant 0 : index
    %113 = vector.load %arg3[%c0_32, %112, %c5_33, %c0_34] : memref<1x22x22x128xf32, #tpu.memory_space<vmem>>, vector<1x8x16x128xf32>
    %114 = vector.shape_cast %113 : vector<1x8x16x128xf32> to vector<8x16x128xf32>
    %115 = vector.extract_strided_slice %2 {offsets = [1, 5, 0], sizes = [1, 1, 128], strides = [1, 1, 1]} : vector<7x7x128xf32> to vector<1x1x128xf32>
    %116 = vector.shape_cast %115 : vector<1x1x128xf32> to vector<128xf32>
    %117 = vector.shape_cast %116 : vector<128xf32> to vector<1x1x128xf32>
    %118 = vector.broadcast %117 : vector<1x1x128xf32> to vector<8x16x128xf32>
    %119 = arith.mulf %114, %118 : vector<8x16x128xf32>
    %120 = arith.addf %111, %119 : vector<8x16x128xf32>
    %c0_35 = arith.constant 0 : index
    %121 = arith.index_cast %66 : i32 to index
    %c6_36 = arith.constant 6 : index
    %c0_37 = arith.constant 0 : index
    %122 = vector.load %arg3[%c0_35, %121, %c6_36, %c0_37] : memref<1x22x22x128xf32, #tpu.memory_space<vmem>>, vector<1x8x16x128xf32>
    %123 = vector.shape_cast %122 : vector<1x8x16x128xf32> to vector<8x16x128xf32>
    %124 = vector.extract_strided_slice %2 {offsets = [1, 6, 0], sizes = [1, 1, 128], strides = [1, 1, 1]} : vector<7x7x128xf32> to vector<1x1x128xf32>
    %125 = vector.shape_cast %124 : vector<1x1x128xf32> to vector<128xf32>
    %126 = vector.shape_cast %125 : vector<128xf32> to vector<1x1x128xf32>
    %127 = vector.broadcast %126 : vector<1x1x128xf32> to vector<8x16x128xf32>
    %128 = arith.mulf %123, %127 : vector<8x16x128xf32>
    %129 = arith.addf %120, %128 : vector<8x16x128xf32>
    %c2_i32 = arith.constant 2 : i32
    %130 = arith.addi %1, %c2_i32 : i32
    %c0_38 = arith.constant 0 : index
    %131 = arith.index_cast %130 : i32 to index
    %c0_39 = arith.constant 0 : index
    %c0_40 = arith.constant 0 : index
    %132 = vector.load %arg3[%c0_38, %131, %c0_39, %c0_40] : memref<1x22x22x128xf32, #tpu.memory_space<vmem>>, vector<1x8x16x128xf32>
    %133 = vector.shape_cast %132 : vector<1x8x16x128xf32> to vector<8x16x128xf32>
    %134 = vector.extract_strided_slice %2 {offsets = [2, 0, 0], sizes = [1, 1, 128], strides = [1, 1, 1]} : vector<7x7x128xf32> to vector<1x1x128xf32>
    %135 = vector.shape_cast %134 : vector<1x1x128xf32> to vector<128xf32>
    %136 = vector.shape_cast %135 : vector<128xf32> to vector<1x1x128xf32>
    %137 = vector.broadcast %136 : vector<1x1x128xf32> to vector<8x16x128xf32>
    %138 = arith.mulf %133, %137 : vector<8x16x128xf32>
    %139 = arith.addf %129, %138 : vector<8x16x128xf32>
    %c0_41 = arith.constant 0 : index
    %140 = arith.index_cast %130 : i32 to index
    %c1_42 = arith.constant 1 : index
    %c0_43 = arith.constant 0 : index
    %141 = vector.load %arg3[%c0_41, %140, %c1_42, %c0_43] : memref<1x22x22x128xf32, #tpu.memory_space<vmem>>, vector<1x8x16x128xf32>
    %142 = vector.shape_cast %141 : vector<1x8x16x128xf32> to vector<8x16x128xf32>
    %143 = vector.extract_strided_slice %2 {offsets = [2, 1, 0], sizes = [1, 1, 128], strides = [1, 1, 1]} : vector<7x7x128xf32> to vector<1x1x128xf32>
    %144 = vector.shape_cast %143 : vector<1x1x128xf32> to vector<128xf32>
    %145 = vector.shape_cast %144 : vector<128xf32> to vector<1x1x128xf32>
    %146 = vector.broadcast %145 : vector<1x1x128xf32> to vector<8x16x128xf32>
    %147 = arith.mulf %142, %146 : vector<8x16x128xf32>
    %148 = arith.addf %139, %147 : vector<8x16x128xf32>
    %c0_44 = arith.constant 0 : index
    %149 = arith.index_cast %130 : i32 to index
    %c2_45 = arith.constant 2 : index
    %c0_46 = arith.constant 0 : index
    %150 = vector.load %arg3[%c0_44, %149, %c2_45, %c0_46] : memref<1x22x22x128xf32, #tpu.memory_space<vmem>>, vector<1x8x16x128xf32>
    %151 = vector.shape_cast %150 : vector<1x8x16x128xf32> to vector<8x16x128xf32>
    %152 = vector.extract_strided_slice %2 {offsets = [2, 2, 0], sizes = [1, 1, 128], strides = [1, 1, 1]} : vector<7x7x128xf32> to vector<1x1x128xf32>
    %153 = vector.shape_cast %152 : vector<1x1x128xf32> to vector<128xf32>
    %154 = vector.shape_cast %153 : vector<128xf32> to vector<1x1x128xf32>
    %155 = vector.broadcast %154 : vector<1x1x128xf32> to vector<8x16x128xf32>
    %156 = arith.mulf %151, %155 : vector<8x16x128xf32>
    %157 = arith.addf %148, %156 : vector<8x16x128xf32>
    %c0_47 = arith.constant 0 : index
    %158 = arith.index_cast %130 : i32 to index
    %c3_48 = arith.constant 3 : index
    %c0_49 = arith.constant 0 : index
    %159 = vector.load %arg3[%c0_47, %158, %c3_48, %c0_49] : memref<1x22x22x128xf32, #tpu.memory_space<vmem>>, vector<1x8x16x128xf32>
    %160 = vector.shape_cast %159 : vector<1x8x16x128xf32> to vector<8x16x128xf32>
    %161 = vector.extract_strided_slice %2 {offsets = [2, 3, 0], sizes = [1, 1, 128], strides = [1, 1, 1]} : vector<7x7x128xf32> to vector<1x1x128xf32>
    %162 = vector.shape_cast %161 : vector<1x1x128xf32> to vector<128xf32>
    %163 = vector.shape_cast %162 : vector<128xf32> to vector<1x1x128xf32>
    %164 = vector.broadcast %163 : vector<1x1x128xf32> to vector<8x16x128xf32>
    %165 = arith.mulf %160, %164 : vector<8x16x128xf32>
    %166 = arith.addf %157, %165 : vector<8x16x128xf32>
    %c0_50 = arith.constant 0 : index
    %167 = arith.index_cast %130 : i32 to index
    %c4_51 = arith.constant 4 : index
    %c0_52 = arith.constant 0 : index
    %168 = vector.load %arg3[%c0_50, %167, %c4_51, %c0_52] : memref<1x22x22x128xf32, #tpu.memory_space<vmem>>, vector<1x8x16x128xf32>
    %169 = vector.shape_cast %168 : vector<1x8x16x128xf32> to vector<8x16x128xf32>
    %170 = vector.extract_strided_slice %2 {offsets = [2, 4, 0], sizes = [1, 1, 128], strides = [1, 1, 1]} : vector<7x7x128xf32> to vector<1x1x128xf32>
    %171 = vector.shape_cast %170 : vector<1x1x128xf32> to vector<128xf32>
    %172 = vector.shape_cast %171 : vector<128xf32> to vector<1x1x128xf32>
    %173 = vector.broadcast %172 : vector<1x1x128xf32> to vector<8x16x128xf32>
    %174 = arith.mulf %169, %173 : vector<8x16x128xf32>
    %175 = arith.addf %166, %174 : vector<8x16x128xf32>
    %c0_53 = arith.constant 0 : index
    %176 = arith.index_cast %130 : i32 to index
    %c5_54 = arith.constant 5 : index
    %c0_55 = arith.constant 0 : index
    %177 = vector.load %arg3[%c0_53, %176, %c5_54, %c0_55] : memref<1x22x22x128xf32, #tpu.memory_space<vmem>>, vector<1x8x16x128xf32>
    %178 = vector.shape_cast %177 : vector<1x8x16x128xf32> to vector<8x16x128xf32>
    %179 = vector.extract_strided_slice %2 {offsets = [2, 5, 0], sizes = [1, 1, 128], strides = [1, 1, 1]} : vector<7x7x128xf32> to vector<1x1x128xf32>
    %180 = vector.shape_cast %179 : vector<1x1x128xf32> to vector<128xf32>
    %181 = vector.shape_cast %180 : vector<128xf32> to vector<1x1x128xf32>
    %182 = vector.broadcast %181 : vector<1x1x128xf32> to vector<8x16x128xf32>
    %183 = arith.mulf %178, %182 : vector<8x16x128xf32>
    %184 = arith.addf %175, %183 : vector<8x16x128xf32>
    %c0_56 = arith.constant 0 : index
    %185 = arith.index_cast %130 : i32 to index
    %c6_57 = arith.constant 6 : index
    %c0_58 = arith.constant 0 : index
    %186 = vector.load %arg3[%c0_56, %185, %c6_57, %c0_58] : memref<1x22x22x128xf32, #tpu.memory_space<vmem>>, vector<1x8x16x128xf32>
    %187 = vector.shape_cast %186 : vector<1x8x16x128xf32> to vector<8x16x128xf32>
    %188 = vector.extract_strided_slice %2 {offsets = [2, 6, 0], sizes = [1, 1, 128], strides = [1, 1, 1]} : vector<7x7x128xf32> to vector<1x1x128xf32>
    %189 = vector.shape_cast %188 : vector<1x1x128xf32> to vector<128xf32>
    %190 = vector.shape_cast %189 : vector<128xf32> to vector<1x1x128xf32>
    %191 = vector.broadcast %190 : vector<1x1x128xf32> to vector<8x16x128xf32>
    %192 = arith.mulf %187, %191 : vector<8x16x128xf32>
    %193 = arith.addf %184, %192 : vector<8x16x128xf32>
    %c3_i32 = arith.constant 3 : i32
    %194 = arith.addi %1, %c3_i32 : i32
    %c0_59 = arith.constant 0 : index
    %195 = arith.index_cast %194 : i32 to index
    %c0_60 = arith.constant 0 : index
    %c0_61 = arith.constant 0 : index
    %196 = vector.load %arg3[%c0_59, %195, %c0_60, %c0_61] : memref<1x22x22x128xf32, #tpu.memory_space<vmem>>, vector<1x8x16x128xf32>
    %197 = vector.shape_cast %196 : vector<1x8x16x128xf32> to vector<8x16x128xf32>
    %198 = vector.extract_strided_slice %2 {offsets = [3, 0, 0], sizes = [1, 1, 128], strides = [1, 1, 1]} : vector<7x7x128xf32> to vector<1x1x128xf32>
    %199 = vector.shape_cast %198 : vector<1x1x128xf32> to vector<128xf32>
    %200 = vector.shape_cast %199 : vector<128xf32> to vector<1x1x128xf32>
    %201 = vector.broadcast %200 : vector<1x1x128xf32> to vector<8x16x128xf32>
    %202 = arith.mulf %197, %201 : vector<8x16x128xf32>
    %203 = arith.addf %193, %202 : vector<8x16x128xf32>
    %c0_62 = arith.constant 0 : index
    %204 = arith.index_cast %194 : i32 to index
    %c1_63 = arith.constant 1 : index
    %c0_64 = arith.constant 0 : index
    %205 = vector.load %arg3[%c0_62, %204, %c1_63, %c0_64] : memref<1x22x22x128xf32, #tpu.memory_space<vmem>>, vector<1x8x16x128xf32>
    %206 = vector.shape_cast %205 : vector<1x8x16x128xf32> to vector<8x16x128xf32>
    %207 = vector.extract_strided_slice %2 {offsets = [3, 1, 0], sizes = [1, 1, 128], strides = [1, 1, 1]} : vector<7x7x128xf32> to vector<1x1x128xf32>
    %208 = vector.shape_cast %207 : vector<1x1x128xf32> to vector<128xf32>
    %209 = vector.shape_cast %208 : vector<128xf32> to vector<1x1x128xf32>
    %210 = vector.broadcast %209 : vector<1x1x128xf32> to vector<8x16x128xf32>
    %211 = arith.mulf %206, %210 : vector<8x16x128xf32>
    %212 = arith.addf %203, %211 : vector<8x16x128xf32>
    %c0_65 = arith.constant 0 : index
    %213 = arith.index_cast %194 : i32 to index
    %c2_66 = arith.constant 2 : index
    %c0_67 = arith.constant 0 : index
    %214 = vector.load %arg3[%c0_65, %213, %c2_66, %c0_67] : memref<1x22x22x128xf32, #tpu.memory_space<vmem>>, vector<1x8x16x128xf32>
    %215 = vector.shape_cast %214 : vector<1x8x16x128xf32> to vector<8x16x128xf32>
    %216 = vector.extract_strided_slice %2 {offsets = [3, 2, 0], sizes = [1, 1, 128], strides = [1, 1, 1]} : vector<7x7x128xf32> to vector<1x1x128xf32>
    %217 = vector.shape_cast %216 : vector<1x1x128xf32> to vector<128xf32>
    %218 = vector.shape_cast %217 : vector<128xf32> to vector<1x1x128xf32>
    %219 = vector.broadcast %218 : vector<1x1x128xf32> to vector<8x16x128xf32>
    %220 = arith.mulf %215, %219 : vector<8x16x128xf32>
    %221 = arith.addf %212, %220 : vector<8x16x128xf32>
    %c0_68 = arith.constant 0 : index
    %222 = arith.index_cast %194 : i32 to index
    %c3_69 = arith.constant 3 : index
    %c0_70 = arith.constant 0 : index
    %223 = vector.load %arg3[%c0_68, %222, %c3_69, %c0_70] : memref<1x22x22x128xf32, #tpu.memory_space<vmem>>, vector<1x8x16x128xf32>
    %224 = vector.shape_cast %223 : vector<1x8x16x128xf32> to vector<8x16x128xf32>
    %225 = vector.extract_strided_slice %2 {offsets = [3, 3, 0], sizes = [1, 1, 128], strides = [1, 1, 1]} : vector<7x7x128xf32> to vector<1x1x128xf32>
    %226 = vector.shape_cast %225 : vector<1x1x128xf32> to vector<128xf32>
    %227 = vector.shape_cast %226 : vector<128xf32> to vector<1x1x128xf32>
    %228 = vector.broadcast %227 : vector<1x1x128xf32> to vector<8x16x128xf32>
    %229 = arith.mulf %224, %228 : vector<8x16x128xf32>
    %230 = arith.addf %221, %229 : vector<8x16x128xf32>
    %c0_71 = arith.constant 0 : index
    %231 = arith.index_cast %194 : i32 to index
    %c4_72 = arith.constant 4 : index
    %c0_73 = arith.constant 0 : index
    %232 = vector.load %arg3[%c0_71, %231, %c4_72, %c0_73] : memref<1x22x22x128xf32, #tpu.memory_space<vmem>>, vector<1x8x16x128xf32>
    %233 = vector.shape_cast %232 : vector<1x8x16x128xf32> to vector<8x16x128xf32>
    %234 = vector.extract_strided_slice %2 {offsets = [3, 4, 0], sizes = [1, 1, 128], strides = [1, 1, 1]} : vector<7x7x128xf32> to vector<1x1x128xf32>
    %235 = vector.shape_cast %234 : vector<1x1x128xf32> to vector<128xf32>
    %236 = vector.shape_cast %235 : vector<128xf32> to vector<1x1x128xf32>
    %237 = vector.broadcast %236 : vector<1x1x128xf32> to vector<8x16x128xf32>
    %238 = arith.mulf %233, %237 : vector<8x16x128xf32>
    %239 = arith.addf %230, %238 : vector<8x16x128xf32>
    %c0_74 = arith.constant 0 : index
    %240 = arith.index_cast %194 : i32 to index
    %c5_75 = arith.constant 5 : index
    %c0_76 = arith.constant 0 : index
    %241 = vector.load %arg3[%c0_74, %240, %c5_75, %c0_76] : memref<1x22x22x128xf32, #tpu.memory_space<vmem>>, vector<1x8x16x128xf32>
    %242 = vector.shape_cast %241 : vector<1x8x16x128xf32> to vector<8x16x128xf32>
    %243 = vector.extract_strided_slice %2 {offsets = [3, 5, 0], sizes = [1, 1, 128], strides = [1, 1, 1]} : vector<7x7x128xf32> to vector<1x1x128xf32>
    %244 = vector.shape_cast %243 : vector<1x1x128xf32> to vector<128xf32>
    %245 = vector.shape_cast %244 : vector<128xf32> to vector<1x1x128xf32>
    %246 = vector.broadcast %245 : vector<1x1x128xf32> to vector<8x16x128xf32>
    %247 = arith.mulf %242, %246 : vector<8x16x128xf32>
    %248 = arith.addf %239, %247 : vector<8x16x128xf32>
    %c0_77 = arith.constant 0 : index
    %249 = arith.index_cast %194 : i32 to index
    %c6_78 = arith.constant 6 : index
    %c0_79 = arith.constant 0 : index
    %250 = vector.load %arg3[%c0_77, %249, %c6_78, %c0_79] : memref<1x22x22x128xf32, #tpu.memory_space<vmem>>, vector<1x8x16x128xf32>
    %251 = vector.shape_cast %250 : vector<1x8x16x128xf32> to vector<8x16x128xf32>
    %252 = vector.extract_strided_slice %2 {offsets = [3, 6, 0], sizes = [1, 1, 128], strides = [1, 1, 1]} : vector<7x7x128xf32> to vector<1x1x128xf32>
    %253 = vector.shape_cast %252 : vector<1x1x128xf32> to vector<128xf32>
    %254 = vector.shape_cast %253 : vector<128xf32> to vector<1x1x128xf32>
    %255 = vector.broadcast %254 : vector<1x1x128xf32> to vector<8x16x128xf32>
    %256 = arith.mulf %251, %255 : vector<8x16x128xf32>
    %257 = arith.addf %248, %256 : vector<8x16x128xf32>
    %c4_i32 = arith.constant 4 : i32
    %258 = arith.addi %1, %c4_i32 : i32
    %c0_80 = arith.constant 0 : index
    %259 = arith.index_cast %258 : i32 to index
    %c0_81 = arith.constant 0 : index
    %c0_82 = arith.constant 0 : index
    %260 = vector.load %arg3[%c0_80, %259, %c0_81, %c0_82] : memref<1x22x22x128xf32, #tpu.memory_space<vmem>>, vector<1x8x16x128xf32>
    %261 = vector.shape_cast %260 : vector<1x8x16x128xf32> to vector<8x16x128xf32>
    %262 = vector.extract_strided_slice %2 {offsets = [4, 0, 0], sizes = [1, 1, 128], strides = [1, 1, 1]} : vector<7x7x128xf32> to vector<1x1x128xf32>
    %263 = vector.shape_cast %262 : vector<1x1x128xf32> to vector<128xf32>
    %264 = vector.shape_cast %263 : vector<128xf32> to vector<1x1x128xf32>
    %265 = vector.broadcast %264 : vector<1x1x128xf32> to vector<8x16x128xf32>
    %266 = arith.mulf %261, %265 : vector<8x16x128xf32>
    %267 = arith.addf %257, %266 : vector<8x16x128xf32>
    %c0_83 = arith.constant 0 : index
    %268 = arith.index_cast %258 : i32 to index
    %c1_84 = arith.constant 1 : index
    %c0_85 = arith.constant 0 : index
    %269 = vector.load %arg3[%c0_83, %268, %c1_84, %c0_85] : memref<1x22x22x128xf32, #tpu.memory_space<vmem>>, vector<1x8x16x128xf32>
    %270 = vector.shape_cast %269 : vector<1x8x16x128xf32> to vector<8x16x128xf32>
    %271 = vector.extract_strided_slice %2 {offsets = [4, 1, 0], sizes = [1, 1, 128], strides = [1, 1, 1]} : vector<7x7x128xf32> to vector<1x1x128xf32>
    %272 = vector.shape_cast %271 : vector<1x1x128xf32> to vector<128xf32>
    %273 = vector.shape_cast %272 : vector<128xf32> to vector<1x1x128xf32>
    %274 = vector.broadcast %273 : vector<1x1x128xf32> to vector<8x16x128xf32>
    %275 = arith.mulf %270, %274 : vector<8x16x128xf32>
    %276 = arith.addf %267, %275 : vector<8x16x128xf32>
    %c0_86 = arith.constant 0 : index
    %277 = arith.index_cast %258 : i32 to index
    %c2_87 = arith.constant 2 : index
    %c0_88 = arith.constant 0 : index
    %278 = vector.load %arg3[%c0_86, %277, %c2_87, %c0_88] : memref<1x22x22x128xf32, #tpu.memory_space<vmem>>, vector<1x8x16x128xf32>
    %279 = vector.shape_cast %278 : vector<1x8x16x128xf32> to vector<8x16x128xf32>
    %280 = vector.extract_strided_slice %2 {offsets = [4, 2, 0], sizes = [1, 1, 128], strides = [1, 1, 1]} : vector<7x7x128xf32> to vector<1x1x128xf32>
    %281 = vector.shape_cast %280 : vector<1x1x128xf32> to vector<128xf32>
    %282 = vector.shape_cast %281 : vector<128xf32> to vector<1x1x128xf32>
    %283 = vector.broadcast %282 : vector<1x1x128xf32> to vector<8x16x128xf32>
    %284 = arith.mulf %279, %283 : vector<8x16x128xf32>
    %285 = arith.addf %276, %284 : vector<8x16x128xf32>
    %c0_89 = arith.constant 0 : index
    %286 = arith.index_cast %258 : i32 to index
    %c3_90 = arith.constant 3 : index
    %c0_91 = arith.constant 0 : index
    %287 = vector.load %arg3[%c0_89, %286, %c3_90, %c0_91] : memref<1x22x22x128xf32, #tpu.memory_space<vmem>>, vector<1x8x16x128xf32>
    %288 = vector.shape_cast %287 : vector<1x8x16x128xf32> to vector<8x16x128xf32>
    %289 = vector.extract_strided_slice %2 {offsets = [4, 3, 0], sizes = [1, 1, 128], strides = [1, 1, 1]} : vector<7x7x128xf32> to vector<1x1x128xf32>
    %290 = vector.shape_cast %289 : vector<1x1x128xf32> to vector<128xf32>
    %291 = vector.shape_cast %290 : vector<128xf32> to vector<1x1x128xf32>
    %292 = vector.broadcast %291 : vector<1x1x128xf32> to vector<8x16x128xf32>
    %293 = arith.mulf %288, %292 : vector<8x16x128xf32>
    %294 = arith.addf %285, %293 : vector<8x16x128xf32>
    %c0_92 = arith.constant 0 : index
    %295 = arith.index_cast %258 : i32 to index
    %c4_93 = arith.constant 4 : index
    %c0_94 = arith.constant 0 : index
    %296 = vector.load %arg3[%c0_92, %295, %c4_93, %c0_94] : memref<1x22x22x128xf32, #tpu.memory_space<vmem>>, vector<1x8x16x128xf32>
    %297 = vector.shape_cast %296 : vector<1x8x16x128xf32> to vector<8x16x128xf32>
    %298 = vector.extract_strided_slice %2 {offsets = [4, 4, 0], sizes = [1, 1, 128], strides = [1, 1, 1]} : vector<7x7x128xf32> to vector<1x1x128xf32>
    %299 = vector.shape_cast %298 : vector<1x1x128xf32> to vector<128xf32>
    %300 = vector.shape_cast %299 : vector<128xf32> to vector<1x1x128xf32>
    %301 = vector.broadcast %300 : vector<1x1x128xf32> to vector<8x16x128xf32>
    %302 = arith.mulf %297, %301 : vector<8x16x128xf32>
    %303 = arith.addf %294, %302 : vector<8x16x128xf32>
    %c0_95 = arith.constant 0 : index
    %304 = arith.index_cast %258 : i32 to index
    %c5_96 = arith.constant 5 : index
    %c0_97 = arith.constant 0 : index
    %305 = vector.load %arg3[%c0_95, %304, %c5_96, %c0_97] : memref<1x22x22x128xf32, #tpu.memory_space<vmem>>, vector<1x8x16x128xf32>
    %306 = vector.shape_cast %305 : vector<1x8x16x128xf32> to vector<8x16x128xf32>
    %307 = vector.extract_strided_slice %2 {offsets = [4, 5, 0], sizes = [1, 1, 128], strides = [1, 1, 1]} : vector<7x7x128xf32> to vector<1x1x128xf32>
    %308 = vector.shape_cast %307 : vector<1x1x128xf32> to vector<128xf32>
    %309 = vector.shape_cast %308 : vector<128xf32> to vector<1x1x128xf32>
    %310 = vector.broadcast %309 : vector<1x1x128xf32> to vector<8x16x128xf32>
    %311 = arith.mulf %306, %310 : vector<8x16x128xf32>
    %312 = arith.addf %303, %311 : vector<8x16x128xf32>
    %c0_98 = arith.constant 0 : index
    %313 = arith.index_cast %258 : i32 to index
    %c6_99 = arith.constant 6 : index
    %c0_100 = arith.constant 0 : index
    %314 = vector.load %arg3[%c0_98, %313, %c6_99, %c0_100] : memref<1x22x22x128xf32, #tpu.memory_space<vmem>>, vector<1x8x16x128xf32>
    %315 = vector.shape_cast %314 : vector<1x8x16x128xf32> to vector<8x16x128xf32>
    %316 = vector.extract_strided_slice %2 {offsets = [4, 6, 0], sizes = [1, 1, 128], strides = [1, 1, 1]} : vector<7x7x128xf32> to vector<1x1x128xf32>
    %317 = vector.shape_cast %316 : vector<1x1x128xf32> to vector<128xf32>
    %318 = vector.shape_cast %317 : vector<128xf32> to vector<1x1x128xf32>
    %319 = vector.broadcast %318 : vector<1x1x128xf32> to vector<8x16x128xf32>
    %320 = arith.mulf %315, %319 : vector<8x16x128xf32>
    %321 = arith.addf %312, %320 : vector<8x16x128xf32>
    %c5_i32 = arith.constant 5 : i32
    %322 = arith.addi %1, %c5_i32 : i32
    %c0_101 = arith.constant 0 : index
    %323 = arith.index_cast %322 : i32 to index
    %c0_102 = arith.constant 0 : index
    %c0_103 = arith.constant 0 : index
    %324 = vector.load %arg3[%c0_101, %323, %c0_102, %c0_103] : memref<1x22x22x128xf32, #tpu.memory_space<vmem>>, vector<1x8x16x128xf32>
    %325 = vector.shape_cast %324 : vector<1x8x16x128xf32> to vector<8x16x128xf32>
    %326 = vector.extract_strided_slice %2 {offsets = [5, 0, 0], sizes = [1, 1, 128], strides = [1, 1, 1]} : vector<7x7x128xf32> to vector<1x1x128xf32>
    %327 = vector.shape_cast %326 : vector<1x1x128xf32> to vector<128xf32>
    %328 = vector.shape_cast %327 : vector<128xf32> to vector<1x1x128xf32>
    %329 = vector.broadcast %328 : vector<1x1x128xf32> to vector<8x16x128xf32>
    %330 = arith.mulf %325, %329 : vector<8x16x128xf32>
    %331 = arith.addf %321, %330 : vector<8x16x128xf32>
    %c0_104 = arith.constant 0 : index
    %332 = arith.index_cast %322 : i32 to index
    %c1_105 = arith.constant 1 : index
    %c0_106 = arith.constant 0 : index
    %333 = vector.load %arg3[%c0_104, %332, %c1_105, %c0_106] : memref<1x22x22x128xf32, #tpu.memory_space<vmem>>, vector<1x8x16x128xf32>
    %334 = vector.shape_cast %333 : vector<1x8x16x128xf32> to vector<8x16x128xf32>
    %335 = vector.extract_strided_slice %2 {offsets = [5, 1, 0], sizes = [1, 1, 128], strides = [1, 1, 1]} : vector<7x7x128xf32> to vector<1x1x128xf32>
    %336 = vector.shape_cast %335 : vector<1x1x128xf32> to vector<128xf32>
    %337 = vector.shape_cast %336 : vector<128xf32> to vector<1x1x128xf32>
    %338 = vector.broadcast %337 : vector<1x1x128xf32> to vector<8x16x128xf32>
    %339 = arith.mulf %334, %338 : vector<8x16x128xf32>
    %340 = arith.addf %331, %339 : vector<8x16x128xf32>
    %c0_107 = arith.constant 0 : index
    %341 = arith.index_cast %322 : i32 to index
    %c2_108 = arith.constant 2 : index
    %c0_109 = arith.constant 0 : index
    %342 = vector.load %arg3[%c0_107, %341, %c2_108, %c0_109] : memref<1x22x22x128xf32, #tpu.memory_space<vmem>>, vector<1x8x16x128xf32>
    %343 = vector.shape_cast %342 : vector<1x8x16x128xf32> to vector<8x16x128xf32>
    %344 = vector.extract_strided_slice %2 {offsets = [5, 2, 0], sizes = [1, 1, 128], strides = [1, 1, 1]} : vector<7x7x128xf32> to vector<1x1x128xf32>
    %345 = vector.shape_cast %344 : vector<1x1x128xf32> to vector<128xf32>
    %346 = vector.shape_cast %345 : vector<128xf32> to vector<1x1x128xf32>
    %347 = vector.broadcast %346 : vector<1x1x128xf32> to vector<8x16x128xf32>
    %348 = arith.mulf %343, %347 : vector<8x16x128xf32>
    %349 = arith.addf %340, %348 : vector<8x16x128xf32>
    %c0_110 = arith.constant 0 : index
    %350 = arith.index_cast %322 : i32 to index
    %c3_111 = arith.constant 3 : index
    %c0_112 = arith.constant 0 : index
    %351 = vector.load %arg3[%c0_110, %350, %c3_111, %c0_112] : memref<1x22x22x128xf32, #tpu.memory_space<vmem>>, vector<1x8x16x128xf32>
    %352 = vector.shape_cast %351 : vector<1x8x16x128xf32> to vector<8x16x128xf32>
    %353 = vector.extract_strided_slice %2 {offsets = [5, 3, 0], sizes = [1, 1, 128], strides = [1, 1, 1]} : vector<7x7x128xf32> to vector<1x1x128xf32>
    %354 = vector.shape_cast %353 : vector<1x1x128xf32> to vector<128xf32>
    %355 = vector.shape_cast %354 : vector<128xf32> to vector<1x1x128xf32>
    %356 = vector.broadcast %355 : vector<1x1x128xf32> to vector<8x16x128xf32>
    %357 = arith.mulf %352, %356 : vector<8x16x128xf32>
    %358 = arith.addf %349, %357 : vector<8x16x128xf32>
    %c0_113 = arith.constant 0 : index
    %359 = arith.index_cast %322 : i32 to index
    %c4_114 = arith.constant 4 : index
    %c0_115 = arith.constant 0 : index
    %360 = vector.load %arg3[%c0_113, %359, %c4_114, %c0_115] : memref<1x22x22x128xf32, #tpu.memory_space<vmem>>, vector<1x8x16x128xf32>
    %361 = vector.shape_cast %360 : vector<1x8x16x128xf32> to vector<8x16x128xf32>
    %362 = vector.extract_strided_slice %2 {offsets = [5, 4, 0], sizes = [1, 1, 128], strides = [1, 1, 1]} : vector<7x7x128xf32> to vector<1x1x128xf32>
    %363 = vector.shape_cast %362 : vector<1x1x128xf32> to vector<128xf32>
    %364 = vector.shape_cast %363 : vector<128xf32> to vector<1x1x128xf32>
    %365 = vector.broadcast %364 : vector<1x1x128xf32> to vector<8x16x128xf32>
    %366 = arith.mulf %361, %365 : vector<8x16x128xf32>
    %367 = arith.addf %358, %366 : vector<8x16x128xf32>
    %c0_116 = arith.constant 0 : index
    %368 = arith.index_cast %322 : i32 to index
    %c5_117 = arith.constant 5 : index
    %c0_118 = arith.constant 0 : index
    %369 = vector.load %arg3[%c0_116, %368, %c5_117, %c0_118] : memref<1x22x22x128xf32, #tpu.memory_space<vmem>>, vector<1x8x16x128xf32>
    %370 = vector.shape_cast %369 : vector<1x8x16x128xf32> to vector<8x16x128xf32>
    %371 = vector.extract_strided_slice %2 {offsets = [5, 5, 0], sizes = [1, 1, 128], strides = [1, 1, 1]} : vector<7x7x128xf32> to vector<1x1x128xf32>
    %372 = vector.shape_cast %371 : vector<1x1x128xf32> to vector<128xf32>
    %373 = vector.shape_cast %372 : vector<128xf32> to vector<1x1x128xf32>
    %374 = vector.broadcast %373 : vector<1x1x128xf32> to vector<8x16x128xf32>
    %375 = arith.mulf %370, %374 : vector<8x16x128xf32>
    %376 = arith.addf %367, %375 : vector<8x16x128xf32>
    %c0_119 = arith.constant 0 : index
    %377 = arith.index_cast %322 : i32 to index
    %c6_120 = arith.constant 6 : index
    %c0_121 = arith.constant 0 : index
    %378 = vector.load %arg3[%c0_119, %377, %c6_120, %c0_121] : memref<1x22x22x128xf32, #tpu.memory_space<vmem>>, vector<1x8x16x128xf32>
    %379 = vector.shape_cast %378 : vector<1x8x16x128xf32> to vector<8x16x128xf32>
    %380 = vector.extract_strided_slice %2 {offsets = [5, 6, 0], sizes = [1, 1, 128], strides = [1, 1, 1]} : vector<7x7x128xf32> to vector<1x1x128xf32>
    %381 = vector.shape_cast %380 : vector<1x1x128xf32> to vector<128xf32>
    %382 = vector.shape_cast %381 : vector<128xf32> to vector<1x1x128xf32>
    %383 = vector.broadcast %382 : vector<1x1x128xf32> to vector<8x16x128xf32>
    %384 = arith.mulf %379, %383 : vector<8x16x128xf32>
    %385 = arith.addf %376, %384 : vector<8x16x128xf32>
    %c6_i32 = arith.constant 6 : i32
    %386 = arith.addi %1, %c6_i32 : i32
    %c0_122 = arith.constant 0 : index
    %387 = arith.index_cast %386 : i32 to index
    %c0_123 = arith.constant 0 : index
    %c0_124 = arith.constant 0 : index
    %388 = vector.load %arg3[%c0_122, %387, %c0_123, %c0_124] : memref<1x22x22x128xf32, #tpu.memory_space<vmem>>, vector<1x8x16x128xf32>
    %389 = vector.shape_cast %388 : vector<1x8x16x128xf32> to vector<8x16x128xf32>
    %390 = vector.extract_strided_slice %2 {offsets = [6, 0, 0], sizes = [1, 1, 128], strides = [1, 1, 1]} : vector<7x7x128xf32> to vector<1x1x128xf32>
    %391 = vector.shape_cast %390 : vector<1x1x128xf32> to vector<128xf32>
    %392 = vector.shape_cast %391 : vector<128xf32> to vector<1x1x128xf32>
    %393 = vector.broadcast %392 : vector<1x1x128xf32> to vector<8x16x128xf32>
    %394 = arith.mulf %389, %393 : vector<8x16x128xf32>
    %395 = arith.addf %385, %394 : vector<8x16x128xf32>
    %c0_125 = arith.constant 0 : index
    %396 = arith.index_cast %386 : i32 to index
    %c1_126 = arith.constant 1 : index
    %c0_127 = arith.constant 0 : index
    %397 = vector.load %arg3[%c0_125, %396, %c1_126, %c0_127] : memref<1x22x22x128xf32, #tpu.memory_space<vmem>>, vector<1x8x16x128xf32>
    %398 = vector.shape_cast %397 : vector<1x8x16x128xf32> to vector<8x16x128xf32>
    %399 = vector.extract_strided_slice %2 {offsets = [6, 1, 0], sizes = [1, 1, 128], strides = [1, 1, 1]} : vector<7x7x128xf32> to vector<1x1x128xf32>
    %400 = vector.shape_cast %399 : vector<1x1x128xf32> to vector<128xf32>
    %401 = vector.shape_cast %400 : vector<128xf32> to vector<1x1x128xf32>
    %402 = vector.broadcast %401 : vector<1x1x128xf32> to vector<8x16x128xf32>
    %403 = arith.mulf %398, %402 : vector<8x16x128xf32>
    %404 = arith.addf %395, %403 : vector<8x16x128xf32>
    %c0_128 = arith.constant 0 : index
    %405 = arith.index_cast %386 : i32 to index
    %c2_129 = arith.constant 2 : index
    %c0_130 = arith.constant 0 : index
    %406 = vector.load %arg3[%c0_128, %405, %c2_129, %c0_130] : memref<1x22x22x128xf32, #tpu.memory_space<vmem>>, vector<1x8x16x128xf32>
    %407 = vector.shape_cast %406 : vector<1x8x16x128xf32> to vector<8x16x128xf32>
    %408 = vector.extract_strided_slice %2 {offsets = [6, 2, 0], sizes = [1, 1, 128], strides = [1, 1, 1]} : vector<7x7x128xf32> to vector<1x1x128xf32>
    %409 = vector.shape_cast %408 : vector<1x1x128xf32> to vector<128xf32>
    %410 = vector.shape_cast %409 : vector<128xf32> to vector<1x1x128xf32>
    %411 = vector.broadcast %410 : vector<1x1x128xf32> to vector<8x16x128xf32>
    %412 = arith.mulf %407, %411 : vector<8x16x128xf32>
    %413 = arith.addf %404, %412 : vector<8x16x128xf32>
    %c0_131 = arith.constant 0 : index
    %414 = arith.index_cast %386 : i32 to index
    %c3_132 = arith.constant 3 : index
    %c0_133 = arith.constant 0 : index
    %415 = vector.load %arg3[%c0_131, %414, %c3_132, %c0_133] : memref<1x22x22x128xf32, #tpu.memory_space<vmem>>, vector<1x8x16x128xf32>
    %416 = vector.shape_cast %415 : vector<1x8x16x128xf32> to vector<8x16x128xf32>
    %417 = vector.extract_strided_slice %2 {offsets = [6, 3, 0], sizes = [1, 1, 128], strides = [1, 1, 1]} : vector<7x7x128xf32> to vector<1x1x128xf32>
    %418 = vector.shape_cast %417 : vector<1x1x128xf32> to vector<128xf32>
    %419 = vector.shape_cast %418 : vector<128xf32> to vector<1x1x128xf32>
    %420 = vector.broadcast %419 : vector<1x1x128xf32> to vector<8x16x128xf32>
    %421 = arith.mulf %416, %420 : vector<8x16x128xf32>
    %422 = arith.addf %413, %421 : vector<8x16x128xf32>
    %c0_134 = arith.constant 0 : index
    %423 = arith.index_cast %386 : i32 to index
    %c4_135 = arith.constant 4 : index
    %c0_136 = arith.constant 0 : index
    %424 = vector.load %arg3[%c0_134, %423, %c4_135, %c0_136] : memref<1x22x22x128xf32, #tpu.memory_space<vmem>>, vector<1x8x16x128xf32>
    %425 = vector.shape_cast %424 : vector<1x8x16x128xf32> to vector<8x16x128xf32>
    %426 = vector.extract_strided_slice %2 {offsets = [6, 4, 0], sizes = [1, 1, 128], strides = [1, 1, 1]} : vector<7x7x128xf32> to vector<1x1x128xf32>
    %427 = vector.shape_cast %426 : vector<1x1x128xf32> to vector<128xf32>
    %428 = vector.shape_cast %427 : vector<128xf32> to vector<1x1x128xf32>
    %429 = vector.broadcast %428 : vector<1x1x128xf32> to vector<8x16x128xf32>
    %430 = arith.mulf %425, %429 : vector<8x16x128xf32>
    %431 = arith.addf %422, %430 : vector<8x16x128xf32>
    %c0_137 = arith.constant 0 : index
    %432 = arith.index_cast %386 : i32 to index
    %c5_138 = arith.constant 5 : index
    %c0_139 = arith.constant 0 : index
    %433 = vector.load %arg3[%c0_137, %432, %c5_138, %c0_139] : memref<1x22x22x128xf32, #tpu.memory_space<vmem>>, vector<1x8x16x128xf32>
    %434 = vector.shape_cast %433 : vector<1x8x16x128xf32> to vector<8x16x128xf32>
    %435 = vector.extract_strided_slice %2 {offsets = [6, 5, 0], sizes = [1, 1, 128], strides = [1, 1, 1]} : vector<7x7x128xf32> to vector<1x1x128xf32>
    %436 = vector.shape_cast %435 : vector<1x1x128xf32> to vector<128xf32>
    %437 = vector.shape_cast %436 : vector<128xf32> to vector<1x1x128xf32>
    %438 = vector.broadcast %437 : vector<1x1x128xf32> to vector<8x16x128xf32>
    %439 = arith.mulf %434, %438 : vector<8x16x128xf32>
    %440 = arith.addf %431, %439 : vector<8x16x128xf32>
    %c0_140 = arith.constant 0 : index
    %441 = arith.index_cast %386 : i32 to index
    %c6_141 = arith.constant 6 : index
    %c0_142 = arith.constant 0 : index
    %442 = vector.load %arg3[%c0_140, %441, %c6_141, %c0_142] : memref<1x22x22x128xf32, #tpu.memory_space<vmem>>, vector<1x8x16x128xf32>
    %443 = vector.shape_cast %442 : vector<1x8x16x128xf32> to vector<8x16x128xf32>
    %444 = vector.extract_strided_slice %2 {offsets = [6, 6, 0], sizes = [1, 1, 128], strides = [1, 1, 1]} : vector<7x7x128xf32> to vector<1x1x128xf32>
    %445 = vector.shape_cast %444 : vector<1x1x128xf32> to vector<128xf32>
    %446 = vector.shape_cast %445 : vector<128xf32> to vector<1x1x128xf32>
    %447 = vector.broadcast %446 : vector<1x1x128xf32> to vector<8x16x128xf32>
    %448 = arith.mulf %443, %447 : vector<8x16x128xf32>
    %449 = arith.addf %440, %448 : vector<8x16x128xf32>
    %c0_143 = arith.constant 0 : index
    %c0_144 = arith.constant 0 : index
    %c0_145 = arith.constant 0 : index
    %c0_146 = arith.constant 0 : index
    %450 = vector.load %arg5[%c0_143, %c0_144, %c0_145, %c0_146] : memref<1x8x16x128xf32, #tpu.memory_space<vmem>>, vector<1x8x16x128xf32>
    %451 = vector.shape_cast %450 : vector<1x8x16x128xf32> to vector<8x16x128xf32>
    %452 = vector.shape_cast %449 : vector<8x16x128xf32> to vector<1x8x16x128xf32>
    tpu.vector_store %arg5[%c0_143, %c0_144, %c0_145, %c0_146], %452 {strides = array<i32>} : memref<1x8x16x128xf32, #tpu.memory_space<vmem>>, vector<1x8x16x128xf32>,
    return
  }
  func.func @transform_0(%arg0: i32, %arg1: i32, %arg2: i32) -> (i32, i32, i32, i32) {
    %c0_i32 = arith.constant 0 : i32
    %c0_i32_0 = arith.constant 0 : i32
    %c0_i32_1 = arith.constant 0 : i32
    return %arg0, %c0_i32, %c0_i32_0, %arg1 : i32, i32, i32, i32
  }
  func.func @transform_1(%arg0: i32, %arg1: i32, %arg2: i32) -> (i32, i32, i32) {
    %c0_i32 = arith.constant 0 : i32
    %c0_i32_0 = arith.constant 0 : i32
    %c0_i32_1 = arith.constant 0 : i32
    return %c0_i32, %c0_i32_0, %arg1 : i32, i32, i32
  }
  func.func @transform_2(%arg0: i32, %arg1: i32, %arg2: i32) -> (i32, i32, i32, i32) {
    %c0_i32 = arith.constant 0 : i32
    %c0_i32_0 = arith.constant 0 : i32
    return %arg0, %arg2, %c0_i32, %arg1 : i32, i32, i32, i32
  }
}

</mosaic_0001>

<bundles_post_ra>
// kernel: tpu_custom_call.1
= control target key start
LH: loop header
LB: loop body
LE: loop exit
PB: predicated region body
PF: predicated region fallthrough
CT: control target
= control target key end

     0   :  { %7 = vsyncpa [#allocation3], 0  ;;  %s6302_s0 = inlined_call_operand.vmem [shape: f32[2,22,22,128], index: 0, kind: input, shape index: {}]   ;;  %s6303_s1 = inlined_call_operand.vmem [shape: f32[7,7,128], index: 1, kind: input, shape index: {}]   ;;  %s6304_s2 = inlined_call_operand.hbm [shape: f32[2,16,16,128], index: 2, kind: output, shape index: {}]  }
   0x1   :  { %9 = vsyncpa [#allocation3 + $0x1], 0  ;;  %s3659_s9 = smov 0   ;;  %s3661_s10 = smov 0  }
   0x2   :  { %s3663_s11 = smov 0   ;;  %s3665_s12 = smov 0  }
   0x3   :  { %s3667_s13 = smov 0   ;;  %s3669_s14 = smov 0  }
   0x4   :  { %s3671_s15 = smov 0   ;;  %s3673_s16 = smov 0  }
   0x5 LB: > { %s2770_s17 = sadd.s32 4294967295, %s3640_s16   ;;  %s2771_s18 = sadd.s32 4294967294, %s3640_s16   ;;  %s3640_s16 = sphi %s3673_s16, %s15_s16   ;;  %s3636_s15 = sphi %s3671_s15, %s7088_s15   ;;  %s3632_s14 = sphi %s3669_s14, %s7087_s14   ;;  %s3628_s13 = sphi %s3667_s13, %s7086_s13   ;;  %s3624_s12 = sphi %s3665_s12, %s7085_s12   ;;  %s3620_s11 = sphi %s3663_s11, %s7084_s11   ;;  %s3616_s10 = sphi %s3661_s10, %s7083_s10   ;;  %s3612_s9 = sphi %s3659_s9, %s7082_s9  }
   0x6   : > { %s27_s19 = sadd.s32 1, %s3632_s14  ;;  %s34_s20 = sadd.s32 1, %s3636_s15 }
   0x7   : > { %p28_p0 = scmp.ge.s32.totalorder %s27_s19, 2  ;;  %p109_p1 = scmp.ne.s32.totalorder %s3620_s11, %s3616_s10 }
   0x8   : > { %p110_p2 = scmp.eq.s32.totalorder %s2770_s17, 3  ;;  %p115_p5 = scmp.ne.s32.totalorder %s3616_s10, %s3612_s9 }
   0x9   : > { %s7090_s19 = smov (%p28_p0, %s27_s19), 0  ;;  %s7092_s20 = smov (!%p28_p0, %s34_s20), %s3636_s15 }
   0xa   : > { %s93_s21 = ssub.s32 %s3632_s14, %s7090_s19  ;;  %p3710_p3 = por %p110_p2, %p109_p1 }
   0xb   : > { %p36_p4 = scmp.ge.s32.totalorder %s7092_s20, 2  ;;  %p116_p6 = scmp.eq.s32.totalorder %s2771_s18, 3 }
   0xc   : > { %p2775_p7 = scmp.ge.s32.totalorder %s3640_s16, 1  ;;  %p152_p9 = scmp.lt.s32.totalorder %s3640_s16, 5 }
   0xd   : > { %s7094_s20 = smov (%p36_p4, %s7092_s20), 0  ;;  %p3719_p8 = por %p116_p6, %p115_p5 }
   0xe   : > { %s92_s24 = ssub.s32 %s3636_s15, %s7094_s20  ;;  %s99_s25 = sadd.s32 1, %s3620_s11 }
   0xf   : > { %s94_s26 = sor.u32 %s93_s21, %s92_s24  ;;  %p153_p10 = pnand %p2775_p7, %p152_p9 }
  0x10   : > { %p97_p11 = scmp.eq.s32.totalorder %s94_s26, 0 }
  0x11   : > { %156 = sbr.rel (%p153_p10) target bundleno = 479 (0x1df), region = 28 }
  0x12   : > { %s3728_s27 = scalar_select %p97_p11, %s3620_s11, %s99_s25  }
  0x16   : > { %p181_p12 = scmp.lt.s32.totalorder %s3628_s13, 1  ;;  %s2779_s30 = smul.u32 192, %s3624_s12  ;;  %v3741_v0 = vld [vmem:[%s6303_s1] sm:$0x7f] }
  0x17   : > { %v220_v8 = vperm.slane %v3741_v0, 0  ;;  %v253_v15 = vperm.slane %v3741_v0, 1  ;;  %v3790_v19 = vperm.slane %v3741_v0, 2  ;;  %v3793_v20 = vperm.slane %v3741_v0, 3  ;;  %s178_s7 = sand.u32 1, %s3616_s10   ;;  %s3471_s17 = sshll.u32 %s3624_s12, 4 }
  0x18   : > { %s182_s28 = scalar_select %p181_p12, %s3628_s13, 1  ;;  %v3796_v21 = vperm.slane %v3741_v0, 4  ;;  %v3844_v49 = vperm.slane %v3741_v0, 5 }
  0x19   : > { %s6175_s8 = sshll.u32 %s178_s7, 7  ;;  %s3467_s18 = sshll.u32 %s3628_s13, 5 }
  0x1a   : > { %s3472_s29 = smul.u32 528, %s182_s28  ;;  %s6215_s12 = scalar_lea.vmem [#allocation2], %s6175_s8 }
  0x1b   : > { %s6218_s13 = sadd.s32 %s3471_s17, %s3467_s18  ;;  %s2640_s26 = sshll.u32 %s6215_s12, 4  ;;  %s2641_s26 = int_to_ptr.vmem [resolvable:$true] %s2640_s26 }
  0x1c   : > { %s188_s5 = scalar_lea.vmem %s6302_s0, %s3472_s29  ;;  %s3468_s21 = sshll.u32 %s6218_s13, 3 }
  0x1d   : > { %s3736_s6 = scalar_lea.vmem %s188_s5, %s2779_s30  ;;  %s2639_s25 = scalar_lea.hbm %s6304_s2, %s3468_s21 }
  0x1e   : > { %v204_v1 = vld [vmem:[%s3736_s6] sm:$0xff]  ;;  %v205_v2 = vld [vmem:[%s3736_s6 + $0x8] sm:$0xff]  ;;  %v3746_v3 = vld [vmem:[%s3736_s6 + $0x18] sm:$0xff]  ;;  %s2642_s28 = sshll.u32 %s2639_s25, 4  ;;  %s2624_s29 = scalar_lea.sflag [#allocation3], %s178_s7  ;;  %s2643_s28 = int_to_ptr.hbm [resolvable:$true] %s2642_s28 }
  0x1f   : > { %v3749_v4 = vld [vmem:[%s3736_s6 + $0x20] sm:$0xff]  ;;  %v3752_v5 = vld [vmem:[%s3736_s6 + $0x30] sm:$0xff]  ;;  %v3755_v6 = vld [vmem:[%s3736_s6 + $0x38] sm:$0xff]  ;;  %v221_v22 = vmul.f32 %v220_v8, %v204_v1  ;;  %v222_v23 = vmul.f32 %v220_v8, %v205_v2  ;;  %v223_v24 = vmul.f32 %v220_v8, %v3746_v3  ;;  %s3560_s30 = sshra.s32 %s2643_s28, 4  ;;  %s3566_s8 = scalar_lea.hbm %s6304_s2, 512  ;;  %s3561_s30 = int_to_ptr.hbm [resolvable:$true] %s3560_s30 }
  0x20   : > { %v3758_v7 = vld [vmem:[%s3736_s6 + $0x48] sm:$0xff]  ;;  %v3762_v9 = vld [vmem:[%s3736_s6 + $0x50] sm:$0xff]  ;;  %v3765_v10 = vld [vmem:[%s3736_s6 + $0x60] sm:$0xff]  ;;  %v224_v25 = vmul.f32 %v220_v8, %v3749_v4  ;;  %v225_v29 = vmul.f32 %v220_v8, %v3752_v5  ;;  %v226_v30 = vmul.f32 %v220_v8, %v3755_v6  ;;  %s3562_s3 = scalar_lea.hbm %s3561_s30, 128  ;;  %p3567_p2 = scmp.lt.s32.totalorder %s3561_s30, %s6304_s2 }
  0x21   : > { %v3768_v11 = vld [vmem:[%s3736_s6 + $0x68] sm:$0xff]  ;;  %v3771_v12 = vld [vmem:[%s3736_s6 + $0x78] sm:$0xff]  ;;  %v3774_v13 = vld [vmem:[%s3736_s6 + $0x80] sm:$0xff]  ;;  %v227_v31 = vmul.f32 %v220_v8, %v3758_v7  ;;  %v228_v32 = vmul.f32 %v220_v8, %v3762_v9  ;;  %v229_v36 = vmul.f32 %v220_v8, %v3765_v10  ;;  %p3563_p13 = scmp.ne.s32.totalorder %s3561_s30, %s3562_s3  ;;  %p3568_p4 = scmp.lt.s32.totalorder %s3566_s8, %s3562_s3 }
  0x22   : > { %v3777_v14 = vld [vmem:[%s3736_s6 + $0x90] sm:$0xff]  ;;  %v3781_v16 = vld [vmem:[%s3736_s6 + $0x98] sm:$0xff]  ;;  %v3784_v17 = vld [vmem:[%s3736_s6 + $0xa8] sm:$0xff]  ;;  %v230_v37 = vmul.f32 %v220_v8, %v3768_v11  ;;  %v231_v38 = vmul.f32 %v220_v8, %v3771_v12  ;;  %v232_v39 = vmul.f32 %v220_v8, %v3774_v13 }
  0x23   : > { %v3787_v18 = vld [vmem:[%s3736_s6 + $0xb0] sm:$0xff]  ;;  %v237_v26 = vld [vmem:[%s3736_s6 + $0x1] sm:$0xff]  ;;  %v3803_v28 = vld [vmem:[%s3736_s6 + $0x19] sm:$0xff]  ;;  %v233_v43 = vmul.f32 %v220_v8, %v3777_v14  ;;  %v234_v44 = vmul.f32 %v220_v8, %v3781_v16  ;;  %v235_v45 = vmul.f32 %v220_v8, %v3784_v17  ;;  %p3564_p0 = pnand %p3563_p13, %p3710_p3  ;;  %p3569_p5 = por %p3568_p4, %p3567_p2 }
  0x24   : > { %6566 = vst [vmem:[#allocation5_spill] sm:$0xff] %v3787_v18  ;;  %v238_v27 = vld [vmem:[%s3736_s6 + $0x9] sm:$0xff]  ;;  %v3810_v33 = vld [vmem:[%s3736_s6 + $0x21] sm:$0xff]  ;;  %v3813_v34 = vld [vmem:[%s3736_s6 + $0x31] sm:$0xff]  ;;  %v236_v50 = vmul.f32 %v220_v8, %v3787_v18  ;;  %v254_v54 = vmul.f32 %v253_v15, %v237_v26  ;;  %v256_v56 = vmul.f32 %v253_v15, %v3803_v28 }
  0x25   : > { %6567 = vst [vmem:[#allocation6_spill] sm:$0xff] %v3803_v28  ;;  %v3816_v35 = vld [vmem:[%s3736_s6 + $0x39] sm:$0xff]  ;;  %v3823_v40 = vld [vmem:[%s3736_s6 + $0x49] sm:$0xff]  ;;  %v3826_v41 = vld [vmem:[%s3736_s6 + $0x51] sm:$0xff]  ;;  %v255_v55 = vmul.f32 %v253_v15, %v238_v27  ;;  %v257_v58 = vmul.f32 %v253_v15, %v3810_v33  ;;  %v258_v59 = vmul.f32 %v253_v15, %v3813_v34  ;;  %p3565_p1 = pneg %p3564_p0 }
  0x26   : > { %6568 = vst [vmem:[#allocation7_spill] sm:$0xff] %v3810_v33  ;;  %v3829_v42 = vld [vmem:[%s3736_s6 + $0x61] sm:$0xff]  ;;  %v3835_v46 = vld [vmem:[%s3736_s6 + $0x69] sm:$0xff]  ;;  %v3838_v47 = vld [vmem:[%s3736_s6 + $0x79] sm:$0xff]  ;;  %v259_v60 = vmul.f32 %v253_v15, %v3816_v35  ;;  %v260_v61 = vmul.f32 %v253_v15, %v3823_v40  ;;  %v261_v62 = vmul.f32 %v253_v15, %v3826_v41 }
  0x27   : > { %6569 = vst [vmem:[#allocation8_spill] sm:$0xff] %v3813_v34  ;;  %v3841_v48 = vld [vmem:[%s3736_s6 + $0x81] sm:$0xff]  ;;  %v3848_v51 = vld [vmem:[%s3736_s6 + $0x91] sm:$0xff]  ;;  %v3851_v52 = vld [vmem:[%s3736_s6 + $0x99] sm:$0xff]  ;;  %v262_v63 = vmul.f32 %v253_v15, %v3829_v42  ;;  %v263_v1 = vmul.f32 %v253_v15, %v3835_v46  ;;  %v264_v2 = vmul.f32 %v253_v15, %v3838_v47  ;;  %v271_v34 = vadd.f32 %v255_v55, %v222_v23  ;;  %p3570_p6 = pnand %p3569_p5, %p3565_p1 }
  0x28   : > { %6570 = vst [vmem:[#allocation9_spill] sm:$0xff] %v3816_v35  ;;  %v3854_v53 = vld [vmem:[%s3736_s6 + $0xa9] sm:$0xff]  ;;  %v3858_v57 = vld [vmem:[%s3736_s6 + $0xb1] sm:$0xff]  ;;  %v265_v8 = vmul.f32 %v253_v15, %v3841_v48  ;;  %v266_v26 = vmul.f32 %v253_v15, %v3848_v51  ;;  %v267_v27 = vmul.f32 %v253_v15, %v3851_v52  ;;  %v3876_v33 = vld [vmem:[%s3736_s6 + $0x1a] sm:$0xff]  ;;  %v274_v28 = vadd.f32 %v258_v59, %v225_v29 }
  0x29   : > { %6571 = vst [vmem:[#allocation10_spill] sm:$0xff] %v3823_v40  ;;  %v268_v35 = vmul.f32 %v253_v15, %v3854_v53  ;;  %v269_v40 = vmul.f32 %v253_v15, %v3858_v57  ;;  %v276_v18 = vadd.f32 %v260_v61, %v227_v31  ;;  %v3882_v15 = vld [vmem:[%s3736_s6 + $0x32] sm:$0xff]  ;;  %v277_v23 = vadd.f32 %v261_v62, %v228_v32  ;;  %v3900_v61 = vld [vmem:[%s3736_s6 + $0x7a] sm:$0xff]  ;;  %v3903_v32 = vld [vmem:[%s3736_s6 + $0x82] sm:$0xff] }
  0x2a   : > { %6572 = vst [vmem:[#allocation11_spill] sm:$0xff] %v3826_v41  ;;  %v270_v41 = vadd.f32 %v254_v54, %v221_v22  ;;  %v3885_v22 = vld [vmem:[%s3736_s6 + $0x3a] sm:$0xff]  ;;  %v279_v54 = vadd.f32 %v263_v1, %v230_v37  ;;  %v280_v55 = vadd.f32 %v264_v2, %v231_v38  ;;  %v3891_v29 = vld [vmem:[%s3736_s6 + $0x52] sm:$0xff]  ;;  %v281_v31 = vadd.f32 %v265_v8, %v232_v39  ;;  %v3912_v62 = vld [vmem:[%s3736_s6 + $0xaa] sm:$0xff] }
  0x2b   : > { %6573 = vst [vmem:[#allocation12_spill] sm:$0xff] %v3829_v42  ;;  %v272_v42 = vadd.f32 %v256_v56, %v223_v24  ;;  %v278_v24 = vadd.f32 %v262_v63, %v229_v36  ;;  %v282_v56 = vadd.f32 %v266_v26, %v233_v43  ;;  %v284_v59 = vadd.f32 %v268_v35, %v235_v45  ;;  %v3906_v37 = vld [vmem:[%s3736_s6 + $0x92] sm:$0xff]  ;;  %v3909_v38 = vld [vmem:[%s3736_s6 + $0x9a] sm:$0xff] }
  0x2c   : > { %6574 = vst [vmem:[#allocation13_spill] sm:$0xff] %v3835_v46  ;;  %v286_v46 = vld [vmem:[%s3736_s6 + $0x2] sm:$0xff]  ;;  %v285_v36 = vadd.f32 %v269_v40, %v236_v50  ;;  %v305_v35 = vmul.f32 %v3790_v19, %v3876_v33  ;;  %v3919_v43 = vld [vmem:[%s3736_s6 + $0xb2] sm:$0xff]  ;;  %v307_v40 = vmul.f32 %v3790_v19, %v3882_v15  ;;  %v308_v45 = vmul.f32 %v3790_v19, %v3885_v22 }
  0x2d   : > { %6575 = vst [vmem:[#allocation14_spill] sm:$0xff] %v3838_v47  ;;  %v287_v47 = vld [vmem:[%s3736_s6 + $0xa] sm:$0xff]  ;;  %v303_v63 = vmul.f32 %v3790_v19, %v286_v46  ;;  %v313_v2 = vmul.f32 %v3790_v19, %v3900_v61  ;;  %v314_v8 = vmul.f32 %v3790_v19, %v3903_v32  ;;  %v315_v26 = vmul.f32 %v3790_v19, %v3906_v37 }
  0x2e   : > { %6576 = vst [vmem:[#allocation15_spill] sm:$0xff] %v3841_v48  ;;  %v273_v48 = vadd.f32 %v257_v58, %v224_v25  ;;  %v3888_v25 = vld [vmem:[%s3736_s6 + $0x4a] sm:$0xff]  ;;  %v283_v58 = vadd.f32 %v267_v27, %v234_v44  ;;  %v304_v39 = vmul.f32 %v3790_v19, %v287_v47  ;;  %v310_v47 = vmul.f32 %v3790_v19, %v3891_v29 }
  0x2f   : > { %6577 = vst [vmem:[#allocation16_spill] sm:$0xff] %v3848_v51  ;;  %v275_v51 = vadd.f32 %v259_v60, %v226_v30  ;;  %v3894_v30 = vld [vmem:[%s3736_s6 + $0x62] sm:$0xff]  ;;  %v3897_v60 = vld [vmem:[%s3736_s6 + $0x6a] sm:$0xff]  ;;  %v309_v46 = vmul.f32 %v3790_v19, %v3888_v25  ;;  %v316_v27 = vmul.f32 %v3790_v19, %v3909_v38 }
  0x30   : > { %6578 = vst [vmem:[#allocation17_spill] sm:$0xff] %v3851_v52  ;;  %v3879_v52 = vld [vmem:[%s3736_s6 + $0x22] sm:$0xff]  ;;  %v311_v50 = vmul.f32 %v3790_v19, %v3894_v30  ;;  %v312_v1 = vmul.f32 %v3790_v19, %v3897_v60 }
  0x31   : > { %6579 = vst [vmem:[#allocation18_spill] sm:$0xff] %v3854_v53  ;;  %v306_v44 = vmul.f32 %v3790_v19, %v3879_v52 }
  0x32   : > { %6580 = vst [vmem:[#allocation19_spill] sm:$0xff] %v3858_v57 }
  0x33   : > { %6581 = vst [vmem:[#allocation20_spill] sm:$0xff] %v3876_v33  ;;  %v324_v33 = vadd.f32 %v308_v45, %v275_v51  ;;  %v330_v51 = vadd.f32 %v314_v8, %v281_v31  ;;  %v3971_v45 = vld [vmem:[%s3736_s6 + $0x6b] sm:$0xff] }
  0x34   : > { %6582 = vst [vmem:[#allocation21_spill] sm:$0xff] %v3879_v52  ;;  %v323_v52 = vadd.f32 %v307_v40, %v274_v28  ;;  %v3965_v28 = vld [vmem:[%s3736_s6 + $0x53] sm:$0xff] }
  0x35   : > { %6583 = vst [vmem:[#allocation22_spill] sm:$0xff] %v3882_v15  ;;  %v3950_v15 = vld [vmem:[%s3736_s6 + $0x1b] sm:$0xff] }
  0x36   : > { %6584 = vst [vmem:[#allocation23_spill] sm:$0xff] %v3885_v22  ;;  %v336_v22 = vld [vmem:[%s3736_s6 + $0xb] sm:$0xff] }
  0x37   : > { %6585 = vst [vmem:[#allocation24_spill] sm:$0xff] %v3888_v25  ;;  %v321_v25 = vadd.f32 %v305_v35, %v272_v42  ;;  %v327_v42 = vadd.f32 %v311_v50, %v278_v24  ;;  %v331_v35 = vadd.f32 %v315_v26, %v282_v56  ;;  %v353_v31 = vmul.f32 %v3793_v20, %v336_v22  ;;  %v3993_v56 = vld [vmem:[%s3736_s6 + $0xb3] sm:$0xff] }
  0x38   : > { %6586 = vst [vmem:[#allocation25_spill] sm:$0xff] %v3891_v29  ;;  %v319_v29 = vadd.f32 %v303_v63, %v270_v41  ;;  %v326_v41 = vadd.f32 %v310_v47, %v277_v23  ;;  %v328_v63 = vadd.f32 %v312_v1, %v279_v54  ;;  %v3977_v23 = vld [vmem:[%s3736_s6 + $0x83] sm:$0xff]  ;;  %v3980_v54 = vld [vmem:[%s3736_s6 + $0x93] sm:$0xff]  ;;  %v3986_v47 = vld [vmem:[%s3736_s6 + $0xab] sm:$0xff]  ;;  %v361_v1 = vmul.f32 %v3793_v20, %v3971_v45 }
  0x39   : > { %6587 = vst [vmem:[#allocation26_spill] sm:$0xff] %v3894_v30  ;;  %v317_v30 = vmul.f32 %v3790_v19, %v3912_v62  ;;  %v363_v8 = vmul.f32 %v3793_v20, %v3977_v23  ;;  %v364_v26 = vmul.f32 %v3793_v20, %v3980_v54 }
  0x3a   : > { %6588 = vst [vmem:[#allocation27_spill] sm:$0xff] %v3897_v60  ;;  %v318_v60 = vmul.f32 %v3790_v19, %v3919_v43  ;;  %v3956_v19 = vld [vmem:[%s3736_s6 + $0x33] sm:$0xff] }
  0x3b   : > { %6589 = vst [vmem:[#allocation28_spill] sm:$0xff] %v3900_v61  ;;  %v320_v61 = vadd.f32 %v304_v39, %v271_v34  ;;  %v3959_v34 = vld [vmem:[%s3736_s6 + $0x3b] sm:$0xff]  ;;  %v329_v39 = vadd.f32 %v313_v2, %v280_v55  ;;  %v333_v40 = vadd.f32 %v317_v30, %v284_v59  ;;  %v354_v30 = vmul.f32 %v3793_v20, %v3950_v15 }
  0x3c   : > { %6590 = vst [vmem:[#allocation29_spill] sm:$0xff] %v3903_v32  ;;  %v335_v32 = vld [vmem:[%s3736_s6 + $0x3] sm:$0xff]  ;;  %v334_v24 = vadd.f32 %v318_v60, %v285_v36  ;;  %v3983_v55 = vld [vmem:[%s3736_s6 + $0x9b] sm:$0xff]  ;;  %v356_v59 = vmul.f32 %v3793_v20, %v3956_v19  ;;  %v357_v60 = vmul.f32 %v3793_v20, %v3959_v34 }
  0x3d   : > { %6591 = vst [vmem:[#allocation30_spill] sm:$0xff] %v3906_v37  ;;  %v322_v37 = vadd.f32 %v306_v44, %v273_v48  ;;  %v3962_v48 = vld [vmem:[%s3736_s6 + $0x4b] sm:$0xff]  ;;  %v332_v44 = vadd.f32 %v316_v27, %v283_v58  ;;  %v352_v50 = vmul.f32 %v3793_v20, %v335_v32  ;;  %v359_v32 = vmul.f32 %v3793_v20, %v3965_v28 }
  0x3e   : > { %6592 = vst [vmem:[#allocation31_spill] sm:$0xff] %v3909_v38  ;;  %v325_v38 = vadd.f32 %v309_v46, %v276_v18  ;;  %v3968_v18 = vld [vmem:[%s3736_s6 + $0x63] sm:$0xff]  ;;  %v3974_v46 = vld [vmem:[%s3736_s6 + $0x7b] sm:$0xff]  ;;  %v358_v22 = vmul.f32 %v3793_v20, %v3962_v48  ;;  %v365_v27 = vmul.f32 %v3793_v20, %v3983_v55 }
  0x3f   : > { %6593 = vst [vmem:[#allocation32_spill] sm:$0xff] %v3912_v62  ;;  %v3953_v62 = vld [vmem:[%s3736_s6 + $0x23] sm:$0xff]  ;;  %v360_v36 = vmul.f32 %v3793_v20, %v3968_v18  ;;  %v362_v2 = vmul.f32 %v3793_v20, %v3974_v46 }
  0x40   : > { %6594 = vst [vmem:[#allocation33_spill] sm:$0xff] %v3919_v43  ;;  %v355_v58 = vmul.f32 %v3793_v20, %v3953_v62 }
  0x41   : > { %6595 = vst [vmem:[#allocation34_spill] sm:$0xff] %v3950_v15  ;;  %v373_v15 = vadd.f32 %v357_v60, %v324_v33  ;;  %v4039_v33 = vld [vmem:[%s3736_s6 + $0x54] sm:$0xff]  ;;  %v4045_v60 = vld [vmem:[%s3736_s6 + $0x6c] sm:$0xff] }
  0x42   : > { %6596 = vst [vmem:[#allocation35_spill] sm:$0xff] %v3953_v62  ;;  %v372_v62 = vadd.f32 %v356_v59, %v323_v52  ;;  %v4042_v52 = vld [vmem:[%s3736_s6 + $0x64] sm:$0xff] }
  0x43   : > { %6597 = vst [vmem:[#allocation36_spill] sm:$0xff] %v3956_v19  ;;  %v4024_v19 = vld [vmem:[%s3736_s6 + $0x1c] sm:$0xff] }
  0x44   : > { %6598 = vst [vmem:[#allocation37_spill] sm:$0xff] %v3959_v34  ;;  %v385_v34 = vld [vmem:[%s3736_s6 + $0xc] sm:$0xff] }
  0x45   : > { %6599 = vst [vmem:[#allocation38_spill] sm:$0xff] %v3962_v48  ;;  %v370_v48 = vadd.f32 %v354_v30, %v321_v25  ;;  %v375_v25 = vadd.f32 %v359_v32, %v326_v41  ;;  %v380_v30 = vadd.f32 %v364_v26, %v331_v35  ;;  %v4051_v41 = vld [vmem:[%s3736_s6 + $0x84] sm:$0xff]  ;;  %v4060_v32 = vld [vmem:[%s3736_s6 + $0xac] sm:$0xff]  ;;  %v4067_v35 = vld [vmem:[%s3736_s6 + $0xb4] sm:$0xff] }
  0x46   : > { %6600 = vst [vmem:[#allocation39_spill] sm:$0xff] %v3965_v28  ;;  %v368_v28 = vadd.f32 %v352_v50, %v319_v29  ;;  %v4033_v29 = vld [vmem:[%s3736_s6 + $0x3c] sm:$0xff]  ;;  %v377_v50 = vadd.f32 %v361_v1, %v328_v63  ;;  %v4054_v63 = vld [vmem:[%s3736_s6 + $0x94] sm:$0xff]  ;;  %v410_v1 = vmul.f32 %v3796_v21, %v4045_v60 }
  0x47   : > { %6601 = vst [vmem:[#allocation40_spill] sm:$0xff] %v3968_v18  ;;  %v366_v18 = vmul.f32 %v3793_v20, %v3986_v47  ;;  %v413_v26 = vmul.f32 %v3796_v21, %v4054_v63 }
  0x48   : > { %6602 = vst [vmem:[#allocation41_spill] sm:$0xff] %v3971_v45  ;;  %v367_v45 = vmul.f32 %v3793_v20, %v3993_v56  ;;  %v4030_v20 = vld [vmem:[%s3736_s6 + $0x34] sm:$0xff] }
  0x49   : > { %6603 = vst [vmem:[#allocation42_spill] sm:$0xff] %v3974_v46  ;;  %v369_v46 = vadd.f32 %v353_v31, %v320_v61  ;;  %v376_v61 = vadd.f32 %v360_v36, %v327_v42  ;;  %v378_v31 = vadd.f32 %v362_v2, %v329_v39  ;;  %v382_v59 = vadd.f32 %v366_v18, %v333_v40  ;;  %v4057_v39 = vld [vmem:[%s3736_s6 + $0x9c] sm:$0xff] }
  0x4a   : > { %6604 = vst [vmem:[#allocation43_spill] sm:$0xff] %v3977_v23  ;;  %v384_v23 = vld [vmem:[%s3736_s6 + $0x4] sm:$0xff]  ;;  %v383_v42 = vadd.f32 %v367_v45, %v334_v24  ;;  %v403_v18 = vmul.f32 %v3796_v21, %v4024_v19  ;;  %v405_v40 = vmul.f32 %v3796_v21, %v4030_v20  ;;  %v406_v45 = vmul.f32 %v3796_v21, %v4033_v29 }
  0x4b   : > { %6605 = vst [vmem:[#allocation44_spill] sm:$0xff] %v3980_v54  ;;  %v371_v54 = vadd.f32 %v355_v58, %v322_v37  ;;  %v4036_v37 = vld [vmem:[%s3736_s6 + $0x4c] sm:$0xff]  ;;  %v381_v58 = vadd.f32 %v365_v27, %v332_v44  ;;  %v401_v36 = vmul.f32 %v3796_v21, %v384_v23  ;;  %v408_v23 = vmul.f32 %v3796_v21, %v4039_v33 }
  0x4c   : > { %6606 = vst [vmem:[#allocation45_spill] sm:$0xff] %v3983_v55  ;;  %v374_v55 = vadd.f32 %v358_v22, %v325_v38  ;;  %v379_v38 = vadd.f32 %v363_v8, %v330_v51  ;;  %v4048_v22 = vld [vmem:[%s3736_s6 + $0x7c] sm:$0xff]  ;;  %v402_v51 = vmul.f32 %v3796_v21, %v385_v34  ;;  %v407_v34 = vmul.f32 %v3796_v21, %v4036_v37 }
  0x4d   : > { %6607 = vst [vmem:[#allocation46_spill] sm:$0xff] %v3986_v47  ;;  %v4027_v47 = vld [vmem:[%s3736_s6 + $0x24] sm:$0xff]  ;;  %v409_v24 = vmul.f32 %v3796_v21, %v4042_v52  ;;  %v411_v2 = vmul.f32 %v3796_v21, %v4048_v22  ;;  %v412_v8 = vmul.f32 %v3796_v21, %v4051_v41  ;;  %v414_v27 = vmul.f32 %v3796_v21, %v4057_v39 }
  0x4e   : > { %6608 = vst [vmem:[#allocation47_spill] sm:$0xff] %v3993_v56  ;;  %v404_v44 = vmul.f32 %v3796_v21, %v4027_v47 }
  0x4f   : > { %6609 = vst [vmem:[#allocation48_spill] sm:$0xff] %v4024_v19  ;;  %v422_v19 = vadd.f32 %v406_v45, %v373_v15  ;;  %v4113_v15 = vld [vmem:[%s3736_s6 + $0x55] sm:$0xff]  ;;  %v4119_v45 = vld [vmem:[%s3736_s6 + $0x6d] sm:$0xff] }
  0x50   : > { %6610 = vst [vmem:[#allocation49_spill] sm:$0xff] %v4027_v47  ;;  %v421_v47 = vadd.f32 %v405_v40, %v372_v62  ;;  %v4116_v62 = vld [vmem:[%s3736_s6 + $0x65] sm:$0xff] }
  0x51   : > { %6611 = vst [vmem:[#allocation50_spill] sm:$0xff] %v4030_v20  ;;  %v4098_v20 = vld [vmem:[%s3736_s6 + $0x1d] sm:$0xff] }
  0x52   : > { %6612 = vst [vmem:[#allocation51_spill] sm:$0xff] %v4033_v29  ;;  %v434_v29 = vld [vmem:[%s3736_s6 + $0xd] sm:$0xff] }
  0x53   : > { %6613 = vst [vmem:[#allocation52_spill] sm:$0xff] %v4036_v37  ;;  %v419_v37 = vadd.f32 %v403_v18, %v370_v48  ;;  %v424_v48 = vadd.f32 %v408_v23, %v375_v25  ;;  %v429_v18 = vadd.f32 %v413_v26, %v380_v30  ;;  %v4125_v25 = vld [vmem:[%s3736_s6 + $0x85] sm:$0xff]  ;;  %v4134_v23 = vld [vmem:[%s3736_s6 + $0xad] sm:$0xff]  ;;  %v4141_v30 = vld [vmem:[%s3736_s6 + $0xb5] sm:$0xff] }
  0x54   : > { %6614 = vst [vmem:[#allocation53_spill] sm:$0xff] %v4039_v33  ;;  %v417_v33 = vadd.f32 %v401_v36, %v368_v28  ;;  %v4107_v28 = vld [vmem:[%s3736_s6 + $0x3d] sm:$0xff]  ;;  %v426_v36 = vadd.f32 %v410_v1, %v377_v50  ;;  %v4128_v50 = vld [vmem:[%s3736_s6 + $0x95] sm:$0xff]  ;;  %v459_v1 = vmul.f32 %v3844_v49, %v4119_v45 }
  0x55   : > { %6615 = vst [vmem:[#allocation54_spill] sm:$0xff] %v4042_v52  ;;  %v415_v52 = vmul.f32 %v3796_v21, %v4060_v32  ;;  %v462_v26 = vmul.f32 %v3844_v49, %v4128_v50 }
  0x56   : > { %6616 = vst [vmem:[#allocation55_spill] sm:$0xff] %v4045_v60  ;;  %v416_v60 = vmul.f32 %v3796_v21, %v4067_v35  ;;  %v4104_v21 = vld [vmem:[%s3736_s6 + $0x35] sm:$0xff] }
  0x57   : > { %6617 = vst [vmem:[#allocation56_spill] sm:$0xff] %v4048_v22  ;;  %v418_v22 = vadd.f32 %v402_v51, %v369_v46  ;;  %v425_v46 = vadd.f32 %v409_v24, %v376_v61  ;;  %v427_v51 = vadd.f32 %v411_v2, %v378_v31  ;;  %v431_v40 = vadd.f32 %v415_v52, %v382_v59  ;;  %v4131_v31 = vld [vmem:[%s3736_s6 + $0x9d] sm:$0xff] }
  0x58   : > { %6618 = vst [vmem:[#allocation57_spill] sm:$0xff] %v4051_v41  ;;  %v433_v41 = vld [vmem:[%s3736_s6 + $0x5] sm:$0xff]  ;;  %v432_v61 = vadd.f32 %v416_v60, %v383_v42  ;;  %v452_v52 = vmul.f32 %v3844_v49, %v4098_v20  ;;  %v454_v59 = vmul.f32 %v3844_v49, %v4104_v21  ;;  %v455_v60 = vmul.f32 %v3844_v49, %v4107_v28 }
  0x59   : > { %6619 = vst [vmem:[#allocation58_spill] sm:$0xff] %v4054_v63  ;;  %v420_v63 = vadd.f32 %v404_v44, %v371_v54  ;;  %v4110_v54 = vld [vmem:[%s3736_s6 + $0x4d] sm:$0xff]  ;;  %v430_v44 = vadd.f32 %v414_v27, %v381_v58  ;;  %v450_v24 = vmul.f32 %v3844_v49, %v433_v41  ;;  %v458_v41 = vmul.f32 %v3844_v49, %v4116_v62 }
  0x5a   : > { %6620 = vst [vmem:[#allocation59_spill] sm:$0xff] %v4057_v39  ;;  %v423_v39 = vadd.f32 %v407_v34, %v374_v55  ;;  %v428_v55 = vadd.f32 %v412_v8, %v379_v38  ;;  %v4122_v34 = vld [vmem:[%s3736_s6 + $0x7d] sm:$0xff]  ;;  %v451_v38 = vmul.f32 %v3844_v49, %v434_v29  ;;  %v456_v42 = vmul.f32 %v3844_v49, %v4110_v54 }
  0x5b   : > { %6621 = vst [vmem:[#allocation60_spill] sm:$0xff] %v4060_v32  ;;  %v4101_v32 = vld [vmem:[%s3736_s6 + $0x25] sm:$0xff]  ;;  %v457_v29 = vmul.f32 %v3844_v49, %v4113_v15  ;;  %v460_v2 = vmul.f32 %v3844_v49, %v4122_v34  ;;  %v461_v8 = vmul.f32 %v3844_v49, %v4125_v25  ;;  %v463_v27 = vmul.f32 %v3844_v49, %v4131_v31 }
  0x5c   : > { %6622 = vst [vmem:[#allocation61_spill] sm:$0xff] %v4067_v35  ;;  %v453_v58 = vmul.f32 %v3844_v49, %v4101_v32 }
  0x5d   : > { %6623 = vst [vmem:[#allocation62_spill] sm:$0xff] %v4098_v20 }
  0x5e   : > { %6624 = vst [vmem:[#allocation63_spill] sm:$0xff] %v4101_v32 }
  0x5f   : > { %6625 = vst [vmem:[#allocation64_spill] sm:$0xff] %v4104_v21  ;;  %v483_v21 = vld [vmem:[%s3736_s6 + $0xe] sm:$0xff] }
  0x60   : > { %6626 = vst [vmem:[#allocation65_spill] sm:$0xff] %v4107_v28  ;;  %v470_v28 = vadd.f32 %v454_v59, %v421_v47  ;;  %v4184_v47 = vld [vmem:[%s3736_s6 + $0x36] sm:$0xff]  ;;  %v4196_v59 = vld [vmem:[%s3736_s6 + $0x66] sm:$0xff] }
  0x61   : > { %6627 = vst [vmem:[#allocation66_spill] sm:$0xff] %v4110_v54  ;;  %v468_v54 = vadd.f32 %v452_v52, %v419_v37  ;;  %v474_v37 = vadd.f32 %v458_v41, %v425_v46  ;;  %v478_v52 = vadd.f32 %v462_v26, %v429_v18  ;;  %v4193_v46 = vld [vmem:[%s3736_s6 + $0x56] sm:$0xff]  ;;  %v4209_v18 = vld [vmem:[%s3736_s6 + $0x86] sm:$0xff] }
  0x62   : > { %6628 = vst [vmem:[#allocation67_spill] sm:$0xff] %v4113_v15  ;;  %v464_v15 = vmul.f32 %v3844_v49, %v4134_v23 }
  0x63   : > { %6629 = vst [vmem:[#allocation68_spill] sm:$0xff] %v4116_v62  ;;  %v465_v62 = vmul.f32 %v3844_v49, %v4141_v30  ;;  %v498_v49 = vperm.slane %v3741_v0, 6  ;;  %v479_v0 = vadd.f32 %v463_v27, %v430_v44  ;;  %v4212_v44 = vld [vmem:[%s3736_s6 + $0x96] sm:$0xff] }
  0x64   : > { %6630 = vst [vmem:[#allocation69_spill] sm:$0xff] %v4119_v45  ;;  %v466_v45 = vadd.f32 %v450_v24, %v417_v33  ;;  %v473_v33 = vadd.f32 %v457_v29, %v424_v48  ;;  %v4178_v24 = vld [vmem:[%s3736_s6 + $0x1e] sm:$0xff]  ;;  %v4190_v48 = vld [vmem:[%s3736_s6 + $0x4e] sm:$0xff] }
  0x65   : > { %6631 = vst [vmem:[#allocation70_spill] sm:$0xff] %v4122_v34  ;;  %v467_v34 = vadd.f32 %v451_v38, %v418_v22  ;;  %v475_v22 = vadd.f32 %v459_v1, %v426_v36  ;;  %v4181_v38 = vld [vmem:[%s3736_s6 + $0x26] sm:$0xff]  ;;  %v480_v36 = vadd.f32 %v464_v15, %v431_v40  ;;  %v4215_v29 = vld [vmem:[%s3736_s6 + $0x9e] sm:$0xff]  ;;  %v500_v15 = vmul.f32 %v498_v49, %v483_v21  ;;  %v4227_v1 = vld [vmem:[%s3736_s6 + $0xb6] sm:$0xff] }
  0x66   : > { %6632 = vst [vmem:[#allocation71_spill] sm:$0xff] %v4125_v25  ;;  %v4172_v25 = vld [vmem:[%s6303_s1 + $0x8] sm:$0x7f]  ;;  %v503_v26 = vmul.f32 %v498_v49, %v4184_v47  ;;  %v505_v21 = vmul.f32 %v498_v49, %v4190_v48  ;;  %v507_v32 = vmul.f32 %v498_v49, %v4196_v59 }
  0x67   : > { %6633 = vst [vmem:[#allocation72_spill] sm:$0xff] %v4128_v50  ;;  %v469_v50 = vadd.f32 %v453_v58, %v420_v63  ;;  %v477_v63 = vadd.f32 %v461_v8, %v428_v55  ;;  %v481_v58 = vadd.f32 %v465_v62, %v432_v61  ;;  %v4206_v55 = vperm.slane %v4172_v25, 1  ;;  %v4224_v61 = vld [vmem:[%s3736_s6 + $0xae] sm:$0xff] }
  0x68   : > { %6634 = vst [vmem:[#allocation73_spill] sm:$0xff] %v4131_v31  ;;  %v471_v31 = vadd.f32 %v455_v60, %v422_v19  ;;  %v476_v19 = vadd.f32 %v460_v2, %v427_v51  ;;  %v4199_v60 = vld [vmem:[%s3736_s6 + $0x6e] sm:$0xff]  ;;  %v550_v51 = vperm.slane %v4172_v25, 0  ;;  %v4218_v62 = vperm.slane %v4172_v25, 2 }
  0x69   : > { %6635 = vst [vmem:[#allocation74_spill] sm:$0xff] %v4134_v23  ;;  %v482_v23 = vld [vmem:[%s3736_s6 + $0x6] sm:$0xff]  ;;  %v4221_v40 = vperm.slane %v4172_v25, 3  ;;  %v501_v2 = vmul.f32 %v498_v49, %v4178_v24  ;;  %v502_v8 = vmul.f32 %v498_v49, %v4181_v38  ;;  %v508_v20 = vmul.f32 %v498_v49, %v4199_v60 }
  0x6a   : > { %6636 = vst [vmem:[#allocation75_spill] sm:$0xff] %v4141_v30  ;;  %v472_v30 = vadd.f32 %v456_v42, %v423_v39  ;;  %v4187_v39 = vld [vmem:[%s3736_s6 + $0x3e] sm:$0xff]  ;;  %v499_v41 = vmul.f32 %v498_v49, %v482_v23  ;;  %v506_v23 = vmul.f32 %v498_v49, %v4193_v46 }
  0x6b   : > { %6637 = vst [vmem:[#allocation76_spill] sm:$0xff] %v4172_v25  ;;  %v4202_v42 = vld [vmem:[%s3736_s6 + $0x7e] sm:$0xff]  ;;  %v504_v27 = vmul.f32 %v498_v49, %v4187_v39  ;;  %v510_v25 = vmul.f32 %v498_v49, %v4209_v18 }
  0x6c   : > { %6638 = vst [vmem:[#allocation77_spill] sm:$0xff] %v4178_v24  ;;  %v509_v35 = vmul.f32 %v498_v49, %v4202_v42  ;;  %v511_v24 = vmul.f32 %v498_v49, %v4212_v44  ;;  %v515_v56 = vadd.f32 %v499_v41, %v466_v45  ;;  %v521_v43 = vadd.f32 %v505_v21, %v472_v30  ;;  %v6663_v41 = vld [vmem:[#allocation13_spill] sm:$0xff] }
  0x6d   : > { %6639 = vst [vmem:[#allocation78_spill] sm:$0xff] %v4181_v38  ;;  %v512_v38 = vmul.f32 %v498_v49, %v4215_v29  ;;  %v552_v45 = vmul.f32 %v550_v51, %v3749_v4  ;;  %v560_v4 = vmul.f32 %v550_v51, %v3774_v13  ;;  %v562_v30 = vmul.f32 %v550_v51, %v3781_v16 }
  0x6e   : > { %6640 = vst [vmem:[#allocation79_spill] sm:$0xff] %v4184_v47  ;;  %v513_v47 = vmul.f32 %v498_v49, %v4224_v61  ;;  %v525_v57 = vadd.f32 %v509_v35, %v476_v19  ;;  %v527_v53 = vadd.f32 %v511_v24, %v478_v52  ;;  %v557_v35 = vmul.f32 %v550_v51, %v3765_v10 }
  0x6f   : > { %6641 = vst [vmem:[#allocation80_spill] sm:$0xff] %v4187_v39  ;;  %v514_v39 = vmul.f32 %v498_v49, %v4227_v1  ;;  %v551_v49 = vmul.f32 %v550_v51, %v3746_v3  ;;  %v559_v3 = vmul.f32 %v550_v51, %v3771_v12 }
  0x70   : > { %6642 = vst [vmem:[#allocation81_spill] sm:$0xff] %v4190_v48  ;;  %v516_v48 = vadd.f32 %v500_v15, %v467_v34  ;;  %v4249_v34 = vld [vmem:[%s3736_s6 + $0xc8] sm:$0xff]  ;;  %v573_v24 = vadd.f32 %v557_v35, %v521_v43  ;;  %v6658_v43 = vld [vmem:[#allocation8_spill] sm:$0xff] }
  0x71   : > { %6643 = vst [vmem:[#allocation82_spill] sm:$0xff] %v4193_v46  ;;  %v518_v46 = vadd.f32 %v502_v8, %v469_v50  ;;  %v554_v50 = vmul.f32 %v550_v51, %v3755_v6  ;;  %v6666_v8 = vld [vmem:[#allocation16_spill] sm:$0xff] }
  0x72   : > { %6644 = vst [vmem:[#allocation83_spill] sm:$0xff] %v4196_v59  ;;  %v519_v59 = vadd.f32 %v503_v26, %v470_v28  ;;  %v553_v28 = vmul.f32 %v550_v51, %v3752_v5  ;;  %v563_v5 = vmul.f32 %v550_v51, %v3784_v17  ;;  %v568_v10 = vadd.f32 %v552_v45, %v516_v48  ;;  %v6657_v48 = vld [vmem:[#allocation7_spill] sm:$0xff] }
  0x73   : > { %6645 = vst [vmem:[#allocation84_spill] sm:$0xff] %v4199_v60  ;;  %v520_v60 = vadd.f32 %v504_v27, %v471_v31  ;;  %v561_v31 = vmul.f32 %v550_v51, %v3777_v14  ;;  %v6667_v27 = vld [vmem:[#allocation17_spill] sm:$0xff]  ;;  %v6669_v45 = vld [vmem:[#allocation19_spill] sm:$0xff] }
  0x74   : > { %6646 = vst [vmem:[#allocation85_spill] sm:$0xff] %v4202_v42  ;;  %v522_v42 = vadd.f32 %v506_v23, %v473_v33  ;;  %v6654_v33 = vld [vmem:[#allocation5_spill] sm:$0xff]  ;;  %v579_v19 = vadd.f32 %v563_v5, %v527_v53  ;;  %v6660_v53 = vld [vmem:[#allocation10_spill] sm:$0xff] }
  0x75   : > { %6647 = vst [vmem:[#allocation86_spill] sm:$0xff] %v4206_v55  ;;  %v529_v55 = vadd.f32 %v513_v47, %v480_v36  ;;  %v564_v6 = vmul.f32 %v550_v51, %v6654_v33  ;;  %v577_v47 = vadd.f32 %v561_v31, %v525_v57  ;;  %v6668_v23 = vld [vmem:[#allocation18_spill] sm:$0xff] }
  0x76   : > { %6648 = vst [vmem:[#allocation87_spill] sm:$0xff] %v4209_v18  ;;  %v524_v18 = vadd.f32 %v508_v20, %v475_v22  ;;  %v555_v20 = vmul.f32 %v550_v51, %v3758_v7 }
  0x77   : > { %6649 = vst [vmem:[#allocation88_spill] sm:$0xff] %v4212_v44  ;;  %v526_v44 = vadd.f32 %v510_v25, %v477_v63  ;;  %v558_v25 = vmul.f32 %v550_v51, %v3768_v11  ;;  %v570_v11 = vadd.f32 %v554_v50, %v518_v46  ;;  %v4270_v46 = vld [vmem:[%s3736_s6 + $0xc1] sm:$0xff] }
  0x78   : > { %6650 = vst [vmem:[#allocation89_spill] sm:$0xff] %v4215_v29  ;;  %v528_v29 = vadd.f32 %v512_v38, %v479_v0  ;;  %v571_v12 = vadd.f32 %v555_v20, %v519_v59  ;;  %v576_v16 = vadd.f32 %v560_v4, %v524_v18  ;;  %v4273_v59 = vld [vmem:[%s3736_s6 + $0xc9] sm:$0xff] }
  0x79   : > { %6651 = vst [vmem:[#allocation90_spill] sm:$0xff] %v4218_v62  ;;  %v523_v62 = vadd.f32 %v507_v32, %v474_v37  ;;  %v556_v32 = vmul.f32 %v550_v51, %v3762_v9  ;;  %v566_v9 = vmul.f32 %v4249_v34, %v550_v51  ;;  %v567_v37 = vadd.f32 %v551_v49, %v515_v56 }
  0x7a   : > { %6652 = vst [vmem:[#allocation91_spill] sm:$0xff] %v4221_v40  ;;  %v517_v40 = vadd.f32 %v501_v2, %v468_v54  ;;  %v4246_v54 = vld [vmem:[%s3736_s6 + $0xc0] sm:$0xff]  ;;  %v574_v14 = vadd.f32 %v558_v25, %v522_v42  ;;  %v578_v17 = vadd.f32 %v562_v30, %v526_v44  ;;  %v580_v63 = vadd.f32 %v564_v6, %v528_v29  ;;  %v6662_v44 = vld [vmem:[#allocation12_spill] sm:$0xff] }
  0x7b   : > { %6653 = vst [vmem:[#allocation92_spill] sm:$0xff] %v4224_v61  ;;  %v530_v61 = vadd.f32 %v514_v39, %v481_v58  ;;  %v565_v7 = vmul.f32 %v4246_v54, %v550_v51  ;;  %v572_v13 = vadd.f32 %v556_v32, %v520_v60  ;;  %v575_v38 = vadd.f32 %v559_v3, %v523_v62  ;;  %v6655_v39 = vld [vmem:[#allocation6_spill] sm:$0xff]  ;;  %v6659_v42 = vld [vmem:[#allocation9_spill] sm:$0xff] }
  0x7c   : > { %v569_v22 = vadd.f32 %v553_v28, %v517_v40  ;;  %v6656_v36 = vld [vmem:[#allocation86_spill] sm:$0xff] }
  0x7d   : > { %v581_v52 = vadd.f32 %v565_v7, %v529_v55  ;;  %v582_v0 = vadd.f32 %v566_v9, %v530_v61  ;;  %v600_v56 = vmul.f32 %v6656_v36, %v6655_v39  ;;  %v601_v58 = vmul.f32 %v6656_v36, %v6657_v48  ;;  %v6661_v55 = vld [vmem:[#allocation11_spill] sm:$0xff]  ;;  %v6664_v62 = vld [vmem:[#allocation14_spill] sm:$0xff] }
  0x7e   : > { %v602_v60 = vmul.f32 %v6656_v36, %v6658_v43  ;;  %v603_v57 = vmul.f32 %v6656_v36, %v6659_v42  ;;  %v604_v51 = vmul.f32 %v6656_v36, %v6660_v53  ;;  %v605_v18 = vmul.f32 %v6656_v36, %v6661_v55  ;;  %v6665_v61 = vld [vmem:[#allocation15_spill] sm:$0xff]  ;;  %v6670_v53 = vld [vmem:[#allocation20_spill] sm:$0xff]  ;;  %v6681_v55 = vld [vmem:[#allocation30_spill] sm:$0xff] }
  0x7f   : > { %v606_v29 = vmul.f32 %v6656_v36, %v6662_v44  ;;  %v607_v15 = vmul.f32 %v6656_v36, %v6663_v41  ;;  %v608_v40 = vmul.f32 %v6656_v36, %v6664_v62  ;;  %v609_v2 = vmul.f32 %v6656_v36, %v6665_v61  ;;  %v6682_v44 = vld [vmem:[#allocation31_spill] sm:$0xff]  ;;  %v6683_v41 = vld [vmem:[#allocation32_spill] sm:$0xff]  ;;  %v6684_v62 = vld [vmem:[#allocation33_spill] sm:$0xff] }
  0x80   : > { %v610_v26 = vmul.f32 %v6656_v36, %v6666_v8  ;;  %v611_v21 = vmul.f32 %v6656_v36, %v6667_v27  ;;  %v612_v49 = vmul.f32 %v6656_v36, %v6668_v23  ;;  %v613_v28 = vmul.f32 %v6656_v36, %v6669_v45 }
  0x81   : > { %v614_v50 = vmul.f32 %v4270_v46, %v6656_v36  ;;  %v615_v20 = vmul.f32 %v4273_v59, %v6656_v36  ;;  %v616_v32 = vadd.f32 %v600_v56, %v567_v37  ;;  %v617_v35 = vadd.f32 %v601_v58, %v568_v10  ;;  %v6671_v36 = vld [vmem:[#allocation90_spill] sm:$0xff]  ;;  %v6672_v10 = vld [vmem:[#allocation21_spill] sm:$0xff]  ;;  %v6679_v58 = vld [vmem:[#allocation28_spill] sm:$0xff] }
  0x82   : > { %v618_v25 = vadd.f32 %v602_v60, %v569_v22  ;;  %v619_v3 = vadd.f32 %v603_v57, %v570_v11  ;;  %v620_v4 = vadd.f32 %v604_v51, %v571_v12  ;;  %v621_v31 = vadd.f32 %v605_v18, %v572_v13  ;;  %v4308_v11 = vld [vmem:[%s3736_s6 + $0xc2] sm:$0xff]  ;;  %v4311_v12 = vld [vmem:[%s3736_s6 + $0xca] sm:$0xff] }
  0x83   : > { %v622_v30 = vadd.f32 %v606_v29, %v573_v24  ;;  %v623_v5 = vadd.f32 %v607_v15, %v574_v14  ;;  %v624_v33 = vadd.f32 %v608_v40, %v575_v38  ;;  %v625_v6 = vadd.f32 %v609_v2, %v576_v16  ;;  %v6673_v13 = vld [vmem:[#allocation22_spill] sm:$0xff]  ;;  %v6674_v14 = vld [vmem:[#allocation23_spill] sm:$0xff]  ;;  %v6675_v16 = vld [vmem:[#allocation24_spill] sm:$0xff] }
  0x84   : > { %v626_v7 = vadd.f32 %v610_v26, %v577_v47  ;;  %v627_v9 = vadd.f32 %v611_v21, %v578_v17  ;;  %v628_v39 = vadd.f32 %v612_v49, %v579_v19  ;;  %v629_v48 = vadd.f32 %v613_v28, %v580_v63  ;;  %v6676_v17 = vld [vmem:[#allocation25_spill] sm:$0xff]  ;;  %v6677_v63 = vld [vmem:[#allocation26_spill] sm:$0xff] }
  0x85   : > { %v630_v43 = vadd.f32 %v614_v50, %v581_v52  ;;  %v631_v42 = vadd.f32 %v615_v20, %v582_v0  ;;  %v649_v37 = vmul.f32 %v6671_v36, %v6670_v53  ;;  %v650_v22 = vmul.f32 %v6671_v36, %v6672_v10  ;;  %v6678_v0 = vld [vmem:[#allocation27_spill] sm:$0xff]  ;;  %v6680_v57 = vld [vmem:[#allocation29_spill] sm:$0xff] }
  0x86   : > { %v651_v24 = vmul.f32 %v6671_v36, %v6673_v13  ;;  %v652_v38 = vmul.f32 %v6671_v36, %v6674_v14  ;;  %v653_v47 = vmul.f32 %v6671_v36, %v6675_v16  ;;  %v654_v19 = vmul.f32 %v6671_v36, %v6676_v17 }
  0x87   : > { %v655_v52 = vmul.f32 %v6671_v36, %v6677_v63  ;;  %v656_v56 = vmul.f32 %v6671_v36, %v6678_v0  ;;  %v657_v60 = vmul.f32 %v6671_v36, %v6679_v58  ;;  %v658_v51 = vmul.f32 %v6671_v36, %v6680_v57  ;;  %v6685_v63 = vld [vmem:[#allocation34_spill] sm:$0xff]  ;;  %v6698_v0 = vld [vmem:[#allocation45_spill] sm:$0xff]  ;;  %v6700_v57 = vld [vmem:[#allocation47_spill] sm:$0xff] }
  0x88   : > { %v659_v18 = vmul.f32 %v6671_v36, %v6681_v55  ;;  %v660_v29 = vmul.f32 %v6671_v36, %v6682_v44  ;;  %v661_v15 = vmul.f32 %v6671_v36, %v6683_v41  ;;  %v662_v40 = vmul.f32 %v6671_v36, %v6684_v62  ;;  %v6699_v58 = vld [vmem:[#allocation46_spill] sm:$0xff] }
  0x89   : > { %v663_v61 = vmul.f32 %v4308_v11, %v6671_v36  ;;  %v664_v2 = vmul.f32 %v4311_v12, %v6671_v36  ;;  %v665_v8 = vadd.f32 %v649_v37, %v616_v32  ;;  %v666_v26 = vadd.f32 %v650_v22, %v617_v35  ;;  %v6686_v36 = vld [vmem:[#allocation91_spill] sm:$0xff]  ;;  %v6695_v22 = vld [vmem:[#allocation42_spill] sm:$0xff] }
  0x8a   : > { %v667_v27 = vadd.f32 %v651_v24, %v618_v25  ;;  %v668_v21 = vadd.f32 %v652_v38, %v619_v3  ;;  %v669_v23 = vadd.f32 %v653_v47, %v620_v4  ;;  %v670_v49 = vadd.f32 %v654_v19, %v621_v31  ;;  %v6687_v35 = vld [vmem:[#allocation35_spill] sm:$0xff]  ;;  %v4346_v3 = vld [vmem:[%s3736_s6 + $0xc3] sm:$0xff]  ;;  %v6689_v31 = vld [vmem:[#allocation36_spill] sm:$0xff] }
  0x8b   : > { %v671_v45 = vadd.f32 %v655_v52, %v622_v30  ;;  %v672_v28 = vadd.f32 %v656_v56, %v623_v5  ;;  %v673_v50 = vadd.f32 %v657_v60, %v624_v33  ;;  %v674_v20 = vadd.f32 %v658_v51, %v625_v6  ;;  %v4349_v4 = vld [vmem:[%s3736_s6 + $0xcb] sm:$0xff]  ;;  %v6690_v5 = vld [vmem:[#allocation37_spill] sm:$0xff]  ;;  %v6697_v19 = vld [vmem:[#allocation44_spill] sm:$0xff] }
  0x8c   : > { %v675_v53 = vadd.f32 %v659_v18, %v626_v7  ;;  %v676_v10 = vadd.f32 %v660_v29, %v627_v9  ;;  %v677_v13 = vadd.f32 %v661_v15, %v628_v39  ;;  %v678_v14 = vadd.f32 %v662_v40, %v629_v48  ;;  %6688 = vst [vmem:[#allocation5_spill] sm:$0xff] %v4349_v4  ;;  %v6691_v6 = vld [vmem:[#allocation38_spill] sm:$0xff]  ;;  %v6692_v9 = vld [vmem:[#allocation39_spill] sm:$0xff]  ;;  %v6693_v48 = vld [vmem:[#allocation40_spill] sm:$0xff] }
  0x8d   : > { %v679_v16 = vadd.f32 %v663_v61, %v630_v43  ;;  %v680_v17 = vadd.f32 %v664_v2, %v631_v42  ;;  %v698_v32 = vmul.f32 %v6686_v36, %v6685_v63  ;;  %v699_v25 = vmul.f32 %v6686_v36, %v6687_v35  ;;  %v6694_v42 = vld [vmem:[#allocation41_spill] sm:$0xff]  ;;  %v6696_v38 = vld [vmem:[#allocation43_spill] sm:$0xff]  ;;  %v6701_v40 = vld [vmem:[#allocation76_spill] sm:$0xff] }
  0x8e   : > { %v700_v30 = vmul.f32 %v6686_v36, %v6689_v31  ;;  %v701_v33 = vmul.f32 %v6686_v36, %v6690_v5  ;;  %v702_v7 = vmul.f32 %v6686_v36, %v6691_v6  ;;  %v703_v39 = vmul.f32 %v6686_v36, %v6692_v9  ;;  %v4383_v2 = vld [vmem:[%s6303_s1 + $0x10] sm:$0x7f]  ;;  %v6708_v9 = vld [vmem:[#allocation53_spill] sm:$0xff] }
  0x8f   : > { %v704_v43 = vmul.f32 %v6686_v36, %v6693_v48  ;;  %v705_v37 = vmul.f32 %v6686_v36, %v6694_v42  ;;  %v706_v24 = vmul.f32 %v6686_v36, %v6695_v22  ;;  %v707_v47 = vmul.f32 %v6686_v36, %v6696_v38  ;;  %v6709_v48 = vld [vmem:[#allocation54_spill] sm:$0xff]  ;;  %v6710_v42 = vld [vmem:[#allocation55_spill] sm:$0xff]  ;;  %v6711_v22 = vld [vmem:[#allocation56_spill] sm:$0xff] }
  0x90   : > { %v708_v52 = vmul.f32 %v6686_v36, %v6697_v19  ;;  %v709_v56 = vmul.f32 %v6686_v36, %v6698_v0  ;;  %v710_v60 = vmul.f32 %v6686_v36, %v6699_v58  ;;  %v711_v51 = vmul.f32 %v6686_v36, %v6700_v57  ;;  %v6712_v38 = vld [vmem:[#allocation57_spill] sm:$0xff]  ;;  %v6713_v19 = vld [vmem:[#allocation58_spill] sm:$0xff]  ;;  %v6714_v0 = vld [vmem:[#allocation59_spill] sm:$0xff] }
  0x91   : > { %v712_v55 = vmul.f32 %v4346_v3, %v6686_v36  ;;  %v713_v18 = vmul.f32 %v4349_v4, %v6686_v36  ;;  %v714_v44 = vadd.f32 %v698_v32, %v665_v8  ;;  %v715_v29 = vadd.f32 %v699_v25, %v666_v26  ;;  %v6702_v25 = vld [vmem:[#allocation48_spill] sm:$0xff]  ;;  %v6716_v57 = vld [vmem:[#allocation61_spill] sm:$0xff]  ;;  %v6717_v4 = vld [vmem:[#allocation62_spill] sm:$0xff] }
  0x92   : > { %v716_v41 = vadd.f32 %v700_v30, %v667_v27  ;;  %v717_v15 = vadd.f32 %v701_v33, %v668_v21  ;;  %v718_v62 = vadd.f32 %v702_v7, %v669_v23  ;;  %v746_v61 = vperm.slane %v6701_v40, 4  ;;  %v6715_v58 = vld [vmem:[#allocation60_spill] sm:$0xff] }
  0x93   : > { %v719_v63 = vadd.f32 %v703_v39, %v670_v49  ;;  %v720_v35 = vadd.f32 %v704_v43, %v671_v45  ;;  %v721_v31 = vadd.f32 %v705_v37, %v672_v28  ;;  %v722_v5 = vadd.f32 %v706_v24, %v673_v50  ;;  %v4397_v28 = vld [vmem:[%s3736_s6 + $0xc4] sm:$0xff]  ;;  %v4400_v50 = vld [vmem:[%s3736_s6 + $0xcc] sm:$0xff] }
  0x94   : > { %v723_v6 = vadd.f32 %v707_v47, %v674_v20  ;;  %v724_v36 = vadd.f32 %v708_v52, %v675_v53  ;;  %v725_v8 = vadd.f32 %v709_v56, %v676_v10  ;;  %v726_v26 = vadd.f32 %v710_v60, %v677_v13  ;;  %6703 = vst [vmem:[#allocation6_spill] sm:$0xff] %v4397_v28  ;;  %v6704_v20 = vld [vmem:[#allocation49_spill] sm:$0xff]  ;;  %v6705_v10 = vld [vmem:[#allocation50_spill] sm:$0xff] }
  0x95   : > { %v727_v27 = vadd.f32 %v711_v51, %v678_v14  ;;  %v728_v21 = vadd.f32 %v712_v55, %v679_v16  ;;  %v729_v23 = vadd.f32 %v713_v18, %v680_v17  ;;  %v795_v32 = vperm.slane %v6701_v40, 5  ;;  %v6706_v14 = vld [vmem:[#allocation51_spill] sm:$0xff]  ;;  %v6707_v17 = vld [vmem:[#allocation52_spill] sm:$0xff] }
  0x96   : > { %v747_v30 = vmul.f32 %v746_v61, %v6702_v25  ;;  %v4388_v33 = vperm.slane %v6701_v40, 6  ;;  %v4391_v49 = vperm.slane %v4383_v2, 0  ;;  %v4394_v45 = vperm.slane %v4383_v2, 1 }
  0x97   : > { %v748_v53 = vmul.f32 %v746_v61, %v6704_v20  ;;  %v749_v13 = vmul.f32 %v746_v61, %v6705_v10  ;;  %v750_v16 = vmul.f32 %v746_v61, %v6706_v14  ;;  %v751_v7 = vmul.f32 %v746_v61, %v6707_v17 }
  0x98   : > { %v752_v39 = vmul.f32 %v746_v61, %v6708_v9  ;;  %v753_v43 = vmul.f32 %v746_v61, %v6709_v48  ;;  %v754_v37 = vmul.f32 %v746_v61, %v6710_v42  ;;  %v755_v24 = vmul.f32 %v746_v61, %v6711_v22 }
  0x99   : > { %v756_v47 = vmul.f32 %v746_v61, %v6712_v38  ;;  %v757_v52 = vmul.f32 %v746_v61, %v6713_v19  ;;  %v758_v56 = vmul.f32 %v746_v61, %v6714_v0  ;;  %v759_v60 = vmul.f32 %v746_v61, %v6715_v58 }
  0x9a   : > { %v760_v51 = vmul.f32 %v746_v61, %v6716_v57  ;;  %v761_v55 = vmul.f32 %v4397_v28, %v746_v61  ;;  %v762_v18 = vmul.f32 %v4400_v50, %v746_v61  ;;  %v763_v40 = vadd.f32 %v747_v30, %v714_v44  ;;  %v4419_v44 = vld [vmem:[%s3736_s6 + $0xc5] sm:$0xff] }
  0x9b   : > { %v764_v25 = vadd.f32 %v748_v53, %v715_v29  ;;  %v765_v20 = vadd.f32 %v749_v13, %v716_v41  ;;  %v766_v10 = vadd.f32 %v750_v16, %v717_v15  ;;  %v767_v14 = vadd.f32 %v751_v7, %v718_v62  ;;  %6718 = vst [vmem:[#allocation86_spill] sm:$0xff] %v4419_v44  ;;  %v4422_v29 = vld [vmem:[%s3736_s6 + $0xcd] sm:$0xff]  ;;  %v6720_v62 = vld [vmem:[#allocation64_spill] sm:$0xff] }
  0x9c   : > { %v768_v17 = vadd.f32 %v752_v39, %v719_v63  ;;  %v769_v9 = vadd.f32 %v753_v43, %v720_v35  ;;  %v770_v48 = vadd.f32 %v754_v37, %v721_v31  ;;  %v771_v42 = vadd.f32 %v755_v24, %v722_v5  ;;  %v6719_v41 = vld [vmem:[#allocation63_spill] sm:$0xff]  ;;  %v6721_v35 = vld [vmem:[#allocation65_spill] sm:$0xff]  ;;  %v6722_v5 = vld [vmem:[#allocation66_spill] sm:$0xff] }
  0x9d   : > { %v772_v22 = vadd.f32 %v756_v47, %v723_v6  ;;  %v773_v38 = vadd.f32 %v757_v52, %v724_v36  ;;  %v774_v19 = vadd.f32 %v758_v56, %v725_v8  ;;  %v775_v0 = vadd.f32 %v759_v60, %v726_v26  ;;  %v6723_v36 = vld [vmem:[#allocation67_spill] sm:$0xff]  ;;  %v6724_v26 = vld [vmem:[#allocation68_spill] sm:$0xff]  ;;  %v6726_v30 = vld [vmem:[#allocation70_spill] sm:$0xff] }
  0x9e   : > { %v776_v58 = vadd.f32 %v760_v51, %v727_v27  ;;  %v777_v57 = vadd.f32 %v761_v55, %v728_v21  ;;  %v778_v28 = vadd.f32 %v762_v18, %v729_v23  ;;  %v796_v61 = vmul.f32 %v795_v32, %v6717_v4  ;;  %v6725_v21 = vld [vmem:[#allocation69_spill] sm:$0xff]  ;;  %v6727_v53 = vld [vmem:[#allocation71_spill] sm:$0xff]  ;;  %v6728_v16 = vld [vmem:[#allocation72_spill] sm:$0xff] }
  0x9f   : > { %v797_v15 = vmul.f32 %v795_v32, %v6719_v41  ;;  %v798_v63 = vmul.f32 %v795_v32, %v6720_v62  ;;  %v799_v31 = vmul.f32 %v795_v32, %v6721_v35  ;;  %v800_v6 = vmul.f32 %v795_v32, %v6722_v5  ;;  %v6729_v39 = vld [vmem:[#allocation73_spill] sm:$0xff]  ;;  %v6730_v37 = vld [vmem:[#allocation74_spill] sm:$0xff]  ;;  %v6731_v47 = vld [vmem:[#allocation75_spill] sm:$0xff] }
  0xa0   : > { %v801_v8 = vmul.f32 %v795_v32, %v6723_v36  ;;  %v802_v27 = vmul.f32 %v795_v32, %v6724_v26  ;;  %v803_v23 = vmul.f32 %v795_v32, %v6725_v21  ;;  %v804_v4 = vmul.f32 %v795_v32, %v6726_v30 }
  0xa1   : > { %v805_v13 = vmul.f32 %v795_v32, %v6727_v53  ;;  %v806_v7 = vmul.f32 %v795_v32, %v6728_v16  ;;  %v807_v43 = vmul.f32 %v795_v32, %v6729_v39  ;;  %v808_v24 = vmul.f32 %v795_v32, %v6730_v37 }
  0xa2   : > { %v809_v52 = vmul.f32 %v795_v32, %v6731_v47  ;;  %v810_v56 = vmul.f32 %v4419_v44, %v795_v32  ;;  %v811_v60 = vmul.f32 %v4422_v29, %v795_v32  ;;  %v812_v51 = vadd.f32 %v796_v61, %v763_v40  ;;  %v6732_v44 = vld [vmem:[#allocation77_spill] sm:$0xff] }
  0xa3   : > { %v813_v55 = vadd.f32 %v797_v15, %v764_v25  ;;  %v814_v18 = vadd.f32 %v798_v63, %v765_v20  ;;  %v815_v41 = vadd.f32 %v799_v31, %v766_v10  ;;  %v816_v62 = vadd.f32 %v800_v6, %v767_v14  ;;  %v4442_v40 = vld [vmem:[%s3736_s6 + $0xc6] sm:$0xff]  ;;  %v4445_v25 = vld [vmem:[%s3736_s6 + $0xce] sm:$0xff]  ;;  %v6742_v31 = vld [vmem:[#allocation88_spill] sm:$0xff] }
  0xa4   : > { %v817_v35 = vadd.f32 %v801_v8, %v768_v17  ;;  %v818_v5 = vadd.f32 %v802_v27, %v769_v9  ;;  %v819_v36 = vadd.f32 %v803_v23, %v770_v48  ;;  %v820_v26 = vadd.f32 %v804_v4, %v771_v42  ;;  %v6733_v20 = vld [vmem:[#allocation78_spill] sm:$0xff]  ;;  %v6734_v14 = vld [vmem:[#allocation79_spill] sm:$0xff]  ;;  %v6735_v9 = vld [vmem:[#allocation80_spill] sm:$0xff] }
  0xa5   : > { %v821_v21 = vadd.f32 %v805_v13, %v772_v22  ;;  %v822_v30 = vadd.f32 %v806_v7, %v773_v38  ;;  %v823_v53 = vadd.f32 %v807_v43, %v774_v19  ;;  %v824_v16 = vadd.f32 %v808_v24, %v775_v0  ;;  %v6736_v42 = vld [vmem:[#allocation81_spill] sm:$0xff]  ;;  %v6738_v19 = vld [vmem:[#allocation83_spill] sm:$0xff]  ;;  %v6744_v23 = vld [vmem:[#allocation92_spill] sm:$0xff] }
  0xa6   : > { %v825_v39 = vadd.f32 %v809_v52, %v776_v58  ;;  %v826_v37 = vadd.f32 %v810_v56, %v777_v57  ;;  %v827_v47 = vadd.f32 %v811_v60, %v778_v28  ;;  %v845_v32 = vmul.f32 %v4388_v33, %v6732_v44  ;;  %v6737_v28 = vld [vmem:[#allocation82_spill] sm:$0xff]  ;;  %v6739_v58 = vld [vmem:[#allocation84_spill] sm:$0xff]  ;;  %v6740_v61 = vld [vmem:[#allocation85_spill] sm:$0xff] }
  0xa7   : > { %v846_v10 = vmul.f32 %v4388_v33, %v6733_v20  ;;  %v847_v17 = vmul.f32 %v4388_v33, %v6734_v14  ;;  %v848_v48 = vmul.f32 %v4388_v33, %v6735_v9  ;;  %v849_v22 = vmul.f32 %v4388_v33, %v6736_v42  ;;  %v6741_v15 = vld [vmem:[#allocation87_spill] sm:$0xff]  ;;  %v6743_v8 = vld [vmem:[#allocation89_spill] sm:$0xff]  ;;  %v2897_v9 = vld [vmem:[%s3736_s6 + $0x38] sm:$0xff] }
  0xa8   : > { %v850_v38 = vmul.f32 %v4388_v33, %v6737_v28  ;;  %v851_v0 = vmul.f32 %v4388_v33, %v6738_v19  ;;  %v852_v57 = vmul.f32 %v4388_v33, %v6739_v58  ;;  %v853_v44 = vmul.f32 %v4388_v33, %v6740_v61  ;;  %v2896_v14 = vld [vmem:[%s3736_s6 + $0x30] sm:$0xff]  ;;  %v4480_v42 = vld [vmem:[%s3736_s6 + $0x48] sm:$0xff] }
  0xa9   : > { %v854_v63 = vmul.f32 %v4388_v33, %v6741_v15  ;;  %v855_v6 = vmul.f32 %v4388_v33, %v6742_v31  ;;  %v856_v27 = vmul.f32 %v4388_v33, %v6743_v8  ;;  %v857_v4 = vmul.f32 %v4388_v33, %v6744_v23 }
  0xaa   : > { %v858_v13 = vmul.f32 %v4388_v33, %v4227_v1  ;;  %v859_v7 = vmul.f32 %v4442_v40, %v4388_v33  ;;  %v860_v43 = vmul.f32 %v4445_v25, %v4388_v33  ;;  %v861_v24 = vadd.f32 %v845_v32, %v812_v51  ;;  %v4483_v33 = vld [vmem:[%s3736_s6 + $0x50] sm:$0xff]  ;;  %v4486_v51 = vld [vmem:[%s3736_s6 + $0x60] sm:$0xff] }
  0xab   : > { %v862_v52 = vadd.f32 %v846_v10, %v813_v55  ;;  %v863_v56 = vadd.f32 %v847_v17, %v814_v18  ;;  %v864_v60 = vadd.f32 %v848_v48, %v815_v41  ;;  %v865_v20 = vadd.f32 %v849_v22, %v816_v62  ;;  %v4489_v55 = vld [vmem:[%s3736_s6 + $0x68] sm:$0xff]  ;;  %v4492_v10 = vld [vmem:[%s3736_s6 + $0x78] sm:$0xff] }
  0xac   : > { %v866_v1 = vadd.f32 %v850_v38, %v817_v35  ;;  %v867_v28 = vadd.f32 %v851_v0, %v818_v5  ;;  %v868_v19 = vadd.f32 %v852_v57, %v819_v36  ;;  %v869_v58 = vadd.f32 %v853_v44, %v820_v26  ;;  %v4495_v35 = vld [vmem:[%s3736_s6 + $0x80] sm:$0xff]  ;;  %v4498_v5 = vld [vmem:[%s3736_s6 + $0x90] sm:$0xff]  ;;  %v4501_v48 = vld [vmem:[%s3736_s6 + $0x98] sm:$0xff] }
  0xad   : > { %v870_v18 = vadd.f32 %v854_v63, %v821_v21  ;;  %v871_v41 = vadd.f32 %v855_v6, %v822_v30  ;;  %v872_v62 = vadd.f32 %v856_v27, %v823_v53  ;;  %v873_v32 = vadd.f32 %v857_v4, %v824_v16  ;;  %6745 = vst [vmem:[#allocation7_spill] sm:$0xff] %v4501_v48  ;;  %v4504_v22 = vld [vmem:[%s3736_s6 + $0xa8] sm:$0xff]  ;;  %v4507_v38 = vld [vmem:[%s3736_s6 + $0xb0] sm:$0xff]  ;;  %v4511_v30 = vld [vmem:[%s3736_s6 + $0xd8] sm:$0xff] }
  0xae   : > { %v874_v36 = vadd.f32 %v858_v13, %v825_v39  ;;  %v875_v26 = vadd.f32 %v859_v7, %v826_v37  ;;  %v876_v17 = vadd.f32 %v860_v43, %v827_v47  ;;  %6746 = vst [vmem:[#allocation8_spill] sm:$0xff] %v4504_v22  ;;  %v897_v21 = vmul.f32 %v2896_v14, %v4391_v49  ;;  %v4514_v53 = vld [vmem:[%s3736_s6 + $0xe0] sm:$0xff] }
  0xaf   : > { %6747 = vst [vmem:[#allocation9_spill] sm:$0xff] %v4507_v38  ;;  %v898_v16 = vmul.f32 %v2897_v9, %v4391_v49  ;;  %v899_v0 = vmul.f32 %v4480_v42, %v4391_v49  ;;  %v900_v39 = vmul.f32 %v4483_v33, %v4391_v49  ;;  %v901_v37 = vmul.f32 %v4486_v51, %v4391_v49  ;;  %v2913_v9 = vld [vmem:[%s3736_s6 + $0x39] sm:$0xff] }
  0xb0   : > { %6748 = vst [vmem:[#allocation10_spill] sm:$0xff] %v4511_v30  ;;  %v902_v47 = vmul.f32 %v4489_v55, %v4391_v49  ;;  %v903_v57 = vmul.f32 %v4492_v10, %v4391_v49  ;;  %v904_v61 = vmul.f32 %v4495_v35, %v4391_v49  ;;  %v905_v44 = vmul.f32 %v4498_v5, %v4391_v49 }
  0xb1   : > { %v906_v15 = vmul.f32 %v4501_v48, %v4391_v49  ;;  %v907_v63 = vmul.f32 %v4504_v22, %v4391_v49  ;;  %v908_v31 = vmul.f32 %v4507_v38, %v4391_v49  ;;  %v909_v6 = vmul.f32 %v4246_v54, %v4391_v49  ;;  %v2912_v54 = vld [vmem:[%s3736_s6 + $0x31] sm:$0xff]  ;;  %v4548_v38 = vld [vmem:[%s3736_s6 + $0x49] sm:$0xff] }
  0xb2   : > { %v910_v8 = vmul.f32 %v4249_v34, %v4391_v49  ;;  %v911_v27 = vmul.f32 %v4511_v30, %v4391_v49  ;;  %v912_v23 = vmul.f32 %v4514_v53, %v4391_v49  ;;  %v913_v4 = vadd.f32 %v897_v21, %v861_v24  ;;  %v4551_v49 = vld [vmem:[%s3736_s6 + $0x51] sm:$0xff]  ;;  %v4554_v24 = vld [vmem:[%s3736_s6 + $0x61] sm:$0xff] }
  0xb3   : > { %v914_v13 = vadd.f32 %v898_v16, %v862_v52  ;;  %v915_v7 = vadd.f32 %v899_v0, %v863_v56  ;;  %v916_v43 = vadd.f32 %v900_v39, %v864_v60  ;;  %v917_v14 = vadd.f32 %v901_v37, %v865_v20  ;;  %6749 = vst [vmem:[#allocation11_spill] sm:$0xff] %v4551_v49  ;;  %v4557_v52 = vld [vmem:[%s3736_s6 + $0x69] sm:$0xff]  ;;  %v4560_v16 = vld [vmem:[%s3736_s6 + $0x79] sm:$0xff] }
  0xb4   : > { %v918_v34 = vadd.f32 %v902_v47, %v866_v1  ;;  %v919_v22 = vadd.f32 %v903_v57, %v867_v28  ;;  %v920_v30 = vadd.f32 %v904_v61, %v868_v19  ;;  %v921_v48 = vadd.f32 %v905_v44, %v869_v58  ;;  %6750 = vst [vmem:[#allocation12_spill] sm:$0xff] %v4554_v24  ;;  %v4563_v1 = vld [vmem:[%s3736_s6 + $0x81] sm:$0xff]  ;;  %v4566_v28 = vld [vmem:[%s3736_s6 + $0x91] sm:$0xff]  ;;  %v4569_v39 = vld [vmem:[%s3736_s6 + $0x99] sm:$0xff] }
  0xb5   : > { %6751 = vst [vmem:[#allocation13_spill] sm:$0xff] %v4557_v52  ;;  %v922_v56 = vadd.f32 %v906_v15, %v870_v18  ;;  %v923_v60 = vadd.f32 %v907_v63, %v871_v41  ;;  %v924_v20 = vadd.f32 %v908_v31, %v872_v62  ;;  %v925_v21 = vadd.f32 %v909_v6, %v873_v32  ;;  %v4572_v37 = vld [vmem:[%s3736_s6 + $0xa9] sm:$0xff]  ;;  %v4575_v47 = vld [vmem:[%s3736_s6 + $0xb1] sm:$0xff]  ;;  %v4579_v41 = vld [vmem:[%s3736_s6 + $0xd9] sm:$0xff] }
  0xb6   : > { %6752 = vst [vmem:[#allocation14_spill] sm:$0xff] %v4560_v16  ;;  %v926_v19 = vadd.f32 %v910_v8, %v874_v36  ;;  %v927_v58 = vadd.f32 %v911_v27, %v875_v26  ;;  %v928_v0 = vadd.f32 %v912_v23, %v876_v17  ;;  %v946_v18 = vmul.f32 %v2912_v54, %v4394_v45  ;;  %v4582_v62 = vld [vmem:[%s3736_s6 + $0xe1] sm:$0xff] }
  0xb7   : > { %6753 = vst [vmem:[#allocation15_spill] sm:$0xff] %v4563_v1  ;;  %v947_v32 = vmul.f32 %v2913_v9, %v4394_v45  ;;  %v948_v57 = vmul.f32 %v4548_v38, %v4394_v45  ;;  %v949_v36 = vmul.f32 %v4551_v49, %v4394_v45  ;;  %v950_v26 = vmul.f32 %v4554_v24, %v4394_v45  ;;  %v4616_v24 = vld [vmem:[%s3736_s6 + $0x4a] sm:$0xff] }
  0xb8   : > { %6754 = vst [vmem:[#allocation16_spill] sm:$0xff] %v4566_v28  ;;  %v951_v17 = vmul.f32 %v4557_v52, %v4394_v45  ;;  %v952_v61 = vmul.f32 %v4560_v16, %v4394_v45  ;;  %v953_v44 = vmul.f32 %v4563_v1, %v4394_v45  ;;  %v954_v15 = vmul.f32 %v4566_v28, %v4394_v45  ;;  %v2928_v1 = vld [vmem:[%s3736_s6 + $0x32] sm:$0xff] }
  0xb9   : > { %6755 = vst [vmem:[#allocation17_spill] sm:$0xff] %v4569_v39  ;;  %v955_v63 = vmul.f32 %v4569_v39, %v4394_v45  ;;  %v956_v31 = vmul.f32 %v4572_v37, %v4394_v45  ;;  %v957_v6 = vmul.f32 %v4575_v47, %v4394_v45  ;;  %v958_v8 = vmul.f32 %v4270_v46, %v4394_v45 }
  0xba   : > { %6756 = vst [vmem:[#allocation18_spill] sm:$0xff] %v4572_v37  ;;  %v959_v27 = vmul.f32 %v4273_v59, %v4394_v45  ;;  %v960_v23 = vmul.f32 %v4579_v41, %v4394_v45  ;;  %v961_v54 = vmul.f32 %v4582_v62, %v4394_v45  ;;  %v962_v9 = vadd.f32 %v946_v18, %v913_v4  ;;  %v2929_v59 = vld [vmem:[%s3736_s6 + $0x3a] sm:$0xff] }
  0xbb   : > { %6757 = vst [vmem:[#allocation19_spill] sm:$0xff] %v4575_v47  ;;  %v963_v39 = vadd.f32 %v947_v32, %v914_v13  ;;  %v964_v37 = vadd.f32 %v948_v57, %v915_v7  ;;  %v965_v28 = vadd.f32 %v949_v36, %v916_v43  ;;  %v966_v47 = vadd.f32 %v950_v26, %v917_v14  ;;  %v4623_v14 = vld [vmem:[%s3736_s6 + $0x62] sm:$0xff]  ;;  %v4635_v26 = vld [vmem:[%s3736_s6 + $0x92] sm:$0xff] }
  0xbc   : > { %6758 = vst [vmem:[#allocation20_spill] sm:$0xff] %v4579_v41  ;;  %v967_v16 = vadd.f32 %v951_v17, %v918_v34  ;;  %v968_v46 = vadd.f32 %v952_v61, %v919_v22  ;;  %v969_v52 = vadd.f32 %v953_v44, %v920_v30  ;;  %v4619_v41 = vld [vmem:[%s3736_s6 + $0x52] sm:$0xff]  ;;  %v994_v45 = vperm.slane %v4383_v2, 2  ;;  %v4626_v22 = vld [vmem:[%s3736_s6 + $0x6a] sm:$0xff]  ;;  %v4629_v30 = vld [vmem:[%s3736_s6 + $0x7a] sm:$0xff] }
  0xbd   : > { %6759 = vst [vmem:[#allocation90_spill] sm:$0xff] %v4582_v62  ;;  %v970_v4 = vadd.f32 %v954_v15, %v921_v48  ;;  %v971_v13 = vadd.f32 %v955_v63, %v922_v56  ;;  %v972_v7 = vadd.f32 %v956_v31, %v923_v60  ;;  %v973_v43 = vadd.f32 %v957_v6, %v924_v20  ;;  %v4632_v36 = vld [vmem:[%s3736_s6 + $0x82] sm:$0xff]  ;;  %v4638_v48 = vld [vmem:[%s3736_s6 + $0x9a] sm:$0xff]  ;;  %v4641_v56 = vld [vmem:[%s3736_s6 + $0xaa] sm:$0xff] }
  0xbe   : > { %6760 = vst [vmem:[#allocation21_spill] sm:$0xff] %v4616_v24  ;;  %v974_v34 = vadd.f32 %v958_v8, %v925_v21  ;;  %v975_v18 = vadd.f32 %v959_v27, %v926_v19  ;;  %v976_v32 = vadd.f32 %v960_v23, %v927_v58  ;;  %v977_v57 = vadd.f32 %v961_v54, %v928_v0  ;;  %v4644_v60 = vld [vmem:[%s3736_s6 + $0xb2] sm:$0xff]  ;;  %v4659_v58 = vld [vmem:[%s3736_s6 + $0xda] sm:$0xff]  ;;  %v4662_v0 = vld [vmem:[%s3736_s6 + $0xe2] sm:$0xff] }
  0xbf   : > { %6761 = vst [vmem:[#allocation22_spill] sm:$0xff] %v4619_v41  ;;  %v4647_v20 = vperm.slane %v4383_v2, 3  ;;  %v4650_v17 = vperm.slane %v4383_v2, 4  ;;  %v4653_v21 = vperm.slane %v4383_v2, 5  ;;  %v4656_v19 = vperm.slane %v4383_v2, 6 }
  0xc0   : > { %6762 = vst [vmem:[#allocation23_spill] sm:$0xff] %v4623_v14  ;;  %v995_v61 = vmul.f32 %v2928_v1, %v994_v45  ;;  %v996_v44 = vmul.f32 %v2929_v59, %v994_v45  ;;  %v997_v15 = vmul.f32 %v4616_v24, %v994_v45  ;;  %v998_v63 = vmul.f32 %v4619_v41, %v994_v45  ;;  %v4681_v24 = vld [vmem:[%s3736_s6 + $0x4b] sm:$0xff] }
  0xc1   : > { %6763 = vst [vmem:[#allocation24_spill] sm:$0xff] %v4626_v22  ;;  %v999_v31 = vmul.f32 %v4623_v14, %v994_v45  ;;  %v1000_v6 = vmul.f32 %v4626_v22, %v994_v45  ;;  %v1001_v8 = vmul.f32 %v4629_v30, %v994_v45  ;;  %v1002_v2 = vmul.f32 %v4632_v36, %v994_v45 }
  0xc2   : > { %6764 = vst [vmem:[#allocation25_spill] sm:$0xff] %v4629_v30  ;;  %v1003_v27 = vmul.f32 %v4635_v26, %v994_v45  ;;  %v1004_v1 = vmul.f32 %v4638_v48, %v994_v45  ;;  %v1005_v23 = vmul.f32 %v4641_v56, %v994_v45  ;;  %v1006_v54 = vmul.f32 %v4644_v60, %v994_v45 }
  0xc3   : > { %6765 = vst [vmem:[#allocation26_spill] sm:$0xff] %v4632_v36  ;;  %v1007_v59 = vmul.f32 %v4308_v11, %v994_v45  ;;  %v1008_v22 = vmul.f32 %v4311_v12, %v994_v45  ;;  %v1009_v30 = vmul.f32 %v4659_v58, %v994_v45  ;;  %v1010_v14 = vmul.f32 %v4662_v0, %v994_v45 }
  0xc4   : > { %6766 = vst [vmem:[#allocation27_spill] sm:$0xff] %v4635_v26  ;;  %v1011_v36 = vadd.f32 %v995_v61, %v962_v9  ;;  %v1012_v41 = vadd.f32 %v996_v44, %v963_v39  ;;  %v1013_v26 = vadd.f32 %v997_v15, %v964_v37  ;;  %v1015_v11 = vadd.f32 %v999_v31, %v966_v47  ;;  %v4687_v9 = vld [vmem:[%s3736_s6 + $0x63] sm:$0xff]  ;;  %v4690_v39 = vld [vmem:[%s3736_s6 + $0x6b] sm:$0xff]  ;;  %v4693_v44 = vld [vmem:[%s3736_s6 + $0x7b] sm:$0xff] }
  0xc5   : > { %6767 = vst [vmem:[#allocation28_spill] sm:$0xff] %v4638_v48  ;;  %v1014_v48 = vadd.f32 %v998_v63, %v965_v28  ;;  %v1016_v62 = vadd.f32 %v1000_v6, %v967_v16  ;;  %v1017_v49 = vadd.f32 %v1001_v8, %v968_v46  ;;  %v1018_v12 = vadd.f32 %v1002_v2, %v969_v52  ;;  %v4696_v16 = vld [vmem:[%s3736_s6 + $0x83] sm:$0xff]  ;;  %v4699_v47 = vld [vmem:[%s3736_s6 + $0x93] sm:$0xff]  ;;  %v4702_v31 = vld [vmem:[%s3736_s6 + $0x9b] sm:$0xff] }
  0xc6   : > { %6768 = vst [vmem:[#allocation29_spill] sm:$0xff] %v4641_v56  ;;  %v2944_v56 = vld [vmem:[%s3736_s6 + $0x33] sm:$0xff]  ;;  %v1019_v28 = vadd.f32 %v1003_v27, %v970_v4  ;;  %v1020_v37 = vadd.f32 %v1004_v1, %v971_v13  ;;  %v1021_v45 = vadd.f32 %v1005_v23, %v972_v7  ;;  %v1022_v61 = vadd.f32 %v1006_v54, %v973_v43  ;;  %v4705_v6 = vld [vmem:[%s3736_s6 + $0xab] sm:$0xff]  ;;  %v4711_v4 = vld [vmem:[%s3736_s6 + $0xdb] sm:$0xff] }
  0xc7   : > { %6769 = vst [vmem:[#allocation30_spill] sm:$0xff] %v4644_v60  ;;  %v2945_v60 = vld [vmem:[%s3736_s6 + $0x3b] sm:$0xff]  ;;  %v1023_v52 = vadd.f32 %v1007_v59, %v974_v34  ;;  %v1024_v46 = vadd.f32 %v1008_v22, %v975_v18  ;;  %v1025_v15 = vadd.f32 %v1009_v30, %v976_v32  ;;  %v1026_v63 = vadd.f32 %v1010_v14, %v977_v57  ;;  %v4708_v8 = vld [vmem:[%s3736_s6 + $0xb3] sm:$0xff]  ;;  %v4714_v13 = vld [vmem:[%s3736_s6 + $0xe3] sm:$0xff] }
  0xc8   : > { %6770 = vst [vmem:[#allocation31_spill] sm:$0xff] %v4659_v58  ;;  %v4684_v58 = vld [vmem:[%s3736_s6 + $0x53] sm:$0xff]  ;;  %v1044_v7 = vmul.f32 %v2944_v56, %v4647_v20  ;;  %v1045_v43 = vmul.f32 %v2945_v60, %v4647_v20  ;;  %v1046_v34 = vmul.f32 %v4681_v24, %v4647_v20  ;;  %v1048_v22 = vmul.f32 %v4687_v9, %v4647_v20  ;;  %v6781_v1 = vld [vmem:[#allocation5_spill] sm:$0xff] }
  0xc9   : > { %6771 = vst [vmem:[#allocation32_spill] sm:$0xff] %v4684_v58  ;;  %v1047_v14 = vmul.f32 %v4684_v58, %v4647_v20  ;;  %v1049_v30 = vmul.f32 %v4690_v39, %v4647_v20  ;;  %v1050_v18 = vmul.f32 %v4693_v44, %v4647_v20  ;;  %v1051_v32 = vmul.f32 %v4696_v16, %v4647_v20 }
  0xca   : > { %6772 = vst [vmem:[#allocation33_spill] sm:$0xff] %v4687_v9  ;;  %v1052_v57 = vmul.f32 %v4699_v47, %v4647_v20  ;;  %v1053_v56 = vmul.f32 %v4702_v31, %v4647_v20  ;;  %v1054_v60 = vmul.f32 %v4705_v6, %v4647_v20  ;;  %v1055_v2 = vmul.f32 %v4708_v8, %v4647_v20 }
  0xcb   : > { %6773 = vst [vmem:[#allocation34_spill] sm:$0xff] %v4690_v39  ;;  %v1056_v27 = vmul.f32 %v4346_v3, %v4647_v20  ;;  %v1057_v23 = vmul.f32 %v6781_v1, %v4647_v20  ;;  %v1058_v54 = vmul.f32 %v4711_v4, %v4647_v20  ;;  %v1059_v59 = vmul.f32 %v4714_v13, %v4647_v20  ;;  %v2961_v3 = vld [vmem:[%s3736_s6 + $0x3c] sm:$0xff] }
  0xcc   : > { %6774 = vst [vmem:[#allocation91_spill] sm:$0xff] %v4693_v44  ;;  %v4749_v44 = vld [vmem:[%s3736_s6 + $0x4c] sm:$0xff]  ;;  %v1064_v39 = vadd.f32 %v1048_v22, %v1015_v11  ;;  %v1065_v1 = vadd.f32 %v1049_v30, %v1016_v62  ;;  %v1066_v9 = vadd.f32 %v1050_v18, %v1017_v49  ;;  %v1067_v58 = vadd.f32 %v1051_v32, %v1018_v12  ;;  %v4764_v62 = vld [vmem:[%s3736_s6 + $0x84] sm:$0xff]  ;;  %v4767_v49 = vld [vmem:[%s3736_s6 + $0x94] sm:$0xff] }
  0xcd   : > { %6775 = vst [vmem:[#allocation35_spill] sm:$0xff] %v4696_v16  ;;  %v2960_v16 = vld [vmem:[%s3736_s6 + $0x34] sm:$0xff]  ;;  %v1070_v20 = vadd.f32 %v1054_v60, %v1021_v45  ;;  %v1072_v11 = vadd.f32 %v1056_v27, %v1023_v52  ;;  %v1073_v12 = vadd.f32 %v1057_v23, %v1024_v46  ;;  %v4770_v22 = vld [vmem:[%s3736_s6 + $0x9c] sm:$0xff]  ;;  %v4773_v30 = vld [vmem:[%s3736_s6 + $0xac] sm:$0xff]  ;;  %v1095_v52 = vmul.f32 %v4749_v44, %v4650_v17 }
  0xce   : > { %6776 = vst [vmem:[#allocation36_spill] sm:$0xff] %v4699_v47  ;;  %v1062_v47 = vadd.f32 %v1046_v34, %v1013_v26  ;;  %v1068_v26 = vadd.f32 %v1052_v57, %v1019_v28  ;;  %v1074_v34 = vadd.f32 %v1058_v54, %v1025_v15  ;;  %v4776_v18 = vld [vmem:[%s3736_s6 + $0xb4] sm:$0xff]  ;;  %v4779_v28 = vld [vmem:[%s3736_s6 + $0xdc] sm:$0xff]  ;;  %v1093_v45 = vmul.f32 %v2960_v16, %v4650_v17  ;;  %v6792_v27 = vld [vmem:[#allocation6_spill] sm:$0xff] }
  0xcf   : > { %6777 = vst [vmem:[#allocation37_spill] sm:$0xff] %v4702_v31  ;;  %v1060_v31 = vadd.f32 %v1044_v7, %v1011_v36  ;;  %v4755_v36 = vld [vmem:[%s3736_s6 + $0x64] sm:$0xff]  ;;  %v1071_v7 = vadd.f32 %v1055_v2, %v1022_v61  ;;  %v1094_v61 = vmul.f32 %v2961_v3, %v4650_v17  ;;  %v1100_v16 = vmul.f32 %v4764_v62, %v4650_v17 }
  0xd0   : > { %6778 = vst [vmem:[#allocation38_spill] sm:$0xff] %v4705_v6  ;;  %v1061_v6 = vadd.f32 %v1045_v43, %v1012_v41  ;;  %v4758_v41 = vld [vmem:[%s3736_s6 + $0x6c] sm:$0xff]  ;;  %v4761_v43 = vld [vmem:[%s3736_s6 + $0x7c] sm:$0xff]  ;;  %v1097_v15 = vmul.f32 %v4755_v36, %v4650_v17  ;;  %v1101_v57 = vmul.f32 %v4767_v49, %v4650_v17  ;;  %v1103_v60 = vmul.f32 %v4773_v30, %v4650_v17 }
  0xd1   : > { %6779 = vst [vmem:[#allocation39_spill] sm:$0xff] %v4708_v8  ;;  %v1063_v8 = vadd.f32 %v1047_v14, %v1014_v48  ;;  %v1069_v48 = vadd.f32 %v1053_v56, %v1020_v37  ;;  %v1075_v14 = vadd.f32 %v1059_v59, %v1026_v63  ;;  %v4782_v37 = vld [vmem:[%s3736_s6 + $0xe4] sm:$0xff]  ;;  %v1098_v63 = vmul.f32 %v4758_v41, %v4650_v17 }
  0xd2   : > { %6780 = vst [vmem:[#allocation40_spill] sm:$0xff] %v4711_v4  ;;  %v4752_v4 = vld [vmem:[%s3736_s6 + $0x54] sm:$0xff]  ;;  %v1099_v32 = vmul.f32 %v4761_v43, %v4650_v17  ;;  %v1102_v56 = vmul.f32 %v4770_v22, %v4650_v17  ;;  %v1104_v2 = vmul.f32 %v4776_v18, %v4650_v17  ;;  %v1105_v23 = vmul.f32 %v6792_v27, %v4650_v17  ;;  %v2977_v27 = vld [vmem:[%s3736_s6 + $0x3d] sm:$0xff] }
  0xd3   : > { %6782 = vst [vmem:[#allocation41_spill] sm:$0xff] %v4752_v4  ;;  %v1096_v46 = vmul.f32 %v4752_v4, %v4650_v17  ;;  %v1106_v54 = vmul.f32 %v4400_v50, %v4650_v17  ;;  %v1107_v59 = vmul.f32 %v4779_v28, %v4650_v17  ;;  %v1108_v3 = vmul.f32 %v4782_v37, %v4650_v17  ;;  %v4823_v17 = vld [vmem:[%s3736_s6 + $0x65] sm:$0xff] }
  0xd4   : > { %6783 = vst [vmem:[#allocation42_spill] sm:$0xff] %v4755_v36  ;;  %v1114_v50 = vadd.f32 %v1098_v63, %v1065_v1  ;;  %v1115_v36 = vadd.f32 %v1099_v32, %v1066_v9  ;;  %v1116_v4 = vadd.f32 %v1100_v16, %v1067_v58  ;;  %v4835_v9 = vld [vmem:[%s3736_s6 + $0x95] sm:$0xff]  ;;  %v1121_v58 = vadd.f32 %v1105_v23, %v1072_v11  ;;  %v4841_v63 = vld [vmem:[%s3736_s6 + $0xad] sm:$0xff] }
  0xd5   : > { %6784 = vst [vmem:[#allocation43_spill] sm:$0xff] %v4758_v41  ;;  %v1113_v41 = vadd.f32 %v1097_v15, %v1064_v39  ;;  %v4832_v39 = vld [vmem:[%s3736_s6 + $0x85] sm:$0xff]  ;;  %v1122_v1 = vadd.f32 %v1106_v54, %v1073_v12  ;;  %v4838_v15 = vld [vmem:[%s3736_s6 + $0x9d] sm:$0xff]  ;;  %v4844_v32 = vld [vmem:[%s3736_s6 + $0xb5] sm:$0xff] }
  0xd6   : > { %6785 = vst [vmem:[#allocation44_spill] sm:$0xff] %v4761_v43  ;;  %v4817_v43 = vld [vmem:[%s3736_s6 + $0x4d] sm:$0xff] }
  0xd7   : > { %6786 = vst [vmem:[#allocation45_spill] sm:$0xff] %v4764_v62  ;;  %v2976_v62 = vld [vmem:[%s3736_s6 + $0x35] sm:$0xff]  ;;  %v1144_v11 = vmul.f32 %v4817_v43, %v4653_v21  ;;  %v6804_v23 = vld [vmem:[#allocation86_spill] sm:$0xff] }
  0xd8   : > { %6787 = vst [vmem:[#allocation46_spill] sm:$0xff] %v4767_v49  ;;  %v1111_v49 = vadd.f32 %v1095_v52, %v1062_v47  ;;  %v4826_v47 = vld [vmem:[%s3736_s6 + $0x6d] sm:$0xff]  ;;  %v1123_v52 = vadd.f32 %v1107_v59, %v1074_v34  ;;  %v1146_v34 = vmul.f32 %v4823_v17, %v4653_v21  ;;  %v1154_v54 = vmul.f32 %v6804_v23, %v4653_v21  ;;  %v2993_v23 = vld [vmem:[%s3736_s6 + $0x3e] sm:$0xff] }
  0xd9   : > { %6788 = vst [vmem:[#allocation47_spill] sm:$0xff] %v4770_v22  ;;  %v1109_v22 = vadd.f32 %v1093_v45, %v1060_v31  ;;  %v1117_v31 = vadd.f32 %v1101_v57, %v1068_v26  ;;  %v1120_v45 = vadd.f32 %v1104_v2, %v1071_v7  ;;  %v4847_v26 = vld [vmem:[%s3736_s6 + $0xdd] sm:$0xff]  ;;  %v1143_v7 = vmul.f32 %v2977_v27, %v4653_v21 }
  0xda   : > { %6789 = vst [vmem:[#allocation76_spill] sm:$0xff] %v4773_v30  ;;  %v1110_v30 = vadd.f32 %v1094_v61, %v1061_v6  ;;  %v1118_v6 = vadd.f32 %v1102_v56, %v1069_v48  ;;  %v4829_v61 = vld [vmem:[%s3736_s6 + $0x7d] sm:$0xff]  ;;  %v4850_v48 = vld [vmem:[%s3736_s6 + $0xe5] sm:$0xff]  ;;  %v1150_v57 = vmul.f32 %v4835_v9, %v4653_v21  ;;  %v1151_v56 = vmul.f32 %v4838_v15, %v4653_v21 }
  0xdb   : > { %6790 = vst [vmem:[#allocation48_spill] sm:$0xff] %v4776_v18  ;;  %v1112_v18 = vadd.f32 %v1096_v46, %v1063_v8  ;;  %v1119_v8 = vadd.f32 %v1103_v60, %v1070_v20  ;;  %v1124_v46 = vadd.f32 %v1108_v3, %v1075_v14  ;;  %v1142_v20 = vmul.f32 %v2976_v62, %v4653_v21 }
  0xdc   : > { %6791 = vst [vmem:[#allocation49_spill] sm:$0xff] %v4779_v28  ;;  %v4820_v28 = vld [vmem:[%s3736_s6 + $0x55] sm:$0xff]  ;;  %v1147_v14 = vmul.f32 %v4826_v47, %v4653_v21  ;;  %v1148_v16 = vmul.f32 %v4829_v61, %v4653_v21  ;;  %v1149_v62 = vmul.f32 %v4832_v39, %v4653_v21  ;;  %v1152_v60 = vmul.f32 %v4841_v63, %v4653_v21 }
  0xdd   : > { %6793 = vst [vmem:[#allocation50_spill] sm:$0xff] %v4820_v28  ;;  %v1145_v12 = vmul.f32 %v4820_v28, %v4653_v21  ;;  %v1153_v2 = vmul.f32 %v4844_v32, %v4653_v21  ;;  %v1155_v59 = vmul.f32 %v4422_v29, %v4653_v21  ;;  %v1156_v3 = vmul.f32 %v4847_v26, %v4653_v21 }
  0xde   : > { %6794 = vst [vmem:[#allocation51_spill] sm:$0xff] %v4823_v17  ;;  %v1157_v27 = vmul.f32 %v4850_v48, %v4653_v21  ;;  %v1163_v29 = vadd.f32 %v1147_v14, %v1114_v50  ;;  %v1164_v17 = vadd.f32 %v1148_v16, %v1115_v36  ;;  %v1165_v28 = vadd.f32 %v1149_v62, %v1116_v4  ;;  %v4891_v21 = vld [vmem:[%s3736_s6 + $0x66] sm:$0xff]  ;;  %v4903_v36 = vld [vmem:[%s3736_s6 + $0x96] sm:$0xff]  ;;  %v4909_v14 = vld [vmem:[%s3736_s6 + $0xae] sm:$0xff] }
  0xdf   : > { %6795 = vst [vmem:[#allocation52_spill] sm:$0xff] %v4826_v47  ;;  %v1162_v47 = vadd.f32 %v1146_v34, %v1113_v41  ;;  %v4900_v41 = vld [vmem:[%s3736_s6 + $0x86] sm:$0xff]  ;;  %v1170_v4 = vadd.f32 %v1154_v54, %v1121_v58  ;;  %v1171_v50 = vadd.f32 %v1155_v59, %v1122_v1  ;;  %v4906_v34 = vld [vmem:[%s3736_s6 + $0x9e] sm:$0xff]  ;;  %v4912_v16 = vld [vmem:[%s3736_s6 + $0xb6] sm:$0xff]  ;;  %v1203_v59 = vmul.f32 %v4442_v40, %v4656_v19 }
  0xe0   : > { %6796 = vst [vmem:[#allocation53_spill] sm:$0xff] %v4829_v61  ;;  %v4885_v61 = vld [vmem:[%s3736_s6 + $0x4e] sm:$0xff]  ;;  %v1202_v54 = vmul.f32 %v4912_v16, %v4656_v19 }
  0xe1   : > { %6797 = vst [vmem:[#allocation54_spill] sm:$0xff] %v4832_v39  ;;  %v2992_v39 = vld [vmem:[%s3736_s6 + $0x36] sm:$0xff]  ;;  %v1193_v58 = vmul.f32 %v4885_v61, %v4656_v19 }
  0xe2   : > { %6798 = vst [vmem:[#allocation55_spill] sm:$0xff] %v4835_v9  ;;  %v1160_v9 = vadd.f32 %v1144_v11, %v1111_v49  ;;  %v4894_v49 = vld [vmem:[%s3736_s6 + $0x6e] sm:$0xff]  ;;  %v1172_v11 = vadd.f32 %v1156_v3, %v1123_v52  ;;  %v1195_v52 = vmul.f32 %v4891_v21, %v4656_v19  ;;  %v1204_v3 = vmul.f32 %v4445_v25, %v4656_v19 }
  0xe3   : > { %6799 = vst [vmem:[#allocation56_spill] sm:$0xff] %v4838_v15  ;;  %v1158_v15 = vadd.f32 %v1142_v20, %v1109_v22  ;;  %v1166_v22 = vadd.f32 %v1150_v57, %v1117_v31  ;;  %v1169_v20 = vadd.f32 %v1153_v2, %v1120_v45  ;;  %v4915_v31 = vld [vmem:[%s3736_s6 + $0xde] sm:$0xff]  ;;  %v1192_v45 = vmul.f32 %v2993_v23, %v4656_v19 }
  0xe4   : > { %6800 = vst [vmem:[#allocation57_spill] sm:$0xff] %v4841_v63  ;;  %v1159_v63 = vadd.f32 %v1143_v7, %v1110_v30  ;;  %v1167_v30 = vadd.f32 %v1151_v56, %v1118_v6  ;;  %v4897_v7 = vld [vmem:[%s3736_s6 + $0x7e] sm:$0xff]  ;;  %v4918_v6 = vld [vmem:[%s3736_s6 + $0xe6] sm:$0xff]  ;;  %v1199_v56 = vmul.f32 %v4903_v36, %v4656_v19  ;;  %v1201_v2 = vmul.f32 %v4909_v14, %v4656_v19 }
  0xe5   : > { %6801 = vst [vmem:[#allocation58_spill] sm:$0xff] %v4844_v32  ;;  %v1161_v32 = vadd.f32 %v1145_v12, %v1112_v18  ;;  %v1168_v18 = vadd.f32 %v1152_v60, %v1119_v8  ;;  %v1173_v12 = vadd.f32 %v1157_v27, %v1124_v46  ;;  %v1191_v8 = vmul.f32 %v2992_v39, %v4656_v19  ;;  %v4937_v57 = vld [vmem:[%s6303_s1 + $0x18] sm:$0x7f] }
  0xe6   : > { %6802 = vst [vmem:[#allocation59_spill] sm:$0xff] %v4847_v26  ;;  %v4888_v26 = vld [vmem:[%s3736_s6 + $0x56] sm:$0xff]  ;;  %v1196_v46 = vmul.f32 %v4894_v49, %v4656_v19  ;;  %v1197_v62 = vmul.f32 %v4897_v7, %v4656_v19  ;;  %v1198_v39 = vmul.f32 %v4900_v41, %v4656_v19  ;;  %v1200_v60 = vmul.f32 %v4906_v34, %v4656_v19 }
  0xe7   : > { %6803 = vst [vmem:[#allocation60_spill] sm:$0xff] %v4850_v48  ;;  %v1194_v1 = vmul.f32 %v4888_v26, %v4656_v19  ;;  %v1205_v27 = vmul.f32 %v4915_v31, %v4656_v19  ;;  %v1206_v23 = vmul.f32 %v4918_v6, %v4656_v19  ;;  %v1242_v40 = vperm.slane %v4937_v57, 0 }
  0xe8   : > { %6805 = vst [vmem:[#allocation61_spill] sm:$0xff] %v4885_v61  ;;  %v1215_v25 = vadd.f32 %v1199_v56, %v1166_v22  ;;  %v1217_v61 = vadd.f32 %v1201_v2, %v1168_v18  ;;  %v1219_v48 = vadd.f32 %v1203_v59, %v1170_v4  ;;  %v1220_v19 = vadd.f32 %v1204_v3, %v1171_v50 }
  0xe9   : > { %6806 = vst [vmem:[#allocation62_spill] sm:$0xff] %v4888_v26  ;;  %v1216_v26 = vadd.f32 %v1200_v60, %v1167_v30  ;;  %v1244_v22 = vmul.f32 %v4483_v33, %v1242_v40  ;;  %v1245_v30 = vmul.f32 %v4486_v51, %v1242_v40  ;;  %v4976_v18 = vperm.slane %v4937_v57, 4  ;;  %v6819_v33 = vld [vmem:[#allocation9_spill] sm:$0xff] }
  0xea   : > { %6807 = vst [vmem:[#allocation63_spill] sm:$0xff] %v4891_v21  ;;  %v1214_v21 = vadd.f32 %v1198_v39, %v1165_v28  ;;  %v4967_v28 = vld [vmem:[%s3736_s6 + $0xc8] sm:$0xff]  ;;  %v1246_v4 = vmul.f32 %v4489_v55, %v1242_v40  ;;  %v1247_v50 = vmul.f32 %v4492_v10, %v1242_v40  ;;  %v1256_v55 = vmul.f32 %v4514_v53, %v1242_v40 }
  0xeb   : > { %6808 = vst [vmem:[#allocation64_spill] sm:$0xff] %v4894_v49  ;;  %v1212_v49 = vadd.f32 %v1196_v46, %v1163_v29  ;;  %v1243_v29 = vmul.f32 %v4480_v42, %v1242_v40  ;;  %v6818_v42 = vld [vmem:[#allocation8_spill] sm:$0xff]  ;;  %v1254_v46 = vmul.f32 %v4967_v28, %v1242_v40 }
  0xec   : > { %6809 = vst [vmem:[#allocation65_spill] sm:$0xff] %v4897_v7  ;;  %v1211_v7 = vadd.f32 %v1195_v52, %v1162_v47  ;;  %v1291_v47 = vperm.slane %v4937_v57, 1  ;;  %v1252_v52 = vmul.f32 %v6819_v33, %v1242_v40 }
  0xed   : > { %6810 = vst [vmem:[#allocation66_spill] sm:$0xff] %v4900_v41  ;;  %v1209_v41 = vadd.f32 %v1193_v58, %v1160_v9  ;;  %v4961_v9 = vperm.slane %v4937_v57, 2 }
  0xee   : > { %6811 = vst [vmem:[#allocation67_spill] sm:$0xff] %v4903_v36  ;;  %v1207_v36 = vadd.f32 %v1191_v8, %v1158_v15  ;;  %v1221_v15 = vadd.f32 %v1205_v27, %v1172_v11  ;;  %v4957_v8 = vld [vmem:[%s3736_s6 + $0xc0] sm:$0xff]  ;;  %v1248_v11 = vmul.f32 %v4495_v35, %v1242_v40 }
  0xef   : > { %6812 = vst [vmem:[#allocation68_spill] sm:$0xff] %v4906_v34  ;;  %v1208_v34 = vadd.f32 %v1192_v45, %v1159_v63  ;;  %v1222_v63 = vadd.f32 %v1206_v23, %v1173_v12  ;;  %v1249_v12 = vmul.f32 %v4498_v5, %v1242_v40  ;;  %v6817_v45 = vld [vmem:[#allocation7_spill] sm:$0xff]  ;;  %v1253_v51 = vmul.f32 %v4957_v8, %v1242_v40 }
  0xf0   : > { %6813 = vst [vmem:[#allocation69_spill] sm:$0xff] %v4909_v14  ;;  %v1210_v14 = vadd.f32 %v1194_v1, %v1161_v32  ;;  %v4970_v32 = vld [vmem:[%s3736_s6 + $0xf0] sm:$0xff]  ;;  %v1250_v58 = vmul.f32 %v6817_v45, %v1242_v40  ;;  %v1251_v1 = vmul.f32 %v6818_v42, %v1242_v40  ;;  %v1259_v5 = vadd.f32 %v1243_v29, %v1207_v36  ;;  %v6828_v29 = vld [vmem:[#allocation16_spill] sm:$0xff] }
  0xf1   : > { %6814 = vst [vmem:[#allocation70_spill] sm:$0xff] %v4912_v16  ;;  %v1213_v16 = vadd.f32 %v1197_v62, %v1164_v17  ;;  %v4964_v17 = vperm.slane %v4937_v57, 3  ;;  %v6820_v62 = vld [vmem:[#allocation10_spill] sm:$0xff]  ;;  %v1257_v10 = vmul.f32 %v4970_v32, %v1242_v40  ;;  %v1260_v56 = vadd.f32 %v1244_v22, %v1208_v34  ;;  %v6829_v22 = vld [vmem:[#allocation17_spill] sm:$0xff] }
  0xf2   : > { %6815 = vst [vmem:[#allocation71_spill] sm:$0xff] %v4915_v31  ;;  %v1218_v31 = vadd.f32 %v1202_v54, %v1169_v20  ;;  %v4979_v20 = vld [vmem:[%s3736_s6 + $0xf8] sm:$0xff]  ;;  %v1255_v39 = vmul.f32 %v6820_v62, %v1242_v40  ;;  %v1261_v60 = vadd.f32 %v1245_v30, %v1209_v41  ;;  %v1262_v2 = vadd.f32 %v1246_v4, %v1210_v14  ;;  %v4998_v34 = vld [vmem:[%s3736_s6 + $0xc9] sm:$0xff] }
  0xf3   : > { %6816 = vst [vmem:[#allocation72_spill] sm:$0xff] %v4970_v32  ;;  %v1258_v35 = vmul.f32 %v4979_v20, %v1242_v40  ;;  %v1263_v54 = vadd.f32 %v1247_v50, %v1211_v7  ;;  %v1264_v59 = vadd.f32 %v1248_v11, %v1212_v49  ;;  %v1265_v3 = vadd.f32 %v1249_v12, %v1213_v16  ;;  %v4995_v40 = vld [vmem:[%s3736_s6 + $0xc1] sm:$0xff]  ;;  %v5001_v41 = vld [vmem:[%s3736_s6 + $0xf1] sm:$0xff] }
  0xf4   : > { %v1266_v27 = vadd.f32 %v1250_v58, %v1214_v21  ;;  %v1267_v23 = vadd.f32 %v1251_v1, %v1215_v25  ;;  %v1268_v45 = vadd.f32 %v1252_v52, %v1216_v26  ;;  %v1269_v42 = vadd.f32 %v1253_v51, %v1217_v61  ;;  %6821 = vst [vmem:[#allocation73_spill] sm:$0xff] %v4998_v34  ;;  %v6823_v49 = vld [vmem:[#allocation11_spill] sm:$0xff]  ;;  %v6824_v16 = vld [vmem:[#allocation12_spill] sm:$0xff]  ;;  %v6825_v61 = vld [vmem:[#allocation13_spill] sm:$0xff] }
  0xf5   : > { %v1270_v53 = vadd.f32 %v1254_v46, %v1218_v31  ;;  %v1271_v33 = vadd.f32 %v1255_v39, %v1219_v48  ;;  %v1272_v62 = vadd.f32 %v1256_v55, %v1220_v19  ;;  %v1273_v32 = vadd.f32 %v1257_v10, %v1221_v15  ;;  %6822 = vst [vmem:[#allocation74_spill] sm:$0xff] %v5001_v41  ;;  %v5007_v25 = vld [vmem:[%s3736_s6 + $0xf9] sm:$0xff]  ;;  %v6826_v48 = vld [vmem:[#allocation14_spill] sm:$0xff]  ;;  %v6827_v19 = vld [vmem:[#allocation15_spill] sm:$0xff] }
  0xf6   : > { %v1274_v36 = vadd.f32 %v1258_v35, %v1222_v63  ;;  %v1292_v7 = vmul.f32 %v4548_v38, %v1291_v47  ;;  %v1293_v14 = vmul.f32 %v6823_v49, %v1291_v47  ;;  %v1294_v21 = vmul.f32 %v6824_v16, %v1291_v47  ;;  %v6830_v4 = vld [vmem:[#allocation18_spill] sm:$0xff]  ;;  %v6831_v11 = vld [vmem:[#allocation19_spill] sm:$0xff]  ;;  %v6832_v1 = vld [vmem:[#allocation20_spill] sm:$0xff] }
  0xf7   : > { %v1295_v26 = vmul.f32 %v6825_v61, %v1291_v47  ;;  %v1296_v31 = vmul.f32 %v6826_v48, %v1291_v47  ;;  %v1297_v15 = vmul.f32 %v6827_v19, %v1291_v47  ;;  %v1298_v63 = vmul.f32 %v6828_v29, %v1291_v47  ;;  %v6833_v51 = vld [vmem:[#allocation90_spill] sm:$0xff] }
  0xf8   : > { %v1299_v30 = vmul.f32 %v6829_v22, %v1291_v47  ;;  %v1300_v50 = vmul.f32 %v6830_v4, %v1291_v47  ;;  %v1301_v38 = vmul.f32 %v6831_v11, %v1291_v47  ;;  %v1302_v12 = vmul.f32 %v4995_v40, %v1291_v47 }
  0xf9   : > { %v1303_v58 = vmul.f32 %v4998_v34, %v1291_v47  ;;  %v1304_v52 = vmul.f32 %v6832_v1, %v1291_v47  ;;  %v1305_v46 = vmul.f32 %v6833_v51, %v1291_v47  ;;  %v1306_v39 = vmul.f32 %v5001_v41, %v1291_v47 }
  0xfa   : > { %v1307_v55 = vmul.f32 %v5007_v25, %v1291_v47  ;;  %v1308_v10 = vadd.f32 %v1292_v7, %v1259_v5  ;;  %v1309_v35 = vadd.f32 %v1293_v14, %v1260_v56  ;;  %v1310_v49 = vadd.f32 %v1294_v21, %v1261_v60  ;;  %v5023_v47 = vld [vmem:[%s3736_s6 + $0xc2] sm:$0xff]  ;;  %v5026_v56 = vld [vmem:[%s3736_s6 + $0xca] sm:$0xff]  ;;  %v5029_v60 = vld [vmem:[%s3736_s6 + $0xf2] sm:$0xff] }
  0xfb   : > { %v1311_v16 = vadd.f32 %v1295_v26, %v1262_v2  ;;  %v1312_v61 = vadd.f32 %v1296_v31, %v1263_v54  ;;  %v1313_v48 = vadd.f32 %v1297_v15, %v1264_v59  ;;  %v1314_v19 = vadd.f32 %v1298_v63, %v1265_v3  ;;  %6834 = vst [vmem:[#allocation75_spill] sm:$0xff] %v5026_v56  ;;  %v6836_v2 = vld [vmem:[#allocation21_spill] sm:$0xff]  ;;  %v6837_v59 = vld [vmem:[#allocation22_spill] sm:$0xff]  ;;  %v6842_v7 = vld [vmem:[#allocation27_spill] sm:$0xff] }
  0xfc   : > { %v1315_v29 = vadd.f32 %v1299_v30, %v1266_v27  ;;  %v1316_v22 = vadd.f32 %v1300_v50, %v1267_v23  ;;  %v1317_v4 = vadd.f32 %v1301_v38, %v1268_v45  ;;  %v1318_v11 = vadd.f32 %v1302_v12, %v1269_v42  ;;  %6835 = vst [vmem:[#allocation77_spill] sm:$0xff] %v5029_v60  ;;  %v6838_v27 = vld [vmem:[#allocation23_spill] sm:$0xff]  ;;  %v5038_v45 = vld [vmem:[%s3736_s6 + $0xfa] sm:$0xff]  ;;  %v6845_v63 = vld [vmem:[#allocation30_spill] sm:$0xff] }
  0xfd   : > { %v1319_v1 = vadd.f32 %v1303_v58, %v1270_v53  ;;  %v1320_v51 = vadd.f32 %v1304_v52, %v1271_v33  ;;  %v1321_v41 = vadd.f32 %v1305_v46, %v1272_v62  ;;  %v1322_v34 = vadd.f32 %v1306_v39, %v1273_v32  ;;  %v6839_v32 = vld [vmem:[#allocation24_spill] sm:$0xff]  ;;  %v6840_v53 = vld [vmem:[#allocation25_spill] sm:$0xff]  ;;  %v6841_v62 = vld [vmem:[#allocation26_spill] sm:$0xff] }
  0xfe   : > { %v1323_v5 = vadd.f32 %v1307_v55, %v1274_v36  ;;  %v1341_v54 = vmul.f32 %v6836_v2, %v4961_v9  ;;  %v1342_v3 = vmul.f32 %v6837_v59, %v4961_v9  ;;  %v1343_v23 = vmul.f32 %v6838_v27, %v4961_v9  ;;  %v6843_v21 = vld [vmem:[#allocation28_spill] sm:$0xff]  ;;  %v6844_v31 = vld [vmem:[#allocation29_spill] sm:$0xff]  ;;  %v6846_v12 = vld [vmem:[#allocation31_spill] sm:$0xff] }
  0xff   : > { %v1344_v42 = vmul.f32 %v6839_v32, %v4961_v9  ;;  %v1345_v33 = vmul.f32 %v6840_v53, %v4961_v9  ;;  %v1346_v36 = vmul.f32 %v6841_v62, %v4961_v9  ;;  %v1347_v14 = vmul.f32 %v6842_v7, %v4961_v9 }
 0x100   : > { %v1348_v26 = vmul.f32 %v6843_v21, %v4961_v9  ;;  %v1349_v15 = vmul.f32 %v6844_v31, %v4961_v9  ;;  %v1350_v30 = vmul.f32 %v6845_v63, %v4961_v9  ;;  %v1351_v50 = vmul.f32 %v5023_v47, %v4961_v9 }
 0x101   : > { %v1352_v38 = vmul.f32 %v5026_v56, %v4961_v9  ;;  %v1353_v58 = vmul.f32 %v6846_v12, %v4961_v9  ;;  %v1354_v52 = vmul.f32 %v4662_v0, %v4961_v9  ;;  %v1355_v46 = vmul.f32 %v5029_v60, %v4961_v9 }
 0x102   : > { %v1356_v39 = vmul.f32 %v5038_v45, %v4961_v9  ;;  %v1357_v55 = vadd.f32 %v1341_v54, %v1308_v10  ;;  %v1358_v2 = vadd.f32 %v1342_v3, %v1309_v35  ;;  %v1359_v59 = vadd.f32 %v1343_v23, %v1310_v49  ;;  %v5067_v9 = vld [vmem:[%s3736_s6 + $0xc3] sm:$0xff]  ;;  %v5070_v35 = vld [vmem:[%s3736_s6 + $0xcb] sm:$0xff]  ;;  %v5073_v49 = vld [vmem:[%s3736_s6 + $0xf3] sm:$0xff] }
 0x103   : > { %v1360_v27 = vadd.f32 %v1344_v42, %v1311_v16  ;;  %v1361_v32 = vadd.f32 %v1345_v33, %v1312_v61  ;;  %v1362_v53 = vadd.f32 %v1346_v36, %v1313_v48  ;;  %v1363_v62 = vadd.f32 %v1347_v14, %v1314_v19  ;;  %6847 = vst [vmem:[#allocation78_spill] sm:$0xff] %v5073_v49  ;;  %v6848_v61 = vld [vmem:[#allocation32_spill] sm:$0xff]  ;;  %v6849_v19 = vld [vmem:[#allocation33_spill] sm:$0xff]  ;;  %v6856_v23 = vld [vmem:[#allocation38_spill] sm:$0xff] }
 0x104   : > { %v1364_v7 = vadd.f32 %v1348_v26, %v1315_v29  ;;  %v1365_v21 = vadd.f32 %v1349_v15, %v1316_v22  ;;  %v1366_v0 = vadd.f32 %v1350_v30, %v1317_v4  ;;  %v1367_v31 = vadd.f32 %v1351_v50, %v1318_v11  ;;  %v5082_v22 = vld [vmem:[%s3736_s6 + $0xfb] sm:$0xff]  ;;  %v6852_v4 = vld [vmem:[#allocation91_spill] sm:$0xff] }
 0x105   : > { %v1368_v63 = vadd.f32 %v1352_v38, %v1319_v1  ;;  %v1369_v12 = vadd.f32 %v1353_v58, %v1320_v51  ;;  %v1370_v60 = vadd.f32 %v1354_v52, %v1321_v41  ;;  %v1371_v56 = vadd.f32 %v1355_v46, %v1322_v34  ;;  %6850 = vst [vmem:[#allocation79_spill] sm:$0xff] %v5082_v22  ;;  %v6851_v34 = vld [vmem:[#allocation34_spill] sm:$0xff]  ;;  %v6853_v1 = vld [vmem:[#allocation35_spill] sm:$0xff]  ;;  %v6855_v54 = vld [vmem:[#allocation37_spill] sm:$0xff] }
 0x106   : > { %v1372_v10 = vadd.f32 %v1356_v39, %v1323_v5  ;;  %v1390_v16 = vmul.f32 %v4681_v24, %v4964_v17  ;;  %v1391_v48 = vmul.f32 %v6848_v61, %v4964_v17  ;;  %v1392_v29 = vmul.f32 %v6849_v19, %v4964_v17  ;;  %v6854_v5 = vld [vmem:[#allocation36_spill] sm:$0xff]  ;;  %v6857_v33 = vld [vmem:[#allocation39_spill] sm:$0xff] }
 0x107   : > { %v1393_v41 = vmul.f32 %v6851_v34, %v4964_v17  ;;  %v1394_v11 = vmul.f32 %v6852_v4, %v4964_v17  ;;  %v1395_v51 = vmul.f32 %v6853_v1, %v4964_v17  ;;  %v1396_v24 = vmul.f32 %v6854_v5, %v4964_v17  ;;  %v6858_v15 = vld [vmem:[#allocation40_spill] sm:$0xff] }
 0x108   : > { %v1397_v3 = vmul.f32 %v6855_v54, %v4964_v17  ;;  %v1398_v42 = vmul.f32 %v6856_v23, %v4964_v17  ;;  %v1399_v36 = vmul.f32 %v6857_v33, %v4964_v17  ;;  %v1400_v14 = vmul.f32 %v5067_v9, %v4964_v17 }
 0x109   : > { %v1401_v26 = vmul.f32 %v5070_v35, %v4964_v17  ;;  %v1402_v30 = vmul.f32 %v6858_v15, %v4964_v17  ;;  %v1403_v50 = vmul.f32 %v4714_v13, %v4964_v17  ;;  %v1404_v38 = vmul.f32 %v5073_v49, %v4964_v17 }
 0x10a   : > { %v1405_v58 = vmul.f32 %v5082_v22, %v4964_v17  ;;  %v1406_v52 = vadd.f32 %v1390_v16, %v1357_v55  ;;  %v1407_v46 = vadd.f32 %v1391_v48, %v1358_v2  ;;  %v1408_v39 = vadd.f32 %v1392_v29, %v1359_v59  ;;  %v5111_v17 = vld [vmem:[%s3736_s6 + $0xc4] sm:$0xff]  ;;  %v5114_v2 = vld [vmem:[%s3736_s6 + $0xcc] sm:$0xff]  ;;  %v5117_v59 = vld [vmem:[%s3736_s6 + $0xf4] sm:$0xff] }
 0x10b   : > { %v1409_v61 = vadd.f32 %v1393_v41, %v1360_v27  ;;  %v1410_v19 = vadd.f32 %v1394_v11, %v1361_v32  ;;  %v1411_v34 = vadd.f32 %v1395_v51, %v1362_v53  ;;  %v1412_v4 = vadd.f32 %v1396_v24, %v1363_v62  ;;  %6859 = vst [vmem:[#allocation80_spill] sm:$0xff] %v5111_v17  ;;  %v6862_v32 = vld [vmem:[#allocation41_spill] sm:$0xff]  ;;  %v6863_v62 = vld [vmem:[#allocation42_spill] sm:$0xff]  ;;  %v6869_v16 = vld [vmem:[#allocation47_spill] sm:$0xff] }
 0x10c   : > { %v1413_v1 = vadd.f32 %v1397_v3, %v1364_v7  ;;  %v1414_v5 = vadd.f32 %v1398_v42, %v1365_v21  ;;  %v1415_v13 = vadd.f32 %v1399_v36, %v1366_v0  ;;  %v1416_v54 = vadd.f32 %v1400_v14, %v1367_v31  ;;  %6860 = vst [vmem:[#allocation81_spill] sm:$0xff] %v5114_v2  ;;  %v5126_v21 = vld [vmem:[%s3736_s6 + $0xfc] sm:$0xff] }
 0x10d   : > { %v1417_v23 = vadd.f32 %v1401_v26, %v1368_v63  ;;  %v1418_v33 = vadd.f32 %v1402_v30, %v1369_v12  ;;  %v1419_v15 = vadd.f32 %v1403_v50, %v1370_v60  ;;  %v1420_v49 = vadd.f32 %v1404_v38, %v1371_v56  ;;  %6861 = vst [vmem:[#allocation82_spill] sm:$0xff] %v5117_v59  ;;  %v6865_v56 = vld [vmem:[#allocation43_spill] sm:$0xff]  ;;  %v6866_v0 = vld [vmem:[#allocation44_spill] sm:$0xff]  ;;  %v6867_v63 = vld [vmem:[#allocation45_spill] sm:$0xff] }
 0x10e   : > { %v1421_v55 = vadd.f32 %v1405_v58, %v1372_v10  ;;  %v1439_v27 = vmul.f32 %v4749_v44, %v4976_v18  ;;  %v1440_v53 = vmul.f32 %v6862_v32, %v4976_v18  ;;  %v1441_v7 = vmul.f32 %v6863_v62, %v4976_v18  ;;  %6864 = vst [vmem:[#allocation83_spill] sm:$0xff] %v5126_v21  ;;  %v6868_v10 = vld [vmem:[#allocation46_spill] sm:$0xff]  ;;  %v6870_v29 = vld [vmem:[#allocation76_spill] sm:$0xff]  ;;  %v6872_v42 = vld [vmem:[#allocation49_spill] sm:$0xff] }
 0x10f   : > { %v1442_v60 = vmul.f32 %v6865_v56, %v4976_v18  ;;  %v1443_v31 = vmul.f32 %v6866_v0, %v4976_v18  ;;  %v1444_v12 = vmul.f32 %v6867_v63, %v4976_v18  ;;  %v1445_v44 = vmul.f32 %v6868_v10, %v4976_v18  ;;  %v6871_v11 = vld [vmem:[#allocation48_spill] sm:$0xff]  ;;  %v5157_v32 = vld [vmem:[%s6303_s1 + $0x20] sm:$0x7f] }
 0x110   : > { %v1446_v48 = vmul.f32 %v6869_v16, %v4976_v18  ;;  %v1447_v41 = vmul.f32 %v6870_v29, %v4976_v18  ;;  %v1448_v51 = vmul.f32 %v6871_v11, %v4976_v18  ;;  %v1449_v24 = vmul.f32 %v5111_v17, %v4976_v18 }
 0x111   : > { %v1450_v3 = vmul.f32 %v5114_v2, %v4976_v18  ;;  %v1451_v36 = vmul.f32 %v6872_v42, %v4976_v18  ;;  %v1452_v14 = vmul.f32 %v4782_v37, %v4976_v18  ;;  %v1453_v26 = vmul.f32 %v5117_v59, %v4976_v18 }
 0x112   : > { %v1454_v30 = vmul.f32 %v5126_v21, %v4976_v18  ;;  %v1455_v50 = vadd.f32 %v1439_v27, %v1406_v52  ;;  %v1456_v38 = vadd.f32 %v1440_v53, %v1407_v46  ;;  %v1457_v58 = vadd.f32 %v1441_v7, %v1408_v39 }
 0x113   : > { %v1458_v62 = vadd.f32 %v1442_v60, %v1409_v61  ;;  %v1459_v56 = vadd.f32 %v1443_v31, %v1410_v19  ;;  %v1460_v0 = vadd.f32 %v1444_v12, %v1411_v34  ;;  %v1487_v37 = vperm.slane %v4937_v57, 5  ;;  %v5165_v34 = vld [vmem:[%s3736_s6 + $0xc5] sm:$0xff]  ;;  %v5168_v60 = vld [vmem:[%s3736_s6 + $0xcd] sm:$0xff] }
 0x114   : > { %v1461_v63 = vadd.f32 %v1445_v44, %v1412_v4  ;;  %v1462_v10 = vadd.f32 %v1446_v48, %v1413_v1  ;;  %v1463_v16 = vadd.f32 %v1447_v41, %v1414_v5  ;;  %v1464_v18 = vadd.f32 %v1448_v51, %v1415_v13  ;;  %6873 = vst [vmem:[#allocation84_spill] sm:$0xff] %v5165_v34  ;;  %v6875_v1 = vld [vmem:[#allocation50_spill] sm:$0xff]  ;;  %v6879_v31 = vld [vmem:[#allocation53_spill] sm:$0xff]  ;;  %v6881_v48 = vld [vmem:[#allocation55_spill] sm:$0xff] }
 0x115   : > { %v1465_v52 = vadd.f32 %v1449_v24, %v1416_v54  ;;  %v1466_v46 = vadd.f32 %v1450_v3, %v1417_v23  ;;  %v1467_v39 = vadd.f32 %v1451_v36, %v1418_v33  ;;  %v1468_v27 = vadd.f32 %v1452_v14, %v1419_v15  ;;  %6874 = vst [vmem:[#allocation85_spill] sm:$0xff] %v5168_v60  ;;  %v6877_v23 = vld [vmem:[#allocation51_spill] sm:$0xff]  ;;  %v6878_v15 = vld [vmem:[#allocation52_spill] sm:$0xff]  ;;  %v6880_v44 = vld [vmem:[#allocation54_spill] sm:$0xff] }
 0x116   : > { %v1469_v53 = vadd.f32 %v1453_v26, %v1420_v49  ;;  %v1470_v7 = vadd.f32 %v1454_v30, %v1421_v55  ;;  %v1536_v61 = vperm.slane %v4937_v57, 6  ;;  %v5162_v19 = vperm.slane %v5157_v32, 0  ;;  %v5179_v49 = vld [vmem:[%s3736_s6 + $0xf5] sm:$0xff]  ;;  %v5182_v57 = vld [vmem:[%s3736_s6 + $0xfd] sm:$0xff]  ;;  %v6884_v3 = vld [vmem:[#allocation58_spill] sm:$0xff] }
 0x117   : > { %v1488_v4 = vmul.f32 %v4817_v43, %v1487_v37  ;;  %v1489_v5 = vmul.f32 %v6875_v1, %v1487_v37  ;;  %v5173_v13 = vperm.slane %v5157_v32, 1  ;;  %v5176_v54 = vperm.slane %v5157_v32, 2  ;;  %6876 = vst [vmem:[#allocation87_spill] sm:$0xff] %v5179_v49  ;;  %v6882_v41 = vld [vmem:[#allocation56_spill] sm:$0xff]  ;;  %v6883_v51 = vld [vmem:[#allocation57_spill] sm:$0xff]  ;;  %v6885_v26 = vld [vmem:[#allocation59_spill] sm:$0xff] }
 0x118   : > { %v1490_v33 = vmul.f32 %v6877_v23, %v1487_v37  ;;  %v1491_v55 = vmul.f32 %v6878_v15, %v1487_v37  ;;  %v1492_v12 = vmul.f32 %v6879_v31, %v1487_v37  ;;  %v1493_v43 = vmul.f32 %v6880_v44, %v1487_v37  ;;  %v6886_v1 = vld [vmem:[#allocation60_spill] sm:$0xff] }
 0x119   : > { %v1494_v29 = vmul.f32 %v6881_v48, %v1487_v37  ;;  %v1495_v11 = vmul.f32 %v6882_v41, %v1487_v37  ;;  %v1496_v24 = vmul.f32 %v6883_v51, %v1487_v37  ;;  %v1497_v42 = vmul.f32 %v6884_v3, %v1487_v37 }
 0x11a   : > { %v1498_v36 = vmul.f32 %v5165_v34, %v1487_v37  ;;  %v1499_v14 = vmul.f32 %v5168_v60, %v1487_v37  ;;  %v1500_v30 = vmul.f32 %v6885_v26, %v1487_v37  ;;  %v1501_v23 = vmul.f32 %v6886_v1, %v1487_v37 }
 0x11b   : > { %v1502_v15 = vmul.f32 %v5179_v49, %v1487_v37  ;;  %v1503_v31 = vmul.f32 %v5182_v57, %v1487_v37  ;;  %v1504_v44 = vadd.f32 %v1488_v4, %v1455_v50  ;;  %v1505_v48 = vadd.f32 %v1489_v5, %v1456_v38  ;;  %v5199_v50 = vld [vmem:[%s3736_s6 + $0xc6] sm:$0xff]  ;;  %v5202_v38 = vld [vmem:[%s3736_s6 + $0xce] sm:$0xff] }
 0x11c   : > { %v1506_v41 = vadd.f32 %v1490_v33, %v1457_v58  ;;  %v1507_v51 = vadd.f32 %v1491_v55, %v1458_v62  ;;  %v1508_v21 = vadd.f32 %v1492_v12, %v1459_v56  ;;  %v1509_v3 = vadd.f32 %v1493_v43, %v1460_v0  ;;  %v6887_v58 = vld [vmem:[#allocation61_spill] sm:$0xff]  ;;  %v6888_v56 = vld [vmem:[#allocation62_spill] sm:$0xff]  ;;  %v5207_v0 = vld [vmem:[%s3736_s6 + $0xf6] sm:$0xff] }
 0x11d   : > { %v1510_v34 = vadd.f32 %v1494_v29, %v1461_v63  ;;  %v1511_v60 = vadd.f32 %v1495_v11, %v1462_v10  ;;  %v1512_v59 = vadd.f32 %v1496_v24, %v1463_v16  ;;  %v1513_v26 = vadd.f32 %v1497_v42, %v1464_v18  ;;  %v5210_v63 = vld [vmem:[%s3736_s6 + $0xfe] sm:$0xff]  ;;  %v6889_v10 = vld [vmem:[#allocation63_spill] sm:$0xff]  ;;  %v6896_v29 = vld [vmem:[#allocation70_spill] sm:$0xff] }
 0x11e   : > { %v1514_v2 = vadd.f32 %v1498_v36, %v1465_v52  ;;  %v1515_v1 = vadd.f32 %v1499_v14, %v1466_v46  ;;  %v1516_v17 = vadd.f32 %v1500_v30, %v1467_v39  ;;  %v1517_v49 = vadd.f32 %v1501_v23, %v1468_v27  ;;  %v6890_v18 = vld [vmem:[#allocation64_spill] sm:$0xff]  ;;  %v6891_v46 = vld [vmem:[#allocation65_spill] sm:$0xff]  ;;  %v6892_v27 = vld [vmem:[#allocation66_spill] sm:$0xff] }
 0x11f   : > { %v1518_v22 = vadd.f32 %v1502_v15, %v1469_v53  ;;  %v1519_v37 = vadd.f32 %v1503_v31, %v1470_v7  ;;  %v1537_v62 = vmul.f32 %v6887_v58, %v1536_v61  ;;  %v1538_v4 = vmul.f32 %v6888_v56, %v1536_v61  ;;  %v6893_v7 = vld [vmem:[#allocation67_spill] sm:$0xff]  ;;  %v6894_v33 = vld [vmem:[#allocation68_spill] sm:$0xff]  ;;  %v6895_v12 = vld [vmem:[#allocation69_spill] sm:$0xff] }
 0x120   : > { %v1539_v16 = vmul.f32 %v6889_v10, %v1536_v61  ;;  %v1540_v52 = vmul.f32 %v6890_v18, %v1536_v61  ;;  %v1541_v39 = vmul.f32 %v6891_v46, %v1536_v61  ;;  %v1542_v53 = vmul.f32 %v6892_v27, %v1536_v61  ;;  %v6897_v36 = vld [vmem:[#allocation71_spill] sm:$0xff]  ;;  %v3124_v27 = vld [vmem:[%s3736_s6 + $0x60] sm:$0xff] }
 0x121   : > { %v1543_v5 = vmul.f32 %v6893_v7, %v1536_v61  ;;  %v1544_v55 = vmul.f32 %v6894_v33, %v1536_v61  ;;  %v1545_v43 = vmul.f32 %v6895_v12, %v1536_v61  ;;  %v1546_v11 = vmul.f32 %v6896_v29, %v1536_v61  ;;  %v3125_v7 = vld [vmem:[%s3736_s6 + $0x68] sm:$0xff]  ;;  %v5229_v33 = vld [vmem:[%s3736_s6 + $0x78] sm:$0xff] }
 0x122   : > { %v1547_v24 = vmul.f32 %v5199_v50, %v1536_v61  ;;  %v1548_v42 = vmul.f32 %v5202_v38, %v1536_v61  ;;  %v1549_v14 = vmul.f32 %v6897_v36, %v1536_v61  ;;  %v1550_v30 = vmul.f32 %v4918_v6, %v1536_v61 }
 0x123   : > { %v1551_v23 = vmul.f32 %v5207_v0, %v1536_v61  ;;  %v1552_v15 = vmul.f32 %v5210_v63, %v1536_v61  ;;  %v1553_v31 = vadd.f32 %v1537_v62, %v1504_v44  ;;  %v1554_v58 = vadd.f32 %v1538_v4, %v1505_v48  ;;  %v5232_v61 = vld [vmem:[%s3736_s6 + $0x80] sm:$0xff]  ;;  %v5235_v44 = vld [vmem:[%s3736_s6 + $0x90] sm:$0xff]  ;;  %v5241_v62 = vld [vmem:[%s3736_s6 + $0xa8] sm:$0xff] }
 0x124   : > { %v1555_v56 = vadd.f32 %v1539_v16, %v1506_v41  ;;  %v1556_v10 = vadd.f32 %v1540_v52, %v1507_v51  ;;  %v1557_v18 = vadd.f32 %v1541_v39, %v1508_v21  ;;  %v1558_v46 = vadd.f32 %v1542_v53, %v1509_v3  ;;  %v5238_v21 = vld [vmem:[%s3736_s6 + $0x98] sm:$0xff]  ;;  %6899 = vst [vmem:[#allocation89_spill] sm:$0xff] %v5241_v62  ;;  %v5244_v4 = vld [vmem:[%s3736_s6 + $0xb0] sm:$0xff]  ;;  %v5255_v39 = vld [vmem:[%s3736_s6 + $0x108] sm:$0xff] }
 0x125   : > { %v1559_v6 = vadd.f32 %v1543_v5, %v1510_v34  ;;  %v1560_v12 = vadd.f32 %v1544_v55, %v1511_v60  ;;  %v1561_v29 = vadd.f32 %v1545_v43, %v1512_v59  ;;  %v1562_v36 = vadd.f32 %v1546_v11, %v1513_v26  ;;  %6898 = vst [vmem:[#allocation88_spill] sm:$0xff] %v5238_v21  ;;  %v5247_v59 = vld [vmem:[%s3736_s6 + $0xd8] sm:$0xff]  ;;  %v5250_v26 = vld [vmem:[%s3736_s6 + $0xe0] sm:$0xff] }
 0x126   : > { %v1563_v48 = vadd.f32 %v1547_v24, %v1514_v2  ;;  %v1564_v41 = vadd.f32 %v1548_v42, %v1515_v1  ;;  %v1565_v51 = vadd.f32 %v1549_v14, %v1516_v17  ;;  %v1566_v3 = vadd.f32 %v1550_v30, %v1517_v49  ;;  %6900 = vst [vmem:[#allocation92_spill] sm:$0xff] %v5244_v4  ;;  %v5258_v2 = vld [vmem:[%s3736_s6 + $0x110] sm:$0xff]  ;;  %v6904_v24 = vld [vmem:[#allocation72_spill] sm:$0xff] }
 0x127   : > { %v1567_v34 = vadd.f32 %v1551_v23, %v1518_v22  ;;  %v1568_v60 = vadd.f32 %v1552_v15, %v1519_v37  ;;  %6901 = vst [vmem:[#allocation5_spill] sm:$0xff] %v5247_v59  ;;  %v1589_v16 = vmul.f32 %v3124_v27, %v5162_v19  ;;  %v1590_v52 = vmul.f32 %v3125_v7, %v5162_v19 }
 0x128   : > { %6902 = vst [vmem:[#allocation6_spill] sm:$0xff] %v5250_v26  ;;  %v1591_v17 = vmul.f32 %v5229_v33, %v5162_v19  ;;  %v1592_v49 = vmul.f32 %v5232_v61, %v5162_v19  ;;  %v1593_v22 = vmul.f32 %v5235_v44, %v5162_v19  ;;  %v1594_v1 = vmul.f32 %v5238_v21, %v5162_v19 }
 0x129   : > { %6903 = vst [vmem:[#allocation86_spill] sm:$0xff] %v5255_v39  ;;  %v1595_v37 = vmul.f32 %v5241_v62, %v5162_v19  ;;  %v1596_v53 = vmul.f32 %v5244_v4, %v5162_v19  ;;  %v1597_v5 = vmul.f32 %v4957_v8, %v5162_v19  ;;  %v1598_v55 = vmul.f32 %v4967_v28, %v5162_v19 }
 0x12a   : > { %v1599_v43 = vmul.f32 %v5247_v59, %v5162_v19  ;;  %v1600_v11 = vmul.f32 %v5250_v26, %v5162_v19  ;;  %v1601_v42 = vmul.f32 %v6904_v24, %v5162_v19  ;;  %v1602_v14 = vmul.f32 %v4979_v20, %v5162_v19  ;;  %v3140_v24 = vld [vmem:[%s3736_s6 + $0x61] sm:$0xff]  ;;  %v3141_v59 = vld [vmem:[%s3736_s6 + $0x69] sm:$0xff]  ;;  %v5291_v20 = vld [vmem:[%s3736_s6 + $0x79] sm:$0xff] }
 0x12b   : > { %v1603_v8 = vmul.f32 %v5255_v39, %v5162_v19  ;;  %v1604_v28 = vmul.f32 %v5258_v2, %v5162_v19  ;;  %v1605_v30 = vadd.f32 %v1589_v16, %v1553_v31  ;;  %v1606_v23 = vadd.f32 %v1590_v52, %v1554_v58  ;;  %v5294_v19 = vld [vmem:[%s3736_s6 + $0x81] sm:$0xff]  ;;  %v5297_v31 = vld [vmem:[%s3736_s6 + $0x91] sm:$0xff]  ;;  %v5300_v58 = vld [vmem:[%s3736_s6 + $0x99] sm:$0xff] }
 0x12c   : > { %v1607_v15 = vadd.f32 %v1591_v17, %v1555_v56  ;;  %v1608_v27 = vadd.f32 %v1592_v49, %v1556_v10  ;;  %v1609_v7 = vadd.f32 %v1593_v22, %v1557_v18  ;;  %v1610_v26 = vadd.f32 %v1594_v1, %v1558_v46  ;;  %6905 = vst [vmem:[#allocation7_spill] sm:$0xff] %v5297_v31  ;;  %v5303_v16 = vld [vmem:[%s3736_s6 + $0xa9] sm:$0xff]  ;;  %v5306_v52 = vld [vmem:[%s3736_s6 + $0xb1] sm:$0xff] }
 0x12d   : > { %v1611_v4 = vadd.f32 %v1595_v37, %v1559_v6  ;;  %v1612_v39 = vadd.f32 %v1596_v53, %v1560_v12  ;;  %v1613_v62 = vadd.f32 %v1597_v5, %v1561_v29  ;;  %v1614_v21 = vadd.f32 %v1598_v55, %v1562_v36  ;;  %6906 = vst [vmem:[#allocation8_spill] sm:$0xff] %v5300_v58  ;;  %v5309_v29 = vld [vmem:[%s3736_s6 + $0xd9] sm:$0xff]  ;;  %v5312_v36 = vld [vmem:[%s3736_s6 + $0xe1] sm:$0xff]  ;;  %v5317_v22 = vld [vmem:[%s3736_s6 + $0x109] sm:$0xff] }
 0x12e   : > { %v1615_v56 = vadd.f32 %v1599_v43, %v1563_v48  ;;  %v1616_v10 = vadd.f32 %v1600_v11, %v1564_v41  ;;  %v1617_v18 = vadd.f32 %v1601_v42, %v1565_v51  ;;  %v1618_v46 = vadd.f32 %v1602_v14, %v1566_v3  ;;  %6907 = vst [vmem:[#allocation9_spill] sm:$0xff] %v5303_v16  ;;  %v5320_v48 = vld [vmem:[%s3736_s6 + $0x111] sm:$0xff]  ;;  %v6912_v37 = vld [vmem:[#allocation73_spill] sm:$0xff]  ;;  %v6913_v43 = vld [vmem:[#allocation74_spill] sm:$0xff] }
 0x12f   : > { %6908 = vst [vmem:[#allocation10_spill] sm:$0xff] %v5306_v52  ;;  %v1619_v6 = vadd.f32 %v1603_v8, %v1567_v34  ;;  %v1620_v12 = vadd.f32 %v1604_v28, %v1568_v60  ;;  %v1638_v17 = vmul.f32 %v3140_v24, %v5173_v13  ;;  %v1639_v49 = vmul.f32 %v3141_v59, %v5173_v13 }
 0x130   : > { %6909 = vst [vmem:[#allocation11_spill] sm:$0xff] %v5309_v29  ;;  %v1640_v41 = vmul.f32 %v5291_v20, %v5173_v13  ;;  %v1641_v51 = vmul.f32 %v5294_v19, %v5173_v13  ;;  %v1642_v3 = vmul.f32 %v5297_v31, %v5173_v13  ;;  %v1643_v34 = vmul.f32 %v5300_v58, %v5173_v13 }
 0x131   : > { %6910 = vst [vmem:[#allocation12_spill] sm:$0xff] %v5312_v36  ;;  %v1644_v60 = vmul.f32 %v5303_v16, %v5173_v13  ;;  %v1645_v59 = vmul.f32 %v5306_v52, %v5173_v13  ;;  %v1646_v1 = vmul.f32 %v4995_v40, %v5173_v13  ;;  %v1647_v53 = vmul.f32 %v6912_v37, %v5173_v13  ;;  %v3157_v52 = vld [vmem:[%s3736_s6 + $0x6a] sm:$0xff] }
 0x132   : > { %6911 = vst [vmem:[#allocation13_spill] sm:$0xff] %v5317_v22  ;;  %v1648_v5 = vmul.f32 %v5309_v29, %v5173_v13  ;;  %v1649_v55 = vmul.f32 %v5312_v36, %v5173_v13  ;;  %v1650_v11 = vmul.f32 %v6913_v43, %v5173_v13  ;;  %v1651_v42 = vmul.f32 %v5007_v25, %v5173_v13  ;;  %v3156_v43 = vld [vmem:[%s3736_s6 + $0x62] sm:$0xff]  ;;  %v5353_v25 = vld [vmem:[%s3736_s6 + $0x7a] sm:$0xff] }
 0x133   : > { %v1652_v40 = vmul.f32 %v5317_v22, %v5173_v13  ;;  %v1653_v14 = vmul.f32 %v5320_v48, %v5173_v13  ;;  %v1654_v8 = vadd.f32 %v1638_v17, %v1605_v30  ;;  %v1655_v28 = vadd.f32 %v1639_v49, %v1606_v23  ;;  %6914 = vst [vmem:[#allocation14_spill] sm:$0xff] %v5353_v25  ;;  %v5356_v13 = vld [vmem:[%s3736_s6 + $0x82] sm:$0xff]  ;;  %v5359_v30 = vld [vmem:[%s3736_s6 + $0x92] sm:$0xff]  ;;  %v5362_v23 = vld [vmem:[%s3736_s6 + $0x9a] sm:$0xff] }
 0x134   : > { %v1656_v24 = vadd.f32 %v1640_v41, %v1607_v15  ;;  %v1657_v37 = vadd.f32 %v1641_v51, %v1608_v27  ;;  %v1658_v36 = vadd.f32 %v1642_v3, %v1609_v7  ;;  %v1659_v29 = vadd.f32 %v1643_v34, %v1610_v26  ;;  %6915 = vst [vmem:[#allocation15_spill] sm:$0xff] %v5356_v13  ;;  %v5365_v17 = vld [vmem:[%s3736_s6 + $0xaa] sm:$0xff]  ;;  %v5368_v49 = vld [vmem:[%s3736_s6 + $0xb2] sm:$0xff] }
 0x135   : > { %v1660_v16 = vadd.f32 %v1644_v60, %v1611_v4  ;;  %v1661_v22 = vadd.f32 %v1645_v59, %v1612_v39  ;;  %v1662_v58 = vadd.f32 %v1646_v1, %v1613_v62  ;;  %v1663_v31 = vadd.f32 %v1647_v53, %v1614_v21  ;;  %6916 = vst [vmem:[#allocation16_spill] sm:$0xff] %v5359_v30  ;;  %v5371_v62 = vld [vmem:[%s3736_s6 + $0xda] sm:$0xff]  ;;  %v5374_v21 = vld [vmem:[%s3736_s6 + $0xe2] sm:$0xff]  ;;  %v5379_v3 = vld [vmem:[%s3736_s6 + $0x10a] sm:$0xff] }
 0x136   : > { %6917 = vst [vmem:[#allocation17_spill] sm:$0xff] %v5362_v23  ;;  %v1664_v26 = vadd.f32 %v1648_v5, %v1615_v56  ;;  %v1665_v15 = vadd.f32 %v1649_v55, %v1616_v10  ;;  %v1666_v27 = vadd.f32 %v1650_v11, %v1617_v18  ;;  %v1667_v7 = vadd.f32 %v1651_v42, %v1618_v46  ;;  %v5382_v56 = vld [vmem:[%s3736_s6 + $0x112] sm:$0xff]  ;;  %v6925_v5 = vld [vmem:[#allocation77_spill] sm:$0xff] }
 0x137   : > { %6918 = vst [vmem:[#allocation18_spill] sm:$0xff] %v5365_v17  ;;  %v1668_v4 = vadd.f32 %v1652_v40, %v1619_v6  ;;  %v1669_v39 = vadd.f32 %v1653_v14, %v1620_v12  ;;  %v1687_v41 = vmul.f32 %v3156_v43, %v5176_v54  ;;  %v1688_v51 = vmul.f32 %v3157_v52, %v5176_v54  ;;  %v6924_v60 = vld [vmem:[#allocation75_spill] sm:$0xff] }
 0x138   : > { %6919 = vst [vmem:[#allocation19_spill] sm:$0xff] %v5368_v49  ;;  %v1689_v10 = vmul.f32 %v5353_v25, %v5176_v54  ;;  %v1690_v18 = vmul.f32 %v5356_v13, %v5176_v54  ;;  %v1691_v46 = vmul.f32 %v5359_v30, %v5176_v54  ;;  %v1692_v6 = vmul.f32 %v5362_v23, %v5176_v54  ;;  %v3189_v23 = vld [vmem:[%s3736_s6 + $0x6c] sm:$0xff]  ;;  %v5479_v25 = vld [vmem:[%s3736_s6 + $0x7c] sm:$0xff] }
 0x139   : > { %6920 = vst [vmem:[#allocation20_spill] sm:$0xff] %v5371_v62  ;;  %v1693_v12 = vmul.f32 %v5365_v17, %v5176_v54  ;;  %v1694_v52 = vmul.f32 %v5368_v49, %v5176_v54  ;;  %v1695_v34 = vmul.f32 %v5023_v47, %v5176_v54  ;;  %v1696_v59 = vmul.f32 %v6924_v60, %v5176_v54 }
 0x13a   : > { %6921 = vst [vmem:[#allocation90_spill] sm:$0xff] %v5374_v21  ;;  %v1697_v1 = vmul.f32 %v5371_v62, %v5176_v54  ;;  %v1698_v53 = vmul.f32 %v5374_v21, %v5176_v54  ;;  %v1699_v55 = vmul.f32 %v6925_v5, %v5176_v54  ;;  %v1700_v11 = vmul.f32 %v5038_v45, %v5176_v54  ;;  %v5416_v45 = vld [vmem:[%s6303_s1 + $0x28] sm:$0x7f] }
 0x13b   : > { %6922 = vst [vmem:[#allocation21_spill] sm:$0xff] %v5379_v3  ;;  %v1701_v47 = vmul.f32 %v5379_v3, %v5176_v54  ;;  %v1702_v42 = vmul.f32 %v5382_v56, %v5176_v54  ;;  %v1703_v40 = vadd.f32 %v1687_v41, %v1654_v8  ;;  %v1704_v14 = vadd.f32 %v1688_v51, %v1655_v28  ;;  %v3172_v28 = vld [vmem:[%s3736_s6 + $0x63] sm:$0xff] }
 0x13c   : > { %6923 = vst [vmem:[#allocation22_spill] sm:$0xff] %v5382_v56  ;;  %v1705_v43 = vadd.f32 %v1689_v10, %v1656_v24  ;;  %v1706_v60 = vadd.f32 %v1690_v18, %v1657_v37  ;;  %v1707_v21 = vadd.f32 %v1691_v46, %v1658_v36  ;;  %v1735_v5 = vperm.slane %v5157_v32, 3  ;;  %v3173_v24 = vld [vmem:[%s3736_s6 + $0x6b] sm:$0xff]  ;;  %v5421_v10 = vld [vmem:[%s3736_s6 + $0x7b] sm:$0xff]  ;;  %v5424_v18 = vld [vmem:[%s3736_s6 + $0x83] sm:$0xff] }
 0x13d   : > { %v1708_v62 = vadd.f32 %v1692_v6, %v1659_v29  ;;  %v1709_v3 = vadd.f32 %v1693_v12, %v1660_v16  ;;  %v1710_v54 = vadd.f32 %v1694_v52, %v1661_v22  ;;  %v1711_v8 = vadd.f32 %v1695_v34, %v1662_v58  ;;  %6926 = vst [vmem:[#allocation23_spill] sm:$0xff] %v5421_v10  ;;  %v5427_v29 = vld [vmem:[%s3736_s6 + $0x93] sm:$0xff]  ;;  %v5430_v58 = vld [vmem:[%s3736_s6 + $0x9b] sm:$0xff]  ;;  %v5433_v6 = vld [vmem:[%s3736_s6 + $0xab] sm:$0xff] }
 0x13e   : > { %v1712_v37 = vadd.f32 %v1696_v59, %v1663_v31  ;;  %v1713_v36 = vadd.f32 %v1697_v1, %v1664_v26  ;;  %v1714_v41 = vadd.f32 %v1698_v53, %v1665_v15  ;;  %v1715_v51 = vadd.f32 %v1699_v55, %v1666_v27  ;;  %6927 = vst [vmem:[#allocation24_spill] sm:$0xff] %v5424_v18  ;;  %v5436_v12 = vld [vmem:[%s3736_s6 + $0xb3] sm:$0xff]  ;;  %v5442_v26 = vld [vmem:[%s3736_s6 + $0xdb] sm:$0xff]  ;;  %v5445_v15 = vld [vmem:[%s3736_s6 + $0xe3] sm:$0xff] }
 0x13f   : > { %6928 = vst [vmem:[#allocation25_spill] sm:$0xff] %v5427_v29  ;;  %v1716_v16 = vadd.f32 %v1700_v11, %v1667_v7  ;;  %v1717_v22 = vadd.f32 %v1701_v47, %v1668_v4  ;;  %v1718_v46 = vadd.f32 %v1702_v42, %v1669_v39  ;;  %v5439_v31 = vperm.slane %v5157_v32, 4  ;;  %v5457_v39 = vld [vmem:[%s3736_s6 + $0x10b] sm:$0xff]  ;;  %v5460_v34 = vld [vmem:[%s3736_s6 + $0x113] sm:$0xff] }
 0x140   : > { %6929 = vst [vmem:[#allocation26_spill] sm:$0xff] %v5430_v58  ;;  %v1736_v27 = vmul.f32 %v3172_v28, %v1735_v5  ;;  %v5448_v52 = vperm.slane %v5157_v32, 5  ;;  %v5451_v7 = vperm.slane %v5157_v32, 6  ;;  %v5454_v4 = vperm.slane %v5416_v45, 0  ;;  %v6934_v56 = vld [vmem:[#allocation78_spill] sm:$0xff] }
 0x141   : > { %6930 = vst [vmem:[#allocation27_spill] sm:$0xff] %v5433_v6  ;;  %v1737_v59 = vmul.f32 %v3173_v24, %v1735_v5  ;;  %v1738_v1 = vmul.f32 %v5421_v10, %v1735_v5  ;;  %v1739_v53 = vmul.f32 %v5424_v18, %v1735_v5  ;;  %v1740_v55 = vmul.f32 %v5427_v29, %v1735_v5  ;;  %v6935_v29 = vld [vmem:[#allocation79_spill] sm:$0xff] }
 0x142   : > { %6931 = vst [vmem:[#allocation28_spill] sm:$0xff] %v5436_v12  ;;  %v1741_v11 = vmul.f32 %v5430_v58, %v1735_v5  ;;  %v1742_v32 = vmul.f32 %v5433_v6, %v1735_v5  ;;  %v1743_v47 = vmul.f32 %v5436_v12, %v1735_v5  ;;  %v1744_v42 = vmul.f32 %v5067_v9, %v1735_v5 }
 0x143   : > { %6932 = vst [vmem:[#allocation29_spill] sm:$0xff] %v5442_v26  ;;  %v1745_v28 = vmul.f32 %v5070_v35, %v1735_v5  ;;  %v1746_v24 = vmul.f32 %v5442_v26, %v1735_v5  ;;  %v1747_v10 = vmul.f32 %v5445_v15, %v1735_v5  ;;  %v1748_v18 = vmul.f32 %v6934_v56, %v1735_v5 }
 0x144   : > { %6933 = vst [vmem:[#allocation30_spill] sm:$0xff] %v5445_v15  ;;  %v1749_v58 = vmul.f32 %v6935_v29, %v1735_v5  ;;  %v1750_v6 = vmul.f32 %v5457_v39, %v1735_v5  ;;  %v1751_v49 = vmul.f32 %v5460_v34, %v1735_v5  ;;  %v1752_v12 = vadd.f32 %v1736_v27, %v1703_v40  ;;  %v3188_v15 = vld [vmem:[%s3736_s6 + $0x64] sm:$0xff]  ;;  %v5485_v40 = vld [vmem:[%s3736_s6 + $0x94] sm:$0xff]  ;;  %v5488_v27 = vld [vmem:[%s3736_s6 + $0x9c] sm:$0xff] }
 0x145   : > { %v1753_v17 = vadd.f32 %v1737_v59, %v1704_v14  ;;  %v1754_v9 = vadd.f32 %v1738_v1, %v1705_v43  ;;  %v1755_v35 = vadd.f32 %v1739_v53, %v1706_v60  ;;  %v1756_v26 = vadd.f32 %v1740_v55, %v1707_v21  ;;  %6936 = vst [vmem:[#allocation31_spill] sm:$0xff] %v5479_v25  ;;  %v5482_v5 = vld [vmem:[%s3736_s6 + $0x84] sm:$0xff]  ;;  %v5497_v1 = vld [vmem:[%s3736_s6 + $0xdc] sm:$0xff] }
 0x146   : > { %v1757_v30 = vadd.f32 %v1741_v11, %v1708_v62  ;;  %v1758_v56 = vadd.f32 %v1742_v32, %v1709_v3  ;;  %v1759_v13 = vadd.f32 %v1743_v47, %v1710_v54  ;;  %v1760_v29 = vadd.f32 %v1744_v42, %v1711_v8  ;;  %6937 = vst [vmem:[#allocation32_spill] sm:$0xff] %v5482_v5  ;;  %v5491_v62 = vld [vmem:[%s3736_s6 + $0xac] sm:$0xff]  ;;  %v5494_v3 = vld [vmem:[%s3736_s6 + $0xb4] sm:$0xff]  ;;  %v5500_v53 = vld [vmem:[%s3736_s6 + $0xe4] sm:$0xff] }
 0x147   : > { %6938 = vst [vmem:[#allocation33_spill] sm:$0xff] %v5485_v40  ;;  %v1761_v14 = vadd.f32 %v1745_v28, %v1712_v37  ;;  %v1762_v43 = vadd.f32 %v1746_v24, %v1713_v36  ;;  %v1763_v21 = vadd.f32 %v1747_v10, %v1714_v41  ;;  %v1764_v60 = vadd.f32 %v1748_v18, %v1715_v51  ;;  %v5504_v11 = vld [vmem:[%s3736_s6 + $0x10c] sm:$0xff]  ;;  %v5507_v37 = vld [vmem:[%s3736_s6 + $0x114] sm:$0xff] }
 0x148   : > { %6939 = vst [vmem:[#allocation34_spill] sm:$0xff] %v5488_v27  ;;  %v1765_v54 = vadd.f32 %v1749_v58, %v1716_v16  ;;  %v1766_v8 = vadd.f32 %v1750_v6, %v1717_v22  ;;  %v1767_v59 = vadd.f32 %v1751_v49, %v1718_v46  ;;  %v1785_v55 = vmul.f32 %v3188_v15, %v5439_v31  ;;  %v6945_v16 = vld [vmem:[#allocation80_spill] sm:$0xff]  ;;  %v6946_v46 = vld [vmem:[#allocation81_spill] sm:$0xff]  ;;  %v6947_v32 = vld [vmem:[#allocation82_spill] sm:$0xff] }
 0x149   : > { %6940 = vst [vmem:[#allocation91_spill] sm:$0xff] %v5491_v62  ;;  %v1786_v36 = vmul.f32 %v3189_v23, %v5439_v31  ;;  %v1787_v41 = vmul.f32 %v5479_v25, %v5439_v31  ;;  %v1788_v51 = vmul.f32 %v5482_v5, %v5439_v31  ;;  %v1789_v49 = vmul.f32 %v5485_v40, %v5439_v31  ;;  %v6948_v42 = vld [vmem:[#allocation83_spill] sm:$0xff] }
 0x14a   : > { %6941 = vst [vmem:[#allocation35_spill] sm:$0xff] %v5494_v3  ;;  %v1790_v10 = vmul.f32 %v5488_v27, %v5439_v31  ;;  %v1791_v18 = vmul.f32 %v5491_v62, %v5439_v31  ;;  %v1792_v23 = vmul.f32 %v5494_v3, %v5439_v31  ;;  %v1793_v22 = vmul.f32 %v6945_v16, %v5439_v31  ;;  %v3205_v27 = vld [vmem:[%s3736_s6 + $0x6d] sm:$0xff] }
 0x14b   : > { %6942 = vst [vmem:[#allocation36_spill] sm:$0xff] %v5497_v1  ;;  %v1794_v58 = vmul.f32 %v6946_v46, %v5439_v31  ;;  %v1795_v6 = vmul.f32 %v5497_v1, %v5439_v31  ;;  %v1796_v15 = vmul.f32 %v5500_v53, %v5439_v31  ;;  %v1797_v47 = vmul.f32 %v6947_v32, %v5439_v31  ;;  %v3204_v32 = vld [vmem:[%s3736_s6 + $0x65] sm:$0xff] }
 0x14c   : > { %6943 = vst [vmem:[#allocation37_spill] sm:$0xff] %v5500_v53  ;;  %v1798_v28 = vmul.f32 %v6948_v42, %v5439_v31  ;;  %v1799_v24 = vmul.f32 %v5504_v11, %v5439_v31  ;;  %v1800_v16 = vmul.f32 %v5507_v37, %v5439_v31  ;;  %v1801_v46 = vadd.f32 %v1785_v55, %v1752_v12  ;;  %v5544_v31 = vld [vmem:[%s3736_s6 + $0x85] sm:$0xff]  ;;  %v5550_v55 = vld [vmem:[%s3736_s6 + $0x9d] sm:$0xff] }
 0x14d   : > { %6944 = vst [vmem:[#allocation38_spill] sm:$0xff] %v5504_v11  ;;  %v1802_v1 = vadd.f32 %v1786_v36, %v1753_v17  ;;  %v1803_v3 = vadd.f32 %v1787_v41, %v1754_v9  ;;  %v1804_v53 = vadd.f32 %v1788_v51, %v1755_v35  ;;  %v1805_v62 = vadd.f32 %v1789_v49, %v1756_v26  ;;  %v5541_v11 = vld [vmem:[%s3736_s6 + $0x7d] sm:$0xff]  ;;  %v5547_v17 = vld [vmem:[%s3736_s6 + $0x95] sm:$0xff]  ;;  %v5562_v51 = vld [vmem:[%s3736_s6 + $0xe5] sm:$0xff] }
 0x14e   : > { %v1806_v40 = vadd.f32 %v1790_v10, %v1757_v30  ;;  %v1807_v5 = vadd.f32 %v1791_v18, %v1758_v56  ;;  %v1808_v42 = vadd.f32 %v1792_v23, %v1759_v13  ;;  %v1809_v25 = vadd.f32 %v1793_v22, %v1760_v29  ;;  %6949 = vst [vmem:[#allocation39_spill] sm:$0xff] %v5544_v31  ;;  %v5553_v30 = vld [vmem:[%s3736_s6 + $0xad] sm:$0xff]  ;;  %v5556_v56 = vld [vmem:[%s3736_s6 + $0xb5] sm:$0xff]  ;;  %v5559_v41 = vld [vmem:[%s3736_s6 + $0xdd] sm:$0xff] }
 0x14f   : > { %6950 = vst [vmem:[#allocation40_spill] sm:$0xff] %v5547_v17  ;;  %v1810_v12 = vadd.f32 %v1794_v58, %v1761_v14  ;;  %v1811_v9 = vadd.f32 %v1795_v6, %v1762_v43  ;;  %v1812_v26 = vadd.f32 %v1796_v15, %v1763_v21  ;;  %v1813_v35 = vadd.f32 %v1797_v47, %v1764_v60  ;;  %v5566_v10 = vld [vmem:[%s3736_s6 + $0x10d] sm:$0xff]  ;;  %v5569_v14 = vld [vmem:[%s3736_s6 + $0x115] sm:$0xff]  ;;  %v6958_v22 = vld [vmem:[#allocation85_spill] sm:$0xff] }
 0x150   : > { %6951 = vst [vmem:[#allocation41_spill] sm:$0xff] %v5550_v55  ;;  %v1814_v13 = vadd.f32 %v1798_v28, %v1765_v54  ;;  %v1815_v29 = vadd.f32 %v1799_v24, %v1766_v8  ;;  %v1816_v36 = vadd.f32 %v1800_v16, %v1767_v59  ;;  %v1834_v49 = vmul.f32 %v3204_v32, %v5448_v52  ;;  %v6957_v18 = vld [vmem:[#allocation84_spill] sm:$0xff]  ;;  %v6959_v47 = vld [vmem:[#allocation87_spill] sm:$0xff] }
 0x151   : > { %6952 = vst [vmem:[#allocation42_spill] sm:$0xff] %v5553_v30  ;;  %v1835_v43 = vmul.f32 %v3205_v27, %v5448_v52  ;;  %v1836_v21 = vmul.f32 %v5541_v11, %v5448_v52  ;;  %v1837_v60 = vmul.f32 %v5544_v31, %v5448_v52  ;;  %v1838_v54 = vmul.f32 %v5547_v17, %v5448_v52 }
 0x152   : > { %6953 = vst [vmem:[#allocation43_spill] sm:$0xff] %v5556_v56  ;;  %v1839_v8 = vmul.f32 %v5550_v55, %v5448_v52  ;;  %v1840_v59 = vmul.f32 %v5553_v30, %v5448_v52  ;;  %v1841_v27 = vmul.f32 %v5556_v56, %v5448_v52  ;;  %v1842_v23 = vmul.f32 %v6957_v18, %v5448_v52  ;;  %v3221_v30 = vld [vmem:[%s3736_s6 + $0x6e] sm:$0xff] }
 0x153   : > { %6954 = vst [vmem:[#allocation44_spill] sm:$0xff] %v5559_v41  ;;  %v1843_v58 = vmul.f32 %v6958_v22, %v5448_v52  ;;  %v1844_v6 = vmul.f32 %v5559_v41, %v5448_v52  ;;  %v1845_v15 = vmul.f32 %v5562_v51, %v5448_v52  ;;  %v1846_v28 = vmul.f32 %v6959_v47, %v5448_v52  ;;  %v3220_v47 = vld [vmem:[%s3736_s6 + $0x66] sm:$0xff] }
 0x154   : > { %6955 = vst [vmem:[#allocation45_spill] sm:$0xff] %v5562_v51  ;;  %v1847_v24 = vmul.f32 %v5182_v57, %v5448_v52  ;;  %v1848_v16 = vmul.f32 %v5566_v10, %v5448_v52  ;;  %v1849_v32 = vmul.f32 %v5569_v14, %v5448_v52  ;;  %v1850_v18 = vadd.f32 %v1834_v49, %v1801_v46  ;;  %v5606_v52 = vld [vmem:[%s3736_s6 + $0x86] sm:$0xff]  ;;  %v5612_v49 = vld [vmem:[%s3736_s6 + $0x9e] sm:$0xff] }
 0x155   : > { %6956 = vst [vmem:[#allocation46_spill] sm:$0xff] %v5566_v10  ;;  %v1851_v22 = vadd.f32 %v1835_v43, %v1802_v1  ;;  %v1852_v41 = vadd.f32 %v1836_v21, %v1803_v3  ;;  %v1853_v51 = vadd.f32 %v1837_v60, %v1804_v53  ;;  %v1854_v56 = vadd.f32 %v1838_v54, %v1805_v62  ;;  %v5603_v10 = vld [vmem:[%s3736_s6 + $0x7e] sm:$0xff]  ;;  %v5609_v3 = vld [vmem:[%s3736_s6 + $0x96] sm:$0xff]  ;;  %v5624_v60 = vld [vmem:[%s3736_s6 + $0xe6] sm:$0xff] }
 0x156   : > { %v1855_v55 = vadd.f32 %v1839_v8, %v1806_v40  ;;  %v1856_v17 = vadd.f32 %v1840_v59, %v1807_v5  ;;  %v1857_v57 = vadd.f32 %v1841_v27, %v1808_v42  ;;  %v1858_v31 = vadd.f32 %v1842_v23, %v1809_v25  ;;  %6960 = vst [vmem:[#allocation47_spill] sm:$0xff] %v5609_v3  ;;  %v5615_v40 = vld [vmem:[%s3736_s6 + $0xae] sm:$0xff]  ;;  %v5618_v5 = vld [vmem:[%s3736_s6 + $0xb6] sm:$0xff]  ;;  %v5621_v21 = vld [vmem:[%s3736_s6 + $0xde] sm:$0xff] }
 0x157   : > { %v1859_v1 = vadd.f32 %v1843_v58, %v1810_v12  ;;  %v1860_v53 = vadd.f32 %v1844_v6, %v1811_v9  ;;  %v1861_v62 = vadd.f32 %v1845_v15, %v1812_v26  ;;  %v1862_v46 = vadd.f32 %v1846_v28, %v1813_v35  ;;  %6961 = vst [vmem:[#allocation76_spill] sm:$0xff] %v5612_v49  ;;  %v5628_v8 = vld [vmem:[%s3736_s6 + $0x10e] sm:$0xff]  ;;  %v5631_v12 = vld [vmem:[%s3736_s6 + $0x116] sm:$0xff] }
 0x158   : > { %6962 = vst [vmem:[#allocation48_spill] sm:$0xff] %v5615_v40  ;;  %v1863_v42 = vadd.f32 %v1847_v24, %v1814_v13  ;;  %v1864_v25 = vadd.f32 %v1848_v16, %v1815_v29  ;;  %v1865_v43 = vadd.f32 %v1849_v32, %v1816_v36  ;;  %v1883_v54 = vmul.f32 %v3220_v47, %v5451_v7 }
 0x159   : > { %6963 = vst [vmem:[#allocation49_spill] sm:$0xff] %v5618_v5  ;;  %v1884_v9 = vmul.f32 %v3221_v30, %v5451_v7  ;;  %v1885_v26 = vmul.f32 %v5603_v10, %v5451_v7  ;;  %v1886_v35 = vmul.f32 %v5606_v52, %v5451_v7  ;;  %v1887_v13 = vmul.f32 %v5609_v3, %v5451_v7  ;;  %v5663_v3 = vld [vmem:[%s3736_s6 + $0xc0] sm:$0xff] }
 0x15a   : > { %6964 = vst [vmem:[#allocation50_spill] sm:$0xff] %v5621_v21  ;;  %v1888_v29 = vmul.f32 %v5612_v49, %v5451_v7  ;;  %v1889_v36 = vmul.f32 %v5615_v40, %v5451_v7  ;;  %v1890_v59 = vmul.f32 %v5618_v5, %v5451_v7  ;;  %v1891_v30 = vmul.f32 %v5199_v50, %v5451_v7 }
 0x15b   : > { %6965 = vst [vmem:[#allocation51_spill] sm:$0xff] %v5624_v60  ;;  %v1892_v27 = vmul.f32 %v5202_v38, %v5451_v7  ;;  %v1893_v23 = vmul.f32 %v5621_v21, %v5451_v7  ;;  %v1894_v58 = vmul.f32 %v5624_v60, %v5451_v7  ;;  %v1895_v6 = vmul.f32 %v5207_v0, %v5451_v7 }
 0x15c   : > { %6966 = vst [vmem:[#allocation52_spill] sm:$0xff] %v5628_v8  ;;  %v1896_v15 = vmul.f32 %v5210_v63, %v5451_v7  ;;  %v1897_v28 = vmul.f32 %v5628_v8, %v5451_v7  ;;  %v1898_v50 = vmul.f32 %v5631_v12, %v5451_v7  ;;  %v1899_v38 = vadd.f32 %v1883_v54, %v1850_v18  ;;  %v5666_v7 = vld [vmem:[%s3736_s6 + $0xc8] sm:$0xff] }
 0x15d   : > { %v1900_v24 = vadd.f32 %v1884_v9, %v1851_v22  ;;  %v1901_v16 = vadd.f32 %v1885_v26, %v1852_v41  ;;  %v1902_v32 = vadd.f32 %v1886_v35, %v1853_v51  ;;  %v1903_v47 = vadd.f32 %v1887_v13, %v1854_v56  ;;  %v5669_v51 = vld [vmem:[%s3736_s6 + $0xf0] sm:$0xff]  ;;  %v5672_v56 = vld [vmem:[%s3736_s6 + $0xf8] sm:$0xff] }
 0x15e   : > { %v1904_v60 = vadd.f32 %v1888_v29, %v1855_v55  ;;  %v1905_v0 = vadd.f32 %v1889_v36, %v1856_v17  ;;  %v1906_v63 = vadd.f32 %v1890_v59, %v1857_v57  ;;  %v1907_v21 = vadd.f32 %v1891_v30, %v1858_v31  ;;  %6967 = vst [vmem:[#allocation53_spill] sm:$0xff] %v5672_v56  ;;  %v5677_v55 = vld [vmem:[%s3736_s6 + $0x120] sm:$0xff]  ;;  %v5680_v31 = vld [vmem:[%s3736_s6 + $0x128] sm:$0xff] }
 0x15f   : > { %v1908_v5 = vadd.f32 %v1892_v27, %v1859_v1  ;;  %v1909_v40 = vadd.f32 %v1893_v23, %v1860_v53  ;;  %v1910_v8 = vadd.f32 %v1894_v58, %v1861_v62  ;;  %v1911_v49 = vadd.f32 %v1895_v6, %v1862_v46  ;;  %6968 = vst [vmem:[#allocation54_spill] sm:$0xff] %v5677_v55  ;;  %v6970_v53 = vld [vmem:[#allocation88_spill] sm:$0xff]  ;;  %v6971_v46 = vld [vmem:[#allocation89_spill] sm:$0xff]  ;;  %v6975_v29 = vld [vmem:[#allocation86_spill] sm:$0xff] }
 0x160   : > { %v1912_v18 = vadd.f32 %v1896_v15, %v1863_v42  ;;  %v1913_v41 = vadd.f32 %v1897_v28, %v1864_v25  ;;  %v1914_v22 = vadd.f32 %v1898_v50, %v1865_v43  ;;  %v1935_v17 = vmul.f32 %v5229_v33, %v5454_v4  ;;  %6969 = vst [vmem:[#allocation55_spill] sm:$0xff] %v5680_v31  ;;  %v6972_v25 = vld [vmem:[#allocation92_spill] sm:$0xff] }
 0x161   : > { %v1936_v57 = vmul.f32 %v5232_v61, %v5454_v4  ;;  %v1937_v1 = vmul.f32 %v5235_v44, %v5454_v4  ;;  %v1938_v62 = vmul.f32 %v6970_v53, %v5454_v4  ;;  %v1939_v42 = vmul.f32 %v6971_v46, %v5454_v4  ;;  %v6973_v61 = vld [vmem:[#allocation5_spill] sm:$0xff]  ;;  %v6974_v44 = vld [vmem:[#allocation6_spill] sm:$0xff] }
 0x162   : > { %v1940_v43 = vmul.f32 %v6972_v25, %v5454_v4  ;;  %v1941_v33 = vmul.f32 %v5663_v3, %v5454_v4  ;;  %v1942_v54 = vmul.f32 %v5666_v7, %v5454_v4  ;;  %v1943_v9 = vmul.f32 %v6973_v61, %v5454_v4 }
 0x163   : > { %v1944_v26 = vmul.f32 %v6974_v44, %v5454_v4  ;;  %v1945_v35 = vmul.f32 %v5669_v51, %v5454_v4  ;;  %v1946_v13 = vmul.f32 %v5672_v56, %v5454_v4  ;;  %v1947_v36 = vmul.f32 %v6975_v29, %v5454_v4  ;;  %v6986_v29 = vld [vmem:[#allocation12_spill] sm:$0xff]  ;;  %v5758_v56 = vld [vmem:[%s3736_s6 + $0xc2] sm:$0xff] }
 0x164   : > { %v1948_v59 = vmul.f32 %v5258_v2, %v5454_v4  ;;  %v1949_v30 = vmul.f32 %v5677_v55, %v5454_v4  ;;  %v1950_v27 = vmul.f32 %v5680_v31, %v5454_v4  ;;  %v1951_v23 = vadd.f32 %v1935_v17, %v1899_v38  ;;  %6988 = vst [vmem:[#allocation61_spill] sm:$0xff] %v5758_v56 }
 0x165   : > { %v1952_v58 = vadd.f32 %v1936_v57, %v1900_v24  ;;  %v1953_v6 = vadd.f32 %v1937_v1, %v1901_v16  ;;  %v1954_v15 = vadd.f32 %v1938_v62, %v1902_v32  ;;  %v1955_v28 = vadd.f32 %v1939_v42, %v1903_v47  ;;  %v5714_v57 = vld [vmem:[%s3736_s6 + $0xc1] sm:$0xff]  ;;  %v5717_v32 = vld [vmem:[%s3736_s6 + $0xc9] sm:$0xff]  ;;  %v5720_v47 = vld [vmem:[%s3736_s6 + $0xf1] sm:$0xff] }
 0x166   : > { %v1956_v50 = vadd.f32 %v1940_v43, %v1904_v60  ;;  %v1957_v53 = vadd.f32 %v1941_v33, %v1905_v0  ;;  %v1958_v46 = vadd.f32 %v1942_v54, %v1906_v63  ;;  %v1983_v2 = vperm.slane %v5416_v45, 1  ;;  %6976 = vst [vmem:[#allocation56_spill] sm:$0xff] %v5714_v57  ;;  %v5723_v60 = vld [vmem:[%s3736_s6 + $0xf9] sm:$0xff]  ;;  %v6984_v33 = vld [vmem:[#allocation10_spill] sm:$0xff] }
 0x167   : > { %v1959_v25 = vadd.f32 %v1943_v9, %v1907_v21  ;;  %v1960_v61 = vadd.f32 %v1944_v26, %v1908_v5  ;;  %v1961_v44 = vadd.f32 %v1945_v35, %v1909_v40  ;;  %v1962_v4 = vadd.f32 %v1946_v13, %v1910_v8  ;;  %6977 = vst [vmem:[#allocation57_spill] sm:$0xff] %v5717_v32  ;;  %v5736_v5 = vld [vmem:[%s3736_s6 + $0x121] sm:$0xff]  ;;  %v5739_v8 = vld [vmem:[%s3736_s6 + $0x129] sm:$0xff]  ;;  %v6982_v1 = vld [vmem:[#allocation8_spill] sm:$0xff] }
 0x168   : > { %v1963_v38 = vadd.f32 %v1947_v36, %v1911_v49  ;;  %v1964_v24 = vadd.f32 %v1948_v59, %v1912_v18  ;;  %v1965_v17 = vadd.f32 %v1949_v30, %v1913_v41  ;;  %v1966_v16 = vadd.f32 %v1950_v27, %v1914_v22  ;;  %6978 = vst [vmem:[#allocation58_spill] sm:$0xff] %v5720_v47  ;;  %v6981_v41 = vld [vmem:[#allocation7_spill] sm:$0xff]  ;;  %v6983_v42 = vld [vmem:[#allocation9_spill] sm:$0xff] }
 0x169   : > { %6979 = vst [vmem:[#allocation59_spill] sm:$0xff] %v5723_v60  ;;  %v2032_v0 = vperm.slane %v5416_v45, 2  ;;  %v5727_v21 = vperm.slane %v5416_v45, 3  ;;  %v5730_v40 = vperm.slane %v5416_v45, 4  ;;  %v5733_v49 = vperm.slane %v5416_v45, 5  ;;  %v6985_v35 = vld [vmem:[#allocation11_spill] sm:$0xff] }
 0x16a   : > { %6980 = vst [vmem:[#allocation60_spill] sm:$0xff] %v5736_v5  ;;  %v1984_v63 = vmul.f32 %v5291_v20, %v1983_v2  ;;  %v1985_v18 = vmul.f32 %v5294_v19, %v1983_v2  ;;  %v1986_v22 = vmul.f32 %v6981_v41, %v1983_v2  ;;  %v1987_v62 = vmul.f32 %v6982_v1, %v1983_v2  ;;  %v6987_v59 = vld [vmem:[#allocation13_spill] sm:$0xff] }
 0x16b   : > { %v1988_v43 = vmul.f32 %v6983_v42, %v1983_v2  ;;  %v1989_v54 = vmul.f32 %v6984_v33, %v1983_v2  ;;  %v1990_v9 = vmul.f32 %v5714_v57, %v1983_v2  ;;  %v1991_v26 = vmul.f32 %v5717_v32, %v1983_v2 }
 0x16c   : > { %v1992_v13 = vmul.f32 %v6985_v35, %v1983_v2  ;;  %v1993_v36 = vmul.f32 %v6986_v29, %v1983_v2  ;;  %v1994_v20 = vmul.f32 %v5720_v47, %v1983_v2  ;;  %v1995_v19 = vmul.f32 %v5723_v60, %v1983_v2 }
 0x16d   : > { %v1996_v30 = vmul.f32 %v6987_v59, %v1983_v2  ;;  %v1997_v27 = vmul.f32 %v5320_v48, %v1983_v2  ;;  %v1998_v41 = vmul.f32 %v5736_v5, %v1983_v2  ;;  %v1999_v1 = vmul.f32 %v5739_v8, %v1983_v2  ;;  %v5761_v5 = vld [vmem:[%s3736_s6 + $0xca] sm:$0xff] }
 0x16e   : > { %v2000_v42 = vadd.f32 %v1984_v63, %v1951_v23  ;;  %v2001_v33 = vadd.f32 %v1985_v18, %v1952_v58  ;;  %v2002_v32 = vadd.f32 %v1986_v22, %v1953_v6  ;;  %v2003_v35 = vadd.f32 %v1987_v62, %v1954_v15  ;;  %6989 = vst [vmem:[#allocation62_spill] sm:$0xff] %v5761_v5  ;;  %v5764_v15 = vld [vmem:[%s3736_s6 + $0xf2] sm:$0xff]  ;;  %v6996_v18 = vld [vmem:[#allocation17_spill] sm:$0xff] }
 0x16f   : > { %v2004_v29 = vadd.f32 %v1988_v43, %v1955_v28  ;;  %v2005_v47 = vadd.f32 %v1989_v54, %v1956_v50  ;;  %v2006_v60 = vadd.f32 %v1990_v9, %v1957_v53  ;;  %v2007_v59 = vadd.f32 %v1991_v26, %v1958_v46  ;;  %6990 = vst [vmem:[#allocation63_spill] sm:$0xff] %v5764_v15  ;;  %v5767_v28 = vld [vmem:[%s3736_s6 + $0xfa] sm:$0xff]  ;;  %v5770_v50 = vld [vmem:[%s3736_s6 + $0x122] sm:$0xff]  ;;  %v5773_v53 = vld [vmem:[%s3736_s6 + $0x12a] sm:$0xff] }
 0x170   : > { %v2008_v57 = vadd.f32 %v1992_v13, %v1959_v25  ;;  %v2009_v31 = vadd.f32 %v1993_v36, %v1960_v61  ;;  %v2010_v48 = vadd.f32 %v1994_v20, %v1961_v44  ;;  %v2011_v55 = vadd.f32 %v1995_v19, %v1962_v4  ;;  %6991 = vst [vmem:[#allocation64_spill] sm:$0xff] %v5767_v28  ;;  %v6993_v46 = vld [vmem:[#allocation14_spill] sm:$0xff]  ;;  %v6994_v61 = vld [vmem:[#allocation15_spill] sm:$0xff]  ;;  %v6995_v4 = vld [vmem:[#allocation16_spill] sm:$0xff] }
 0x171   : > { %v2012_v23 = vadd.f32 %v1996_v30, %v1963_v38  ;;  %v2013_v58 = vadd.f32 %v1997_v27, %v1964_v24  ;;  %v2014_v6 = vadd.f32 %v1998_v41, %v1965_v17  ;;  %v2015_v2 = vadd.f32 %v1999_v1, %v1966_v16  ;;  %6992 = vst [vmem:[#allocation65_spill] sm:$0xff] %v5770_v50  ;;  %v6997_v38 = vld [vmem:[#allocation18_spill] sm:$0xff]  ;;  %v6998_v17 = vld [vmem:[#allocation19_spill] sm:$0xff]  ;;  %v6999_v54 = vld [vmem:[#allocation20_spill] sm:$0xff] }
 0x172   : > { %v2033_v25 = vmul.f32 %v6993_v46, %v2032_v0  ;;  %v2034_v44 = vmul.f32 %v6994_v61, %v2032_v0  ;;  %v2035_v63 = vmul.f32 %v6995_v4, %v2032_v0  ;;  %v2036_v22 = vmul.f32 %v6996_v18, %v2032_v0  ;;  %v7000_v26 = vld [vmem:[#allocation90_spill] sm:$0xff]  ;;  %v7001_v19 = vld [vmem:[#allocation21_spill] sm:$0xff] }
 0x173   : > { %v2037_v24 = vmul.f32 %v6997_v38, %v2032_v0  ;;  %v2038_v16 = vmul.f32 %v6998_v17, %v2032_v0  ;;  %v2039_v62 = vmul.f32 %v5758_v56, %v2032_v0  ;;  %v2040_v43 = vmul.f32 %v5761_v5, %v2032_v0  ;;  %v7002_v27 = vld [vmem:[#allocation22_spill] sm:$0xff] }
 0x174   : > { %v2041_v9 = vmul.f32 %v6999_v54, %v2032_v0  ;;  %v2042_v13 = vmul.f32 %v7000_v26, %v2032_v0  ;;  %v2043_v36 = vmul.f32 %v5764_v15, %v2032_v0  ;;  %v2044_v20 = vmul.f32 %v5767_v28, %v2032_v0  ;;  %v5792_v56 = vld [vmem:[%s3736_s6 + $0xc3] sm:$0xff] }
 0x175   : > { %v2045_v30 = vmul.f32 %v7001_v19, %v2032_v0  ;;  %v2046_v41 = vmul.f32 %v7002_v27, %v2032_v0  ;;  %v2047_v1 = vmul.f32 %v5770_v50, %v2032_v0  ;;  %v2048_v46 = vmul.f32 %v5773_v53, %v2032_v0  ;;  %v5795_v50 = vld [vmem:[%s3736_s6 + $0xcb] sm:$0xff] }
 0x176   : > { %v2049_v61 = vadd.f32 %v2033_v25, %v2000_v42  ;;  %v2050_v4 = vadd.f32 %v2034_v44, %v2001_v33  ;;  %v2051_v18 = vadd.f32 %v2035_v63, %v2002_v32  ;;  %v2052_v38 = vadd.f32 %v2036_v22, %v2003_v35  ;;  %v5798_v35 = vld [vmem:[%s3736_s6 + $0xf3] sm:$0xff] }
 0x177   : > { %v2053_v17 = vadd.f32 %v2037_v24, %v2004_v29  ;;  %v2054_v54 = vadd.f32 %v2038_v16, %v2005_v47  ;;  %v2055_v26 = vadd.f32 %v2039_v62, %v2006_v60  ;;  %v2056_v19 = vadd.f32 %v2040_v43, %v2007_v59  ;;  %7003 = vst [vmem:[#allocation66_spill] sm:$0xff] %v5798_v35  ;;  %v5801_v29 = vld [vmem:[%s3736_s6 + $0xfb] sm:$0xff]  ;;  %v5804_v47 = vld [vmem:[%s3736_s6 + $0x123] sm:$0xff]  ;;  %v5807_v60 = vld [vmem:[%s3736_s6 + $0x12b] sm:$0xff] }
 0x178   : > { %v2057_v28 = vadd.f32 %v2041_v9, %v2008_v57  ;;  %v2058_v15 = vadd.f32 %v2042_v13, %v2009_v31  ;;  %v2059_v27 = vadd.f32 %v2043_v36, %v2010_v48  ;;  %v2060_v5 = vadd.f32 %v2044_v20, %v2011_v55  ;;  %7004 = vst [vmem:[#allocation67_spill] sm:$0xff] %v5801_v29  ;;  %v7006_v31 = vld [vmem:[#allocation23_spill] sm:$0xff]  ;;  %v7007_v55 = vld [vmem:[#allocation24_spill] sm:$0xff]  ;;  %v7008_v48 = vld [vmem:[#allocation25_spill] sm:$0xff] }
 0x179   : > { %v2061_v0 = vadd.f32 %v2045_v30, %v2012_v23  ;;  %v2062_v42 = vadd.f32 %v2046_v41, %v2013_v58  ;;  %v2063_v32 = vadd.f32 %v2047_v1, %v2014_v6  ;;  %v2064_v33 = vadd.f32 %v2048_v46, %v2015_v2  ;;  %7005 = vst [vmem:[#allocation68_spill] sm:$0xff] %v5804_v47  ;;  %v7009_v58 = vld [vmem:[#allocation26_spill] sm:$0xff]  ;;  %v7010_v2 = vld [vmem:[#allocation27_spill] sm:$0xff]  ;;  %v7011_v44 = vld [vmem:[#allocation28_spill] sm:$0xff] }
 0x17a   : > { %v2082_v57 = vmul.f32 %v7006_v31, %v5727_v21  ;;  %v2083_v59 = vmul.f32 %v7007_v55, %v5727_v21  ;;  %v2084_v23 = vmul.f32 %v7008_v48, %v5727_v21  ;;  %v2085_v6 = vmul.f32 %v7009_v58, %v5727_v21  ;;  %v7012_v16 = vld [vmem:[#allocation29_spill] sm:$0xff]  ;;  %v7013_v43 = vld [vmem:[#allocation30_spill] sm:$0xff] }
 0x17b   : > { %v2086_v25 = vmul.f32 %v7010_v2, %v5727_v21  ;;  %v2087_v63 = vmul.f32 %v7011_v44, %v5727_v21  ;;  %v2088_v22 = vmul.f32 %v5792_v56, %v5727_v21  ;;  %v2089_v24 = vmul.f32 %v5795_v50, %v5727_v21 }
 0x17c   : > { %v2090_v62 = vmul.f32 %v7012_v16, %v5727_v21  ;;  %v2091_v9 = vmul.f32 %v7013_v43, %v5727_v21  ;;  %v2092_v13 = vmul.f32 %v5798_v35, %v5727_v21  ;;  %v2093_v36 = vmul.f32 %v5801_v29, %v5727_v21  ;;  %v5845_v35 = vld [vmem:[%s3736_s6 + $0xcc] sm:$0xff] }
 0x17d   : > { %v2094_v20 = vmul.f32 %v5457_v39, %v5727_v21  ;;  %v2095_v30 = vmul.f32 %v5460_v34, %v5727_v21  ;;  %v2096_v41 = vmul.f32 %v5804_v47, %v5727_v21  ;;  %v2097_v1 = vmul.f32 %v5807_v60, %v5727_v21  ;;  %v5842_v47 = vld [vmem:[%s3736_s6 + $0xc4] sm:$0xff]  ;;  %7014 = vst [vmem:[#allocation69_spill] sm:$0xff] %v5845_v35 }
 0x17e   : > { %v2098_v46 = vadd.f32 %v2082_v57, %v2049_v61  ;;  %v2099_v31 = vadd.f32 %v2083_v59, %v2050_v4  ;;  %v2100_v55 = vadd.f32 %v2084_v23, %v2051_v18  ;;  %v2101_v48 = vadd.f32 %v2085_v6, %v2052_v38  ;;  %v5848_v38 = vld [vmem:[%s3736_s6 + $0xf4] sm:$0xff] }
 0x17f   : > { %v2102_v58 = vadd.f32 %v2086_v25, %v2053_v17  ;;  %v2103_v39 = vadd.f32 %v2087_v63, %v2054_v54  ;;  %v2104_v2 = vadd.f32 %v2088_v22, %v2055_v26  ;;  %v2105_v44 = vadd.f32 %v2089_v24, %v2056_v19  ;;  %7015 = vst [vmem:[#allocation70_spill] sm:$0xff] %v5848_v38  ;;  %v5851_v17 = vld [vmem:[%s3736_s6 + $0xfc] sm:$0xff]  ;;  %v5854_v54 = vld [vmem:[%s3736_s6 + $0x124] sm:$0xff]  ;;  %v5857_v26 = vld [vmem:[%s3736_s6 + $0x12c] sm:$0xff] }
 0x180   : > { %v2106_v34 = vadd.f32 %v2090_v62, %v2057_v28  ;;  %v2107_v16 = vadd.f32 %v2091_v9, %v2058_v15  ;;  %v2108_v43 = vadd.f32 %v2092_v13, %v2059_v27  ;;  %v2109_v29 = vadd.f32 %v2093_v36, %v2060_v5  ;;  %7016 = vst [vmem:[#allocation71_spill] sm:$0xff] %v5851_v17  ;;  %v7018_v15 = vld [vmem:[#allocation31_spill] sm:$0xff]  ;;  %v7019_v5 = vld [vmem:[#allocation32_spill] sm:$0xff]  ;;  %v7020_v27 = vld [vmem:[#allocation33_spill] sm:$0xff] }
 0x181   : > { %v2110_v21 = vadd.f32 %v2094_v20, %v2061_v0  ;;  %v2111_v61 = vadd.f32 %v2095_v30, %v2062_v42  ;;  %v2112_v4 = vadd.f32 %v2096_v41, %v2063_v32  ;;  %v2113_v18 = vadd.f32 %v2097_v1, %v2064_v33  ;;  %7017 = vst [vmem:[#allocation72_spill] sm:$0xff] %v5854_v54  ;;  %v7021_v42 = vld [vmem:[#allocation34_spill] sm:$0xff]  ;;  %v7022_v33 = vld [vmem:[#allocation91_spill] sm:$0xff]  ;;  %v7024_v63 = vld [vmem:[#allocation36_spill] sm:$0xff] }
 0x182   : > { %v2131_v28 = vmul.f32 %v7018_v15, %v5730_v40  ;;  %v2132_v19 = vmul.f32 %v7019_v5, %v5730_v40  ;;  %v2133_v0 = vmul.f32 %v7020_v27, %v5730_v40  ;;  %v2134_v32 = vmul.f32 %v7021_v42, %v5730_v40  ;;  %v7023_v59 = vld [vmem:[#allocation35_spill] sm:$0xff]  ;;  %v7025_v24 = vld [vmem:[#allocation37_spill] sm:$0xff]  ;;  %v7026_v36 = vld [vmem:[#allocation38_spill] sm:$0xff] }
 0x183   : > { %v2135_v57 = vmul.f32 %v7022_v33, %v5730_v40  ;;  %v2136_v23 = vmul.f32 %v7023_v59, %v5730_v40  ;;  %v2137_v6 = vmul.f32 %v5842_v47, %v5730_v40  ;;  %v2138_v25 = vmul.f32 %v5845_v35, %v5730_v40  ;;  %v5895_v35 = vld [vmem:[%s3736_s6 + $0xcd] sm:$0xff] }
 0x184   : > { %v2139_v22 = vmul.f32 %v7024_v63, %v5730_v40  ;;  %v2140_v62 = vmul.f32 %v7025_v24, %v5730_v40  ;;  %v2141_v9 = vmul.f32 %v5848_v38, %v5730_v40  ;;  %v2142_v13 = vmul.f32 %v5851_v17, %v5730_v40 }
 0x185   : > { %v2143_v20 = vmul.f32 %v7026_v36, %v5730_v40  ;;  %v2144_v30 = vmul.f32 %v5507_v37, %v5730_v40  ;;  %v2145_v41 = vmul.f32 %v5854_v54, %v5730_v40  ;;  %v2146_v1 = vmul.f32 %v5857_v26, %v5730_v40  ;;  %v5892_v54 = vld [vmem:[%s3736_s6 + $0xc5] sm:$0xff] }
 0x186   : > { %v2147_v15 = vadd.f32 %v2131_v28, %v2098_v46  ;;  %v2148_v5 = vadd.f32 %v2132_v19, %v2099_v31  ;;  %v2149_v27 = vadd.f32 %v2133_v0, %v2100_v55  ;;  %v2150_v42 = vadd.f32 %v2134_v32, %v2101_v48  ;;  %v5898_v48 = vld [vmem:[%s3736_s6 + $0xf5] sm:$0xff] }
 0x187   : > { %v2151_v33 = vadd.f32 %v2135_v57, %v2102_v58  ;;  %v2152_v59 = vadd.f32 %v2136_v23, %v2103_v39  ;;  %v2153_v63 = vadd.f32 %v2137_v6, %v2104_v2  ;;  %v2154_v24 = vadd.f32 %v2138_v25, %v2105_v44  ;;  %7027 = vst [vmem:[#allocation73_spill] sm:$0xff] %v5898_v48  ;;  %v5901_v58 = vld [vmem:[%s3736_s6 + $0xfd] sm:$0xff]  ;;  %v5904_v39 = vld [vmem:[%s3736_s6 + $0x125] sm:$0xff]  ;;  %v5907_v2 = vld [vmem:[%s3736_s6 + $0x12d] sm:$0xff] }
 0x188   : > { %v2155_v37 = vadd.f32 %v2139_v22, %v2106_v34  ;;  %v2156_v36 = vadd.f32 %v2140_v62, %v2107_v16  ;;  %v2157_v17 = vadd.f32 %v2141_v9, %v2108_v43  ;;  %v2158_v38 = vadd.f32 %v2142_v13, %v2109_v29  ;;  %7028 = vst [vmem:[#allocation74_spill] sm:$0xff] %v5901_v58  ;;  %v7031_v29 = vld [vmem:[#allocation39_spill] sm:$0xff]  ;;  %v7032_v16 = vld [vmem:[#allocation40_spill] sm:$0xff]  ;;  %v7037_v23 = vld [vmem:[#allocation45_spill] sm:$0xff] }
 0x189   : > { %v2159_v40 = vadd.f32 %v2143_v20, %v2110_v21  ;;  %v2160_v46 = vadd.f32 %v2144_v30, %v2111_v61  ;;  %v2161_v31 = vadd.f32 %v2145_v41, %v2112_v4  ;;  %v2162_v55 = vadd.f32 %v2146_v1, %v2113_v18  ;;  %7029 = vst [vmem:[#allocation75_spill] sm:$0xff] %v5904_v39  ;;  %v7033_v21 = vld [vmem:[#allocation41_spill] sm:$0xff]  ;;  %v7034_v4 = vld [vmem:[#allocation42_spill] sm:$0xff]  ;;  %v7035_v28 = vld [vmem:[#allocation43_spill] sm:$0xff] }
 0x18a   : > { %7030 = vst [vmem:[#allocation77_spill] sm:$0xff] %v5907_v2  ;;  %v2180_v44 = vmul.f32 %v5541_v11, %v5733_v49  ;;  %v2181_v34 = vmul.f32 %v7031_v29, %v5733_v49  ;;  %v2182_v43 = vmul.f32 %v7032_v16, %v5733_v49  ;;  %v2183_v61 = vmul.f32 %v7033_v21, %v5733_v49  ;;  %v7036_v32 = vld [vmem:[#allocation44_spill] sm:$0xff]  ;;  %v7038_v62 = vld [vmem:[#allocation46_spill] sm:$0xff]  ;;  %v5944_v21 = vld [vmem:[%s6303_s1 + $0x30] sm:$0x7f] }
 0x18b   : > { %v2184_v18 = vmul.f32 %v7034_v4, %v5733_v49  ;;  %v2185_v19 = vmul.f32 %v7035_v28, %v5733_v49  ;;  %v2186_v0 = vmul.f32 %v5892_v54, %v5733_v49  ;;  %v2187_v11 = vmul.f32 %v5895_v35, %v5733_v49 }
 0x18c   : > { %v2188_v57 = vmul.f32 %v7036_v32, %v5733_v49  ;;  %v2189_v6 = vmul.f32 %v7037_v23, %v5733_v49  ;;  %v2190_v25 = vmul.f32 %v5898_v48, %v5733_v49  ;;  %v2191_v22 = vmul.f32 %v5901_v58, %v5733_v49 }
 0x18d   : > { %v2192_v9 = vmul.f32 %v7038_v62, %v5733_v49  ;;  %v2193_v13 = vmul.f32 %v5569_v14, %v5733_v49  ;;  %v2194_v20 = vmul.f32 %v5904_v39, %v5733_v49  ;;  %v2195_v30 = vmul.f32 %v5907_v2, %v5733_v49  ;;  %v5951_v62 = vld [vmem:[%s3736_s6 + $0xce] sm:$0xff] }
 0x18e   : > { %v2196_v41 = vadd.f32 %v2180_v44, %v2147_v15  ;;  %v2197_v1 = vadd.f32 %v2181_v34, %v2148_v5  ;;  %v2198_v29 = vadd.f32 %v2182_v43, %v2149_v27  ;;  %v2199_v16 = vadd.f32 %v2183_v61, %v2150_v42  ;;  %v5948_v43 = vld [vmem:[%s3736_s6 + $0xc6] sm:$0xff]  ;;  %7040 = vst [vmem:[#allocation79_spill] sm:$0xff] %v5951_v62 }
 0x18f   : > { %v2200_v4 = vadd.f32 %v2184_v18, %v2151_v33  ;;  %v2201_v14 = vadd.f32 %v2185_v19, %v2152_v59  ;;  %v2202_v28 = vadd.f32 %v2186_v0, %v2153_v63  ;;  %v2228_v32 = vperm.slane %v5416_v45, 6  ;;  %7039 = vst [vmem:[#allocation78_spill] sm:$0xff] %v5948_v43  ;;  %v5954_v33 = vld [vmem:[%s3736_s6 + $0xf6] sm:$0xff]  ;;  %v5969_v63 = vld [vmem:[%s3736_s6 + $0x126] sm:$0xff] }
 0x190   : > { %v2203_v23 = vadd.f32 %v2187_v11, %v2154_v24  ;;  %v2204_v49 = vadd.f32 %v2188_v57, %v2155_v37  ;;  %v2205_v15 = vadd.f32 %v2189_v6, %v2156_v36  ;;  %v2206_v5 = vadd.f32 %v2190_v25, %v2157_v17  ;;  %7041 = vst [vmem:[#allocation80_spill] sm:$0xff] %v5954_v33  ;;  %v7044_v36 = vld [vmem:[#allocation47_spill] sm:$0xff]  ;;  %v7047_v19 = vld [vmem:[#allocation48_spill] sm:$0xff]  ;;  %v7048_v11 = vld [vmem:[#allocation49_spill] sm:$0xff] }
 0x191   : > { %v2207_v27 = vadd.f32 %v2191_v22, %v2158_v38  ;;  %v2208_v42 = vadd.f32 %v2192_v9, %v2159_v40  ;;  %v2209_v44 = vadd.f32 %v2193_v13, %v2160_v46  ;;  %v2210_v34 = vadd.f32 %v2194_v20, %v2161_v31  ;;  %v5966_v38 = vld [vmem:[%s3736_s6 + $0xfe] sm:$0xff]  ;;  %7043 = vst [vmem:[#allocation82_spill] sm:$0xff] %v5969_v63  ;;  %v5978_v31 = vld [vmem:[%s3736_s6 + $0x12e] sm:$0xff] }
 0x192   : > { %v2211_v61 = vadd.f32 %v2195_v30, %v2162_v55  ;;  %v5957_v45 = vperm.slane %v5944_v21, 0  ;;  %v5960_v59 = vperm.slane %v5944_v21, 1  ;;  %v5963_v17 = vperm.slane %v5944_v21, 2  ;;  %7042 = vst [vmem:[#allocation81_spill] sm:$0xff] %v5966_v38  ;;  %v7046_v55 = vld [vmem:[#allocation76_spill] sm:$0xff]  ;;  %v7050_v22 = vld [vmem:[#allocation51_spill] sm:$0xff] }
 0x193   : > { %v2229_v24 = vmul.f32 %v5603_v10, %v2228_v32  ;;  %v2230_v37 = vmul.f32 %v5606_v52, %v2228_v32  ;;  %v2231_v40 = vmul.f32 %v7044_v36, %v2228_v32  ;;  %v5975_v46 = vperm.slane %v5944_v21, 3  ;;  %7045 = vst [vmem:[#allocation83_spill] sm:$0xff] %v5978_v31  ;;  %v7049_v10 = vld [vmem:[#allocation50_spill] sm:$0xff]  ;;  %v7051_v30 = vld [vmem:[#allocation52_spill] sm:$0xff] }
 0x194   : > { %v2232_v18 = vmul.f32 %v7046_v55, %v2228_v32  ;;  %v2233_v0 = vmul.f32 %v7047_v19, %v2228_v32  ;;  %v2234_v57 = vmul.f32 %v7048_v11, %v2228_v32  ;;  %v2235_v6 = vmul.f32 %v5948_v43, %v2228_v32 }
 0x195   : > { %v2236_v25 = vmul.f32 %v5951_v62, %v2228_v32  ;;  %v2237_v52 = vmul.f32 %v7049_v10, %v2228_v32  ;;  %v2238_v9 = vmul.f32 %v7050_v22, %v2228_v32  ;;  %v2239_v13 = vmul.f32 %v5954_v33, %v2228_v32 }
 0x196   : > { %v2240_v20 = vmul.f32 %v5966_v38, %v2228_v32  ;;  %v2241_v36 = vmul.f32 %v7051_v30, %v2228_v32  ;;  %v2242_v55 = vmul.f32 %v5631_v12, %v2228_v32  ;;  %v2243_v19 = vmul.f32 %v5969_v63, %v2228_v32  ;;  %v3352_v38 = vld [vmem:[%s3736_s6 + $0x90] sm:$0xff]  ;;  %v3353_v30 = vld [vmem:[%s3736_s6 + $0x98] sm:$0xff]  ;;  %v3354_v12 = vld [vmem:[%s3736_s6 + $0xa8] sm:$0xff] }
 0x197   : > { %v2244_v11 = vmul.f32 %v5978_v31, %v2228_v32  ;;  %v2245_v2 = vadd.f32 %v2229_v24, %v2196_v41  ;;  %v2246_v10 = vadd.f32 %v2230_v37, %v2197_v1  ;;  %v2247_v39 = vadd.f32 %v2231_v40, %v2198_v29  ;;  %v3355_v31 = vld [vmem:[%s3736_s6 + $0xb0] sm:$0xff]  ;;  %v3358_v41 = vld [vmem:[%s3736_s6 + $0xd8] sm:$0xff]  ;;  %v3359_v24 = vld [vmem:[%s3736_s6 + $0xe0] sm:$0xff] }
 0x198   : > { %v2248_v62 = vadd.f32 %v2232_v18, %v2199_v16  ;;  %v2249_v22 = vadd.f32 %v2233_v0, %v2200_v4  ;;  %v2250_v43 = vadd.f32 %v2234_v57, %v2201_v14  ;;  %v2251_v33 = vadd.f32 %v2235_v6, %v2202_v28  ;;  %v3362_v14 = vld [vmem:[%s3736_s6 + $0x108] sm:$0xff]  ;;  %v3363_v28 = vld [vmem:[%s3736_s6 + $0x110] sm:$0xff]  ;;  %v3366_v40 = vld [vmem:[%s3736_s6 + $0x138] sm:$0xff] }
 0x199   : > { %v2252_v58 = vadd.f32 %v2236_v25, %v2203_v23  ;;  %v2253_v63 = vadd.f32 %v2237_v52, %v2204_v49  ;;  %v2254_v48 = vadd.f32 %v2238_v9, %v2205_v15  ;;  %v2255_v32 = vadd.f32 %v2239_v13, %v2206_v5  ;;  %v3367_v49 = vld [vmem:[%s3736_s6 + $0x140] sm:$0xff]  ;;  %v7053_v57 = vld [vmem:[#allocation54_spill] sm:$0xff]  ;;  %v7054_v6 = vld [vmem:[#allocation55_spill] sm:$0xff] }
 0x19a   : > { %v2256_v1 = vadd.f32 %v2240_v20, %v2207_v27  ;;  %v2257_v29 = vadd.f32 %v2241_v36, %v2208_v42  ;;  %v2258_v16 = vadd.f32 %v2242_v55, %v2209_v44  ;;  %v2259_v4 = vadd.f32 %v2243_v19, %v2210_v34 }
 0x19b   : > { %v2260_v37 = vadd.f32 %v2244_v11, %v2211_v61  ;;  %v2281_v18 = vmul.f32 %v3352_v38, %v5957_v45  ;;  %v2282_v0 = vmul.f32 %v3353_v30, %v5957_v45  ;;  %v2283_v23 = vmul.f32 %v3354_v12, %v5957_v45  ;;  %v7052_v61 = vld [vmem:[#allocation53_spill] sm:$0xff]  ;;  %v3368_v30 = vld [vmem:[%s3736_s6 + $0x91] sm:$0xff] }
 0x19c   : > { %v2284_v15 = vmul.f32 %v3355_v31, %v5957_v45  ;;  %v2285_v5 = vmul.f32 %v5663_v3, %v5957_v45  ;;  %v2286_v27 = vmul.f32 %v5666_v7, %v5957_v45  ;;  %v2287_v42 = vmul.f32 %v3358_v41, %v5957_v45  ;;  %v3369_v12 = vld [vmem:[%s3736_s6 + $0x99] sm:$0xff]  ;;  %v3370_v41 = vld [vmem:[%s3736_s6 + $0xa9] sm:$0xff] }
 0x19d   : > { %v2288_v44 = vmul.f32 %v3359_v24, %v5957_v45  ;;  %v2289_v34 = vmul.f32 %v5669_v51, %v5957_v45  ;;  %v2290_v38 = vmul.f32 %v7052_v61, %v5957_v45  ;;  %v2291_v31 = vmul.f32 %v3362_v14, %v5957_v45 }
 0x19e   : > { %v2292_v3 = vmul.f32 %v3363_v28, %v5957_v45  ;;  %v2293_v7 = vmul.f32 %v7053_v57, %v5957_v45  ;;  %v2294_v25 = vmul.f32 %v7054_v6, %v5957_v45  ;;  %v2295_v52 = vmul.f32 %v3366_v40, %v5957_v45  ;;  %v3371_v40 = vld [vmem:[%s3736_s6 + $0xb1] sm:$0xff] }
 0x19f   : > { %v2296_v51 = vmul.f32 %v3367_v49, %v5957_v45  ;;  %v2297_v9 = vadd.f32 %v2281_v18, %v2245_v2  ;;  %v2298_v13 = vadd.f32 %v2282_v0, %v2246_v10  ;;  %v2299_v20 = vadd.f32 %v2283_v23, %v2247_v39  ;;  %v3374_v2 = vld [vmem:[%s3736_s6 + $0xd9] sm:$0xff]  ;;  %v3375_v18 = vld [vmem:[%s3736_s6 + $0xe1] sm:$0xff] }
 0x1a0   : > { %v2300_v36 = vadd.f32 %v2284_v15, %v2248_v62  ;;  %v2301_v55 = vadd.f32 %v2285_v5, %v2249_v22  ;;  %v2302_v19 = vadd.f32 %v2286_v27, %v2250_v43  ;;  %v2303_v11 = vadd.f32 %v2287_v42, %v2251_v33  ;;  %v3378_v43 = vld [vmem:[%s3736_s6 + $0x109] sm:$0xff]  ;;  %v3379_v33 = vld [vmem:[%s3736_s6 + $0x111] sm:$0xff]  ;;  %v3382_v23 = vld [vmem:[%s3736_s6 + $0x139] sm:$0xff] }
 0x1a1   : > { %v2304_v24 = vadd.f32 %v2288_v44, %v2252_v58  ;;  %v2305_v14 = vadd.f32 %v2289_v34, %v2253_v63  ;;  %v2306_v28 = vadd.f32 %v2290_v38, %v2254_v48  ;;  %v2307_v45 = vadd.f32 %v2291_v31, %v2255_v32  ;;  %v3383_v48 = vld [vmem:[%s3736_s6 + $0x141] sm:$0xff]  ;;  %v7055_v32 = vld [vmem:[#allocation56_spill] sm:$0xff]  ;;  %v7058_v42 = vld [vmem:[#allocation59_spill] sm:$0xff] }
 0x1a2   : > { %v2308_v10 = vadd.f32 %v2292_v3, %v2256_v1  ;;  %v2309_v39 = vadd.f32 %v2293_v7, %v2257_v29  ;;  %v2310_v62 = vadd.f32 %v2294_v25, %v2258_v16  ;;  %v2311_v22 = vadd.f32 %v2295_v52, %v2259_v4  ;;  %v7056_v29 = vld [vmem:[#allocation57_spill] sm:$0xff]  ;;  %v7057_v5 = vld [vmem:[#allocation58_spill] sm:$0xff]  ;;  %v7059_v38 = vld [vmem:[#allocation60_spill] sm:$0xff] }
 0x1a3   : > { %v2312_v0 = vadd.f32 %v2296_v51, %v2260_v37  ;;  %v2330_v49 = vmul.f32 %v3368_v30, %v5960_v59  ;;  %v2331_v15 = vmul.f32 %v3369_v12, %v5960_v59  ;;  %v2332_v58 = vmul.f32 %v3370_v41, %v5960_v59 }
 0x1a4   : > { %v2333_v63 = vmul.f32 %v3371_v40, %v5960_v59  ;;  %v2334_v1 = vmul.f32 %v7055_v32, %v5960_v59  ;;  %v2335_v16 = vmul.f32 %v7056_v29, %v5960_v59  ;;  %v2336_v4 = vmul.f32 %v3374_v2, %v5960_v59  ;;  %v3384_v40 = vld [vmem:[%s3736_s6 + $0x92] sm:$0xff]  ;;  %v3385_v2 = vld [vmem:[%s3736_s6 + $0x9a] sm:$0xff] }
 0x1a5   : > { %v2337_v37 = vmul.f32 %v3375_v18, %v5960_v59  ;;  %v2338_v27 = vmul.f32 %v7057_v5, %v5960_v59  ;;  %v2339_v44 = vmul.f32 %v7058_v42, %v5960_v59  ;;  %v2340_v34 = vmul.f32 %v3378_v43, %v5960_v59  ;;  %v7062_v32 = vld [vmem:[#allocation63_spill] sm:$0xff]  ;;  %v7063_v29 = vld [vmem:[#allocation64_spill] sm:$0xff]  ;;  %v7064_v5 = vld [vmem:[#allocation65_spill] sm:$0xff] }
 0x1a6   : > { %v2341_v61 = vmul.f32 %v3379_v33, %v5960_v59  ;;  %v2342_v31 = vmul.f32 %v7059_v38, %v5960_v59  ;;  %v2343_v3 = vmul.f32 %v5739_v8, %v5960_v59  ;;  %v2344_v57 = vmul.f32 %v3382_v23, %v5960_v59  ;;  %v3386_v8 = vld [vmem:[%s3736_s6 + $0xaa] sm:$0xff]  ;;  %v3387_v23 = vld [vmem:[%s3736_s6 + $0xb2] sm:$0xff] }
 0x1a7   : > { %v2345_v7 = vmul.f32 %v3383_v48, %v5960_v59  ;;  %v2346_v6 = vadd.f32 %v2330_v49, %v2297_v9  ;;  %v2347_v25 = vadd.f32 %v2331_v15, %v2298_v13  ;;  %v2348_v52 = vadd.f32 %v2332_v58, %v2299_v20  ;;  %v3390_v9 = vld [vmem:[%s3736_s6 + $0xda] sm:$0xff]  ;;  %v3391_v49 = vld [vmem:[%s3736_s6 + $0xe2] sm:$0xff] }
 0x1a8   : > { %v2349_v51 = vadd.f32 %v2333_v63, %v2300_v36  ;;  %v2350_v30 = vadd.f32 %v2334_v1, %v2301_v55  ;;  %v2351_v12 = vadd.f32 %v2335_v16, %v2302_v19  ;;  %v2352_v41 = vadd.f32 %v2336_v4, %v2303_v11  ;;  %v3394_v19 = vld [vmem:[%s3736_s6 + $0x10a] sm:$0xff]  ;;  %v3395_v11 = vld [vmem:[%s3736_s6 + $0x112] sm:$0xff]  ;;  %v3398_v58 = vld [vmem:[%s3736_s6 + $0x13a] sm:$0xff] }
 0x1a9   : > { %v2353_v18 = vadd.f32 %v2337_v37, %v2304_v24  ;;  %v2354_v43 = vadd.f32 %v2338_v27, %v2305_v14  ;;  %v2355_v33 = vadd.f32 %v2339_v44, %v2306_v28  ;;  %v2356_v59 = vadd.f32 %v2340_v34, %v2307_v45  ;;  %v3399_v14 = vld [vmem:[%s3736_s6 + $0x142] sm:$0xff] }
 0x1aa   : > { %v2357_v13 = vadd.f32 %v2341_v61, %v2308_v10  ;;  %v2358_v20 = vadd.f32 %v2342_v31, %v2309_v39  ;;  %v2359_v36 = vadd.f32 %v2343_v3, %v2310_v62  ;;  %v2360_v55 = vadd.f32 %v2344_v57, %v2311_v22  ;;  %v7060_v45 = vld [vmem:[#allocation61_spill] sm:$0xff]  ;;  %v7061_v39 = vld [vmem:[#allocation62_spill] sm:$0xff] }
 0x1ab   : > { %v2361_v15 = vadd.f32 %v2345_v7, %v2312_v0  ;;  %v2379_v48 = vmul.f32 %v3384_v40, %v5963_v17  ;;  %v2380_v63 = vmul.f32 %v3385_v2, %v5963_v17  ;;  %v2381_v24 = vmul.f32 %v3386_v8, %v5963_v17  ;;  %v3400_v2 = vld [vmem:[%s3736_s6 + $0x93] sm:$0xff]  ;;  %v3401_v8 = vld [vmem:[%s3736_s6 + $0x9b] sm:$0xff] }
 0x1ac   : > { %v2382_v28 = vmul.f32 %v3387_v23, %v5963_v17  ;;  %v2383_v10 = vmul.f32 %v7060_v45, %v5963_v17  ;;  %v2384_v62 = vmul.f32 %v7061_v39, %v5963_v17  ;;  %v2385_v22 = vmul.f32 %v3390_v9, %v5963_v17 }
 0x1ad   : > { %v2386_v0 = vmul.f32 %v3391_v49, %v5963_v17  ;;  %v2387_v1 = vmul.f32 %v7062_v32, %v5963_v17  ;;  %v2388_v16 = vmul.f32 %v7063_v29, %v5963_v17  ;;  %v2389_v4 = vmul.f32 %v3394_v19, %v5963_v17  ;;  %v3403_v19 = vld [vmem:[%s3736_s6 + $0xb3] sm:$0xff] }
 0x1ae   : > { %v2390_v37 = vmul.f32 %v3395_v11, %v5963_v17  ;;  %v2391_v27 = vmul.f32 %v7064_v5, %v5963_v17  ;;  %v2392_v42 = vmul.f32 %v5773_v53, %v5963_v17  ;;  %v2393_v44 = vmul.f32 %v3398_v58, %v5963_v17  ;;  %v3402_v53 = vld [vmem:[%s3736_s6 + $0xab] sm:$0xff]  ;;  %v3407_v11 = vld [vmem:[%s3736_s6 + $0xe3] sm:$0xff] }
 0x1af   : > { %v2394_v34 = vmul.f32 %v3399_v14, %v5963_v17  ;;  %v2395_v61 = vadd.f32 %v2379_v48, %v2346_v6  ;;  %v2396_v38 = vadd.f32 %v2380_v63, %v2347_v25  ;;  %v2397_v31 = vadd.f32 %v2381_v24, %v2348_v52  ;;  %v3406_v6 = vld [vmem:[%s3736_s6 + $0xdb] sm:$0xff]  ;;  %v7066_v14 = vld [vmem:[#allocation67_spill] sm:$0xff] }
 0x1b0   : > { %v2398_v3 = vadd.f32 %v2382_v28, %v2349_v51  ;;  %v2399_v57 = vadd.f32 %v2383_v10, %v2350_v30  ;;  %v2400_v7 = vadd.f32 %v2384_v62, %v2351_v12  ;;  %v2401_v40 = vadd.f32 %v2385_v22, %v2352_v41  ;;  %v3410_v12 = vld [vmem:[%s3736_s6 + $0x10b] sm:$0xff]  ;;  %v3411_v41 = vld [vmem:[%s3736_s6 + $0x113] sm:$0xff]  ;;  %v3414_v48 = vld [vmem:[%s3736_s6 + $0x13b] sm:$0xff] }
 0x1b1   : > { %v2402_v23 = vadd.f32 %v2386_v0, %v2353_v18  ;;  %v2403_v9 = vadd.f32 %v2387_v1, %v2354_v43  ;;  %v2404_v49 = vadd.f32 %v2388_v16, %v2355_v33  ;;  %v2405_v17 = vadd.f32 %v2389_v4, %v2356_v59  ;;  %v3415_v43 = vld [vmem:[%s3736_s6 + $0x143] sm:$0xff] }
 0x1b2   : > { %v2406_v25 = vadd.f32 %v2390_v37, %v2357_v13  ;;  %v2407_v52 = vadd.f32 %v2391_v27, %v2358_v20  ;;  %v2408_v51 = vadd.f32 %v2392_v42, %v2359_v36  ;;  %v2409_v30 = vadd.f32 %v2393_v44, %v2360_v55  ;;  %v7065_v55 = vld [vmem:[#allocation66_spill] sm:$0xff]  ;;  %v3416_v37 = vld [vmem:[%s3736_s6 + $0x94] sm:$0xff] }
 0x1b3   : > { %v2410_v58 = vadd.f32 %v2394_v34, %v2361_v15  ;;  %v2428_v63 = vmul.f32 %v3400_v2, %v5975_v46  ;;  %v2429_v24 = vmul.f32 %v3401_v8, %v5975_v46  ;;  %v2430_v18 = vmul.f32 %v3402_v53, %v5975_v46  ;;  %v3417_v34 = vld [vmem:[%s3736_s6 + $0x9c] sm:$0xff] }
 0x1b4   : > { %v2431_v33 = vmul.f32 %v3403_v19, %v5975_v46  ;;  %v2432_v59 = vmul.f32 %v5792_v56, %v5975_v46  ;;  %v2433_v13 = vmul.f32 %v5795_v50, %v5975_v46  ;;  %v2434_v20 = vmul.f32 %v3406_v6, %v5975_v46  ;;  %v7067_v56 = vld [vmem:[#allocation68_spill] sm:$0xff]  ;;  %v3426_v19 = vld [vmem:[%s3736_s6 + $0x10c] sm:$0xff] }
 0x1b5   : > { %v2435_v36 = vmul.f32 %v3407_v11, %v5975_v46  ;;  %v2436_v15 = vmul.f32 %v7065_v55, %v5975_v46  ;;  %v2437_v28 = vmul.f32 %v7066_v14, %v5975_v46  ;;  %v2438_v45 = vmul.f32 %v3410_v12, %v5975_v46  ;;  %v3422_v2 = vld [vmem:[%s3736_s6 + $0xdc] sm:$0xff] }
 0x1b6   : > { %v2439_v10 = vmul.f32 %v3411_v41, %v5975_v46  ;;  %v2440_v39 = vmul.f32 %v7067_v56, %v5975_v46  ;;  %v2441_v50 = vmul.f32 %v5807_v60, %v5975_v46  ;;  %v2442_v62 = vmul.f32 %v3414_v48, %v5975_v46  ;;  %v7068_v11 = vld [vmem:[#allocation69_spill] sm:$0xff]  ;;  %v7069_v48 = vld [vmem:[#allocation70_spill] sm:$0xff]  ;;  %v3435_v56 = vld [vmem:[%s3736_s6 + $0xb5] sm:$0xff] }
 0x1b7   : > { %v2443_v22 = vmul.f32 %v3415_v43, %v5975_v46  ;;  %v2444_v0 = vadd.f32 %v2428_v63, %v2395_v61  ;;  %v2445_v32 = vadd.f32 %v2429_v24, %v2396_v38  ;;  %v2446_v1 = vadd.f32 %v2430_v18, %v2397_v31  ;;  %v3418_v46 = vld [vmem:[%s3736_s6 + $0xac] sm:$0xff]  ;;  %v3419_v61 = vld [vmem:[%s3736_s6 + $0xb4] sm:$0xff] }
 0x1b8   : > { %v2447_v29 = vadd.f32 %v2431_v33, %v2398_v3  ;;  %v2448_v16 = vadd.f32 %v2432_v59, %v2399_v57  ;;  %v2449_v4 = vadd.f32 %v2433_v13, %v2400_v7  ;;  %v2476_v5 = vperm.slane %v5944_v21, 4  ;;  %v3423_v7 = vld [vmem:[%s3736_s6 + $0xe4] sm:$0xff]  ;;  %v7070_v24 = vld [vmem:[#allocation71_spill] sm:$0xff]  ;;  %v7071_v13 = vld [vmem:[#allocation72_spill] sm:$0xff] }
 0x1b9   : > { %v2450_v27 = vadd.f32 %v2434_v20, %v2401_v40  ;;  %v2451_v60 = vadd.f32 %v2435_v36, %v2402_v23  ;;  %v2452_v42 = vadd.f32 %v2436_v15, %v2403_v9  ;;  %v2453_v44 = vadd.f32 %v2437_v28, %v2404_v49  ;;  %v3427_v40 = vld [vmem:[%s3736_s6 + $0x114] sm:$0xff]  ;;  %v3430_v49 = vld [vmem:[%s3736_s6 + $0x13c] sm:$0xff] }
 0x1ba   : > { %v2454_v38 = vadd.f32 %v2438_v45, %v2405_v17  ;;  %v2455_v31 = vadd.f32 %v2439_v10, %v2406_v25  ;;  %v2456_v3 = vadd.f32 %v2440_v39, %v2407_v52  ;;  %v2457_v57 = vadd.f32 %v2441_v50, %v2408_v51  ;;  %v3431_v17 = vld [vmem:[%s3736_s6 + $0x144] sm:$0xff]  ;;  %v3432_v33 = vld [vmem:[%s3736_s6 + $0x95] sm:$0xff]  ;;  %v3434_v15 = vld [vmem:[%s3736_s6 + $0xad] sm:$0xff] }
 0x1bb   : > { %v2458_v8 = vadd.f32 %v2442_v62, %v2409_v30  ;;  %v6128_v53 = vadd.f32 %v2443_v22, %v2410_v58  ;;  %v6133_v23 = vperm.slane %v5944_v21, 5  ;;  %v6136_v9 = vperm.slane %v5944_v21, 6  ;;  %v3433_v59 = vld [vmem:[%s3736_s6 + $0x9d] sm:$0xff] }
 0x1bc   : > { %v2477_v6 = vmul.f32 %v3416_v37, %v2476_v5  ;;  %v2478_v25 = vmul.f32 %v3417_v34, %v2476_v5  ;;  %v2479_v52 = vmul.f32 %v3418_v46, %v2476_v5  ;;  %v2480_v51 = vmul.f32 %v3419_v61, %v2476_v5  ;;  %v3448_v34 = vld [vmem:[%s3736_s6 + $0x96] sm:$0xff]  ;;  %v3449_v46 = vld [vmem:[%s3736_s6 + $0x9e] sm:$0xff]  ;;  %v3450_v61 = vld [vmem:[%s3736_s6 + $0xae] sm:$0xff] }
 0x1bd   : > { %v2481_v30 = vmul.f32 %v5842_v47, %v2476_v5  ;;  %v2482_v12 = vmul.f32 %v7068_v11, %v2476_v5  ;;  %v2483_v58 = vmul.f32 %v3422_v2, %v2476_v5  ;;  %v2484_v41 = vmul.f32 %v3423_v7, %v2476_v5 }
 0x1be   : > { %v2485_v63 = vmul.f32 %v7069_v48, %v2476_v5  ;;  %v2486_v21 = vmul.f32 %v7070_v24, %v2476_v5  ;;  %v2487_v18 = vmul.f32 %v3426_v19, %v2476_v5  ;;  %v2488_v43 = vmul.f32 %v3427_v40, %v2476_v5  ;;  %v3455_v48 = vld [vmem:[%s3736_s6 + $0xe6] sm:$0xff] }
 0x1bf   : > { %v2489_v20 = vmul.f32 %v7071_v13, %v2476_v5  ;;  %v2490_v36 = vmul.f32 %v5857_v26, %v2476_v5  ;;  %v2491_v55 = vmul.f32 %v3430_v49, %v2476_v5  ;;  %v2492_v47 = vmul.f32 %v3431_v17, %v2476_v5 }
 0x1c0   : > { %v2493_v14 = vadd.f32 %v2477_v6, %v2444_v0  ;;  %v2494_v28 = vadd.f32 %v2478_v25, %v2445_v32  ;;  %v2495_v45 = vadd.f32 %v2479_v52, %v2446_v1  ;;  %v2496_v10 = vadd.f32 %v2480_v51, %v2447_v29  ;;  %v3438_v0 = vld [vmem:[%s3736_s6 + $0xdd] sm:$0xff]  ;;  %v3443_v51 = vld [vmem:[%s3736_s6 + $0x115] sm:$0xff] }
 0x1c1   : > { %v2497_v39 = vadd.f32 %v2481_v30, %v2448_v16  ;;  %v2498_v50 = vadd.f32 %v2482_v12, %v2449_v4  ;;  %v2526_v62 = vmul.f32 %v3432_v33, %v6133_v23  ;;  %v2527_v22 = vmul.f32 %v3433_v59, %v6133_v23  ;;  %v3454_v25 = vld [vmem:[%s3736_s6 + $0xde] sm:$0xff]  ;;  %v7073_v12 = vld [vmem:[#allocation74_spill] sm:$0xff] }
 0x1c2   : > { %v2499_v26 = vadd.f32 %v2483_v58, %v2450_v27  ;;  %v2500_v37 = vadd.f32 %v2484_v41, %v2451_v60  ;;  %v2501_v5 = vadd.f32 %v2485_v63, %v2452_v42  ;;  %v2528_v32 = vmul.f32 %v3434_v15, %v6133_v23  ;;  %v3439_v42 = vld [vmem:[%s3736_s6 + $0xe5] sm:$0xff] }
 0x1c3   : > { %v2502_v1 = vadd.f32 %v2486_v21, %v2453_v44  ;;  %v6155_v29 = vadd.f32 %v2487_v18, %v2454_v38  ;;  %v6157_v16 = vadd.f32 %v2488_v43, %v2455_v31  ;;  %v2529_v4 = vmul.f32 %v3435_v56, %v6133_v23  ;;  %v3451_v38 = vld [vmem:[%s3736_s6 + $0xb6] sm:$0xff]  ;;  %v7072_v30 = vld [vmem:[#allocation73_spill] sm:$0xff] }
 0x1c4   : > { %v6163_v2 = vadd.f32 %v2489_v20, %v2456_v3  ;;  %v6165_v27 = vadd.f32 %v2490_v36, %v2457_v57  ;;  %v6167_v60 = vadd.f32 %v2491_v55, %v2458_v8  ;;  %v2530_v44 = vmul.f32 %v5892_v54, %v6133_v23  ;;  %v3442_v8 = vld [vmem:[%s3736_s6 + $0x10d] sm:$0xff]  ;;  %v3446_v55 = vld [vmem:[%s3736_s6 + $0x13d] sm:$0xff] }
 0x1c5   : > { %v2531_v31 = vmul.f32 %v5895_v35, %v6133_v23  ;;  %v2532_v3 = vmul.f32 %v3438_v0, %v6133_v23  ;;  %v2542_v7 = vadd.f32 %v2526_v62, %v2493_v14  ;;  %v2543_v57 = vadd.f32 %v2527_v22, %v2494_v28  ;;  %v7075_v43 = vld [vmem:[#allocation79_spill] sm:$0xff]  ;;  %v7077_v22 = vld [vmem:[#allocation80_spill] sm:$0xff] }
 0x1c6   : > { %v2544_v19 = vadd.f32 %v2528_v32, %v2495_v45  ;;  %v2575_v40 = vmul.f32 %v3448_v34, %v6136_v9  ;;  %v2576_v49 = vmul.f32 %v3449_v46, %v6136_v9  ;;  %v2577_v54 = vmul.f32 %v3450_v61, %v6136_v9  ;;  %v3458_v14 = vld [vmem:[%s3736_s6 + $0x10e] sm:$0xff]  ;;  %v3459_v62 = vld [vmem:[%s3736_s6 + $0x116] sm:$0xff] }
 0x1c7   : > { %v6185_v17 = vadd.f32 %v2492_v47, %v6128_v53  ;;  %v2533_v35 = vmul.f32 %v3439_v42, %v6133_v23  ;;  %v2545_v6 = vadd.f32 %v2529_v4, %v2496_v10  ;;  %v2578_v52 = vmul.f32 %v3451_v38, %v6136_v9  ;;  %v7074_v53 = vld [vmem:[#allocation78_spill] sm:$0xff]  ;;  %v7076_v56 = vld [vmem:[#allocation75_spill] sm:$0xff]  ;;  %v7079_v4 = vld [vmem:[#allocation81_spill] sm:$0xff] }
 0x1c8   : > { %v2534_v11 = vmul.f32 %v7072_v30, %v6133_v23  ;;  %v2535_v58 = vmul.f32 %v7073_v12, %v6133_v23  ;;  %v2546_v41 = vadd.f32 %v2530_v44, %v2497_v39  ;;  %v2579_v63 = vmul.f32 %v7074_v53, %v6136_v9  ;;  %v3447_v10 = vld [vmem:[%s3736_s6 + $0x145] sm:$0xff] }
 0x1c9   : > { %v2536_v24 = vmul.f32 %v3442_v8, %v6133_v23  ;;  %v2547_v21 = vadd.f32 %v2531_v31, %v2498_v50  ;;  %v2548_v18 = vadd.f32 %v2532_v3, %v2499_v26  ;;  %v2580_v33 = vmul.f32 %v7075_v43, %v6136_v9  ;;  %v3462_v3 = vld [vmem:[%s3736_s6 + $0x13e] sm:$0xff] }
 0x1ca   : > { %v2581_v59 = vmul.f32 %v3454_v25, %v6136_v9  ;;  %v2591_v13 = vadd.f32 %v2575_v40, %v2542_v7  ;;  %v2592_v20 = vadd.f32 %v2576_v49, %v2543_v57  ;;  %v2593_v36 = vadd.f32 %v2577_v54, %v2544_v19  ;;  %v3463_v19 = vld [vmem:[%s3736_s6 + $0x146] sm:$0xff] }
 0x1cb   : > { %v2537_v47 = vmul.f32 %v3443_v51, %v6133_v23  ;;  %v2549_v15 = vadd.f32 %v2533_v35, %v2500_v37  ;;  %v2582_v28 = vmul.f32 %v3455_v48, %v6136_v9  ;;  %v2594_v45 = vadd.f32 %v2578_v52, %v2545_v6  ;;  %v7078_v37 = vld [vmem:[#allocation77_spill] sm:$0xff] }
 0x1cc   : > { %v2538_v39 = vmul.f32 %v7076_v56, %v6133_v23  ;;  %v2550_v50 = vadd.f32 %v2534_v11, %v2501_v5  ;;  %v2583_v26 = vmul.f32 %v7077_v22, %v6136_v9  ;;  %v2595_v0 = vadd.f32 %v2579_v63, %v2546_v41  ;;  %2607 = vst [vmem:[%s6215_s12] sm:$0xff] %v2591_v13 }
 0x1cd   : > { %v2539_v32 = vmul.f32 %v7078_v37, %v6133_v23  ;;  %v2551_v5 = vadd.f32 %v2535_v58, %v2502_v1  ;;  %v2584_v34 = vmul.f32 %v7079_v4, %v6136_v9  ;;  %v2596_v46 = vadd.f32 %v2580_v33, %v2547_v21  ;;  %2608 = vst [vmem:[%s6215_s12 + $0x8] sm:$0xff] %v2592_v20 }
 0x1ce   : > { %v2540_v61 = vmul.f32 %v3446_v55, %v6133_v23  ;;  %v2552_v42 = vadd.f32 %v2536_v24, %v6155_v29  ;;  %v2585_v44 = vmul.f32 %v3458_v14, %v6136_v9  ;;  %v2597_v38 = vadd.f32 %v2581_v59, %v2548_v18  ;;  %2609 = vst [vmem:[%s6215_s12 + $0x10] sm:$0xff] %v2593_v36  ;;  %v7080_v29 = vld [vmem:[#allocation82_spill] sm:$0xff] }
 0x1cf   : > { %v2541_v31 = vmul.f32 %v3447_v10, %v6133_v23  ;;  %v2553_v1 = vadd.f32 %v2537_v47, %v6157_v16  ;;  %v2586_v7 = vmul.f32 %v3459_v62, %v6136_v9  ;;  %v2598_v57 = vadd.f32 %v2582_v28, %v2549_v15  ;;  %2610 = vst [vmem:[%s6215_s12 + $0x18] sm:$0xff] %v2594_v45  ;;  %v7081_v16 = vld [vmem:[#allocation83_spill] sm:$0xff] }
 0x1d0   : > { %v2554_v8 = vadd.f32 %v2538_v39, %v6163_v2  ;;  %v2587_v40 = vmul.f32 %v7080_v29, %v6136_v9  ;;  %v2599_v49 = vadd.f32 %v2583_v26, %v2550_v50  ;;  %2611 = vst [vmem:[%s6215_s12 + $0x20] sm:$0xff] %v2595_v0  ;;  %v2555_v23 = vadd.f32 %v2539_v32, %v6165_v27 }
 0x1d1   : > { %v2588_v54 = vmul.f32 %v7081_v16, %v6136_v9  ;;  %v2600_v35 = vadd.f32 %v2584_v34, %v2551_v5  ;;  %2612 = vst [vmem:[%s6215_s12 + $0x28] sm:$0xff] %v2596_v46  ;;  %v2556_v6 = vadd.f32 %v2540_v61, %v6167_v60  ;;  %v2589_v2 = vmul.f32 %v3462_v3, %v6136_v9 }
 0x1d2   : > { %v2601_v25 = vadd.f32 %v2585_v44, %v2552_v42  ;;  %2613 = vst [vmem:[%s6215_s12 + $0x30] sm:$0xff] %v2597_v38  ;;  %v2557_v27 = vadd.f32 %v2541_v31, %v6185_v17  ;;  %v2590_v52 = vmul.f32 %v3463_v19, %v6136_v9  ;;  %v2602_v51 = vadd.f32 %v2586_v7, %v2553_v1 }
 0x1d3   : > { %2614 = vst [vmem:[%s6215_s12 + $0x38] sm:$0xff] %v2598_v57  ;;  %v2603_v60 = vadd.f32 %v2587_v40, %v2554_v8  ;;  %v2604_v30 = vadd.f32 %v2588_v54, %v2555_v23  ;;  %v2605_v11 = vadd.f32 %v2589_v2, %v2556_v6 }
 0x1d4   : > { %2615 = vst [vmem:[%s6215_s12 + $0x40] sm:$0xff] %v2599_v49  ;;  %v2606_v12 = vadd.f32 %v2590_v52, %v2557_v27 }
 0x1d5   : > { %2616 = vst [vmem:[%s6215_s12 + $0x48] sm:$0xff] %v2600_v35 }
 0x1d6   : > { %2617 = vst [vmem:[%s6215_s12 + $0x50] sm:$0xff] %v2601_v25 }
 0x1d7   : > { %2618 = vst [vmem:[%s6215_s12 + $0x58] sm:$0xff] %v2602_v51 }
 0x1d8   : > { %2619 = vst [vmem:[%s6215_s12 + $0x60] sm:$0xff] %v2603_v60 }
 0x1d9   : > { %2620 = vst [vmem:[%s6215_s12 + $0x68] sm:$0xff] %v2604_v30 }
 0x1da   : > { %2621 = vst [vmem:[%s6215_s12 + $0x70] sm:$0xff] %v2605_v11 }
 0x1db   : > { %2622 = vst [vmem:[%s6215_s12 + $0x78] sm:$0xff] %v2606_v12 }
 0x1dc   : > { %3573 = shalt.err (!%p3570_p6)
}
 0x1dd   : > { %s3642_s7 = smov 128   ;;  %s3643_s12 = smov 8  }
 0x1de   : > { %3473 = dma.vmem_to_hbm [thread:$0]  (%p3710_p3), %s2641_s26, 2048, %s2643_s28, %s2624_s29, %s3642_s7, %s3642_s7, %s3643_s12  }
 0x1df PF: > { %p3479_p7 = scmp.ge.s32.totalorder %s3640_s16, 2  ;;  %s2657_s13 = sand.u32 1, %s3612_s9  }
 0x1e0   : > { %s2658_s21 = scalar_lea.sflag [#allocation3], %s2657_s13 }
 0x1e1   : > { %p3476_p9 = pnand %p3479_p7, %p3719_p8 }
 0x1e3   : > { %p3477_p10 = pneg %p3476_p9 }
 0x1e5   : > { %3607 = dma.done.wait (%p3477_p10), %s2658_s21, 2048  }
 0x1e6   : > { %3609 = vsyncadd (%p3477_p10), %s2658_s21, 4294965248  ;;  %s15_s16 = sadd.s32 1, %s3640_s16   ;;  %s7082_s9 = smov %s3616_s10 }
 0x1e7   : > { %p12_p11 = scmp.ge.s32.totalorder %s15_s16, 6   ;;  %s7083_s10 = smov %s3620_s11 }
 0x1e8   : > { %s7084_s11 = smov %s3728_s27  ;;  %s7085_s12 = smov %s3632_s14 }
 0x1e9   : > { %s7086_s13 = smov %s3636_s15  ;;  %s7087_s14 = smov %s7090_s19 }
 0x1ea   : > { %s7088_s15 = smov %s7094_s20  ;;  %14 = sbr.rel (!%p12_p11) target bundleno = 5 (0x5), region = 73 }
 0x1ef   :  { %2664 = vsyncpa [#allocation3], 1 }
 0x1f0   :  { %2666 = vsyncpa [#allocation3 + $0x1], 1 }

</bundles_post_ra>
